<compile_context>
chip_gen: v7x
topology: tpu7x:2x2x1
jax: 0.10.0
libtpu: 0.0.40
codegen_flags: <defaults>
</compile_context>

<pallas_src>
import functools
import math

import jax
import jax.numpy as jnp
from jax.experimental import pallas as pl
from jax.experimental.pallas import tpu as pltpu

_LANE = 128


def _round_up(x, m):
    return (x + m - 1) // m * m


def _make_lstm_fc_kernel(num_layers: int, T: int, B: int, Hp: int):
    """Stacked-LSTM + FC kernel. All shapes are static Python ints.

    Ref layout (inputs, then outputs, then scratch):
      [0]            x_ref     (T*B, D)        time-major rows
      [1 + 3l + 0]   Wx_l      (Din_l, 4*Hp)   pre-transposed, gate-padded
      [1 + 3l + 1]   Wh_l      (Hp,    4*Hp)
      [1 + 3l + 2]   b_l       (1,     4*Hp)   (= b_ih + b_hh, gate-padded)
      [1 + 3L]       Wfc       (Hp, Cp)
      [2 + 3L]       bfc       (1,  Cp)
      [3 + 3L]       out_ref   (B,  Cp)
      [4 + 3L]       seq_ref   (T*B, Hp)       VMEM scratch (layer l -> l+1)
    """
    L = num_layers

    def kernel(*refs):
        x_ref = refs[0]
        wfc_ref = refs[1 + 3 * L]
        bfc_ref = refs[2 + 3 * L]
        out_ref = refs[3 + 3 * L]
        seq_ref = refs[4 + 3 * L]

        h = None
        for l in range(L):
            wx_ref = refs[1 + 3 * l]
            wh_ref = refs[2 + 3 * l]
            b_ref = refs[3 + 3 * l]

            # ---- hoisted input-to-hidden GEMM over the whole sequence ----
            # (one big MXU matmul per layer; bias folded in -> broadcast once)
            inp = x_ref[...] if l == 0 else seq_ref[...]        # (T*B, Din)
            gx = (jnp.dot(inp, wx_ref[...],
                          preferred_element_type=jnp.float32)
                  + b_ref[...])                                  # (T*B, 4*Hp)

            wh = wh_ref[...]          # (Hp, 4*Hp) resident only for this layer

            h = jnp.zeros((B, Hp), jnp.float32)
            c = jnp.zeros((B, Hp), jnp.float32)

            # ---- serial recurrence: fully unrolled (T static & small) ----
            for t in range(T):
                gates = gx[t * B:(t + 1) * B, :] + jnp.dot(
                    h, wh, preferred_element_type=jnp.float32)   # (B, 4*Hp)
                # lane-aligned 128-wide gate slices
                i = jax.nn.sigmoid(gates[:, 0 * Hp:1 * Hp])
                f = jax.nn.sigmoid(gates[:, 1 * Hp:2 * Hp])
                g = jnp.tanh(gates[:, 2 * Hp:3 * Hp])
                o = jax.nn.sigmoid(gates[:, 3 * Hp:4 * Hp])
                c = f * c + i * g
                h = o * jnp.tanh(c)
                if l < L - 1:
                    seq_ref[t * B:(t + 1) * B, :] = h            # feed layer l+1

        # FC head on the last time step of the top layer (lane-dense Cp cols).
        out_ref[...] = (jnp.dot(h, wfc_ref[...],
                                preferred_element_type=jnp.float32)
                        + bfc_ref[...])

    return kernel


def pack_params(params, *, input_size, hidden_size, num_layers, num_classes):
    """One-time (outside jit) repack of PyTorch-layout weights into kernel
    layout: transposed, gates padded to Hp=ceil(H/128)*128 lanes, classes
    padded to Cp.  Padded rows/cols are zero, so padded hidden lanes stay 0
    through the recurrence and contribute nothing to the FC output."""
    H = hidden_size
    Hp = _round_up(H, _LANE)
    Cp = _round_up(num_classes, _LANE)

    packed = []
    for l in range(num_layers):
        w_ih, w_hh, b_ih, b_hh = params["lstm"][l]   # (4H, Din), (4H, H), (4H,)
        d_real = input_size if l == 0 else H
        d_pad = input_size if l == 0 else Hp
        wx = jnp.zeros((d_pad, 4 * Hp), jnp.float32)
        wh = jnp.zeros((Hp, 4 * Hp), jnp.float32)
        b = jnp.zeros((1, 4 * Hp), jnp.float32)
        bsum = b_ih + b_hh
        for k in range(4):
            wx = wx.at[:d_real, k * Hp:k * Hp + H].set(
                jnp.transpose(w_ih[k * H:(k + 1) * H, :]))
            wh = wh.at[:H, k * Hp:k * Hp + H].set(
                jnp.transpose(w_hh[k * H:(k + 1) * H, :]))
            b = b.at[0, k * Hp:k * Hp + H].set(bsum[k * H:(k + 1) * H])
        packed += [wx, wh, b]

    w_fc, b_fc = params["fc"]                         # (C, H), (C,)
    wfc = jnp.zeros((Hp, Cp), jnp.float32).at[:H, :num_classes].set(
        jnp.transpose(w_fc))
    bfc = jnp.zeros((1, Cp), jnp.float32).at[0, :num_classes].set(b_fc)
    packed += [wfc, bfc]
    return tuple(packed)


def rnn_forward(x_btd, packed, *, num_layers, hidden_size, num_classes):
    """x_btd: (B, T, D) float32, batch-first like the PyTorch module."""
    B, T, D = x_btd.shape
    Hp = _round_up(hidden_size, _LANE)
    Cp = _round_up(num_classes, _LANE)

    # Time-major flattened rows: row t*B + b == x[b, t, :].
    x2d = jnp.transpose(x_btd, (1, 0, 2)).reshape(T * B, D)

    kernel = _make_lstm_fc_kernel(num_layers, T, B, Hp)
    vmem = pl.BlockSpec(memory_space=pltpu.MemorySpace.VMEM)
    n_in = 1 + len(packed)

    # Advisory cost estimate for the XLA scheduler.
    flops = 0
    for l in range(num_layers):
        din = D if l == 0 else Hp
        flops += 2 * T * B * din * 4 * Hp     # hoisted input GEMM
        flops += 2 * T * B * Hp * 4 * Hp      # recurrent GEMM
    flops += 2 * B * Hp * Cp                  # FC head
    transcendentals = num_layers * T * B * 5 * Hp
    bytes_accessed = 4 * (x2d.size + sum(int(p.size) for p in packed) + B * Cp)

    out = pl.pallas_call(
        kernel,
        out_shape=jax.ShapeDtypeStruct((B, Cp), jnp.float32),
        in_specs=[vmem] * n_in,
        out_specs=vmem,
        scratch_shapes=[pltpu.VMEM((T * B, Hp), jnp.float32)],
        compiler_params=pltpu.CompilerParams(
            vmem_limit_bytes=32 * 1024 * 1024),
        cost_estimate=pl.CostEstimate(
            flops=flops, transcendentals=transcendentals,
            bytes_accessed=bytes_accessed),
    )(x2d, *packed)
    return out[:, :num_classes]


def init_params(key, input_size, hidden_size, num_layers, num_classes):
    """Deterministic PyTorch-style uniform(-1/sqrt(H), 1/sqrt(H)) init."""
    stdv = 1.0 / math.sqrt(hidden_size)
    params = {"lstm": [], "fc": None}
    for l in range(num_layers):
        in_dim = input_size if l == 0 else hidden_size
        key, k1, k2, k3, k4 = jax.random.split(key, 5)
        w_ih = jax.random.uniform(k1, (4 * hidden_size, in_dim),
                                  minval=-stdv, maxval=stdv, dtype=jnp.float32)
        w_hh = jax.random.uniform(k2, (4 * hidden_size, hidden_size),
                                  minval=-stdv, maxval=stdv, dtype=jnp.float32)
        b_ih = jax.random.uniform(k3, (4 * hidden_size,),
                                  minval=-stdv, maxval=stdv, dtype=jnp.float32)
        b_hh = jax.random.uniform(k4, (4 * hidden_size,),
                                  minval=-stdv, maxval=stdv, dtype=jnp.float32)
        params["lstm"].append((w_ih, w_hh, b_ih, b_hh))
    key, k1, k2 = jax.random.split(key, 3)
    w_fc = jax.random.uniform(k1, (num_classes, hidden_size),
                              minval=-stdv, maxval=stdv, dtype=jnp.float32)
    b_fc = jax.random.uniform(k2, (num_classes,),
                              minval=-stdv, maxval=stdv, dtype=jnp.float32)
    params["fc"] = (w_fc, b_fc)
    return params


def rnn_reference(x_btd, params, *, num_layers, hidden_size):
    """Pure-JAX reference mirroring torch.nn.LSTM(batch_first=True) + Linear."""
    B, T, _ = x_btd.shape
    H = hidden_size
    seq = x_btd
    for l in range(num_layers):
        w_ih, w_hh, b_ih, b_hh = params["lstm"][l]
        h = jnp.zeros((B, H), jnp.float32)
        c = jnp.zeros((B, H), jnp.float32)
        outs = []
        for t in range(T):
            gates = seq[:, t, :] @ w_ih.T + h @ w_hh.T + b_ih + b_hh
            i = jax.nn.sigmoid(gates[:, 0 * H:1 * H])
            f = jax.nn.sigmoid(gates[:, 1 * H:2 * H])
            g = jnp.tanh(gates[:, 2 * H:3 * H])
            o = jax.nn.sigmoid(gates[:, 3 * H:4 * H])
            c = f * c + i * g
            h = o * jnp.tanh(c)
            outs.append(h)
        seq = jnp.stack(outs, axis=1)
    w_fc, b_fc = params["fc"]
    return seq[:, -1, :] @ w_fc.T + b_fc


if __name__ == "__main__":
    # Small shapes implied by the module's forward: x is (batch, seq, input_size).
    batch, seq_len, input_size = 2, 8, 16
    hidden_size, num_layers, num_classes = 32, 2, 10

    key = jax.random.PRNGKey(0)
    key, kx = jax.random.split(key)
    x = jax.random.normal(kx, (batch, seq_len, input_size), dtype=jnp.float32)

    params = init_params(key, input_size, hidden_size, num_layers, num_classes)

    # Pack/transpose weights into kernel layout ONCE, outside the jitted call.
    packed = pack_params(params, input_size=input_size,
                         hidden_size=hidden_size, num_layers=num_layers,
                         num_classes=num_classes)

    fwd = jax.jit(functools.partial(
        rnn_forward, num_layers=num_layers, hidden_size=hidden_size,
        num_classes=num_classes))
    out = fwd(x, packed)
    out = jax.block_until_ready(out)

    ref = rnn_reference(x, params, num_layers=num_layers,
                        hidden_size=hidden_size)
    assert out.shape == (batch, num_classes)
    assert jnp.allclose(out, ref, atol=1e-4, rtol=1e-4), (
        f"max abs err {jnp.max(jnp.abs(out - ref))}")
    print("KERNEL_OK")
</pallas_src>

<mosaic_0001>
module attributes {stable_mosaic.version = 11 : i64} {
  func.func @kernel(%arg0: memref<16x16xf32, #tpu.memory_space<vmem>>, %arg1: memref<16x512xf32, #tpu.memory_space<vmem>>, %arg2: memref<128x512xf32, #tpu.memory_space<vmem>>, %arg3: memref<1x512xf32, #tpu.memory_space<vmem>>, %arg4: memref<128x512xf32, #tpu.memory_space<vmem>>, %arg5: memref<128x512xf32, #tpu.memory_space<vmem>>, %arg6: memref<1x512xf32, #tpu.memory_space<vmem>>, %arg7: memref<128x128xf32, #tpu.memory_space<vmem>>, %arg8: memref<1x128xf32, #tpu.memory_space<vmem>>, %arg9: memref<2x128xf32, #tpu.memory_space<vmem>>, %arg10: memref<16x128xf32, #tpu.memory_space<vmem>>) attributes {dimension_semantics = [], scalar_prefetch = 0 : i64, scratch_operands = 1 : i64, tpu.core_type = #tpu.core_type<tc>} {
    %c0 = arith.constant 0 : index
    %c0_0 = arith.constant 0 : index
    %0 = vector.load %arg0[%c0, %c0_0] : memref<16x16xf32, #tpu.memory_space<vmem>>, vector<16x16xf32>
    %c0_1 = arith.constant 0 : index
    %c0_2 = arith.constant 0 : index
    %1 = vector.load %arg1[%c0_1, %c0_2] : memref<16x512xf32, #tpu.memory_space<vmem>>, vector<16x512xf32>
    %cst = arith.constant dense<0.000000e+00> : vector<16x512xf32>
    %2 = tpu.matmul %0, %1, %cst {dimension_numbers = #tpu.dot_dimension_numbers<[1], [0], [0], [1], [0, 0, 1, 1], [], []>} : vector<16x16xf32>, vector<16x512xf32>, vector<16x512xf32> -> vector<16x512xf32>
    %c0_3 = arith.constant 0 : index
    %c0_4 = arith.constant 0 : index
    %3 = vector.load %arg3[%c0_3, %c0_4] : memref<1x512xf32, #tpu.memory_space<vmem>>, vector<1x512xf32>
    %4 = vector.broadcast %3 : vector<1x512xf32> to vector<16x512xf32>
    %5 = arith.addf %2, %4 : vector<16x512xf32>
    %c0_5 = arith.constant 0 : index
    %c0_6 = arith.constant 0 : index
    %6 = vector.load %arg2[%c0_5, %c0_6] : memref<128x512xf32, #tpu.memory_space<vmem>>, vector<128x512xf32>
    %cst_7 = arith.constant 0.000000e+00 : f32
    %7 = vector.broadcast %cst_7 : f32 to vector<2x128xf32>
    %cst_8 = arith.constant 0.000000e+00 : f32
    %8 = vector.broadcast %cst_8 : f32 to vector<2x128xf32>
    %9 = vector.extract_strided_slice %5 {offsets = [0, 0], sizes = [2, 512], strides = [1, 1]} : vector<16x512xf32> to vector<2x512xf32>
    %cst_9 = arith.constant dense<0.000000e+00> : vector<2x512xf32>
    %10 = tpu.matmul %7, %6, %cst_9 {dimension_numbers = #tpu.dot_dimension_numbers<[1], [0], [0], [1], [0, 0, 1, 1], [], []>} : vector<2x128xf32>, vector<128x512xf32>, vector<2x512xf32> -> vector<2x512xf32>
    %11 = arith.addf %9, %10 : vector<2x512xf32>
    %12 = vector.extract_strided_slice %11 {offsets = [0, 0], sizes = [2, 128], strides = [1, 1]} : vector<2x512xf32> to vector<2x128xf32>
    %13 = arith.negf %12 : vector<2x128xf32>
    %14 = math.exp %13 : vector<2x128xf32>
    %cst_10 = arith.constant 1.000000e+00 : f32
    %15 = vector.broadcast %cst_10 : f32 to vector<2x128xf32>
    %16 = arith.addf %15, %14 : vector<2x128xf32>
    %17 = arith.divf %15, %16 : vector<2x128xf32>
    %18 = vector.extract_strided_slice %11 {offsets = [0, 128], sizes = [2, 128], strides = [1, 1]} : vector<2x512xf32> to vector<2x128xf32>
    %19 = arith.negf %18 : vector<2x128xf32>
    %20 = math.exp %19 : vector<2x128xf32>
    %cst_11 = arith.constant 1.000000e+00 : f32
    %21 = vector.broadcast %cst_11 : f32 to vector<2x128xf32>
    %22 = arith.addf %21, %20 : vector<2x128xf32>
    %23 = arith.divf %21, %22 : vector<2x128xf32>
    %24 = vector.extract_strided_slice %11 {offsets = [0, 256], sizes = [2, 128], strides = [1, 1]} : vector<2x512xf32> to vector<2x128xf32>
    %25 = math.tanh %24 : vector<2x128xf32>
    %26 = vector.extract_strided_slice %11 {offsets = [0, 384], sizes = [2, 128], strides = [1, 1]} : vector<2x512xf32> to vector<2x128xf32>
    %27 = arith.negf %26 : vector<2x128xf32>
    %28 = math.exp %27 : vector<2x128xf32>
    %cst_12 = arith.constant 1.000000e+00 : f32
    %29 = vector.broadcast %cst_12 : f32 to vector<2x128xf32>
    %30 = arith.addf %29, %28 : vector<2x128xf32>
    %31 = arith.divf %29, %30 : vector<2x128xf32>
    %32 = arith.mulf %23, %8 : vector<2x128xf32>
    %33 = arith.mulf %17, %25 : vector<2x128xf32>
    %34 = arith.addf %32, %33 : vector<2x128xf32>
    %35 = math.tanh %34 : vector<2x128xf32>
    %36 = arith.mulf %31, %35 : vector<2x128xf32>
    %c0_13 = arith.constant 0 : index
    %c0_14 = arith.constant 0 : index
    %37 = vector.load %arg10[%c0_13, %c0_14] : memref<16x128xf32, #tpu.memory_space<vmem>>, vector<2x128xf32>
    tpu.vector_store %arg10[%c0_13, %c0_14], %36 {strides = array<i32>} : memref<16x128xf32, #tpu.memory_space<vmem>>, vector<2x128xf32>,
    %38 = vector.extract_strided_slice %5 {offsets = [2, 0], sizes = [2, 512], strides = [1, 1]} : vector<16x512xf32> to vector<2x512xf32>
    %cst_15 = arith.constant dense<0.000000e+00> : vector<2x512xf32>
    %39 = tpu.matmul %36, %6, %cst_15 {dimension_numbers = #tpu.dot_dimension_numbers<[1], [0], [0], [1], [0, 0, 1, 1], [], []>} : vector<2x128xf32>, vector<128x512xf32>, vector<2x512xf32> -> vector<2x512xf32>
    %40 = arith.addf %38, %39 : vector<2x512xf32>
    %41 = vector.extract_strided_slice %40 {offsets = [0, 0], sizes = [2, 128], strides = [1, 1]} : vector<2x512xf32> to vector<2x128xf32>
    %42 = arith.negf %41 : vector<2x128xf32>
    %43 = math.exp %42 : vector<2x128xf32>
    %cst_16 = arith.constant 1.000000e+00 : f32
    %44 = vector.broadcast %cst_16 : f32 to vector<2x128xf32>
    %45 = arith.addf %44, %43 : vector<2x128xf32>
    %46 = arith.divf %44, %45 : vector<2x128xf32>
    %47 = vector.extract_strided_slice %40 {offsets = [0, 128], sizes = [2, 128], strides = [1, 1]} : vector<2x512xf32> to vector<2x128xf32>
    %48 = arith.negf %47 : vector<2x128xf32>
    %49 = math.exp %48 : vector<2x128xf32>
    %cst_17 = arith.constant 1.000000e+00 : f32
    %50 = vector.broadcast %cst_17 : f32 to vector<2x128xf32>
    %51 = arith.addf %50, %49 : vector<2x128xf32>
    %52 = arith.divf %50, %51 : vector<2x128xf32>
    %53 = vector.extract_strided_slice %40 {offsets = [0, 256], sizes = [2, 128], strides = [1, 1]} : vector<2x512xf32> to vector<2x128xf32>
    %54 = math.tanh %53 : vector<2x128xf32>
    %55 = vector.extract_strided_slice %40 {offsets = [0, 384], sizes = [2, 128], strides = [1, 1]} : vector<2x512xf32> to vector<2x128xf32>
    %56 = arith.negf %55 : vector<2x128xf32>
    %57 = math.exp %56 : vector<2x128xf32>
    %cst_18 = arith.constant 1.000000e+00 : f32
    %58 = vector.broadcast %cst_18 : f32 to vector<2x128xf32>
    %59 = arith.addf %58, %57 : vector<2x128xf32>
    %60 = arith.divf %58, %59 : vector<2x128xf32>
    %61 = arith.mulf %52, %34 : vector<2x128xf32>
    %62 = arith.mulf %46, %54 : vector<2x128xf32>
    %63 = arith.addf %61, %62 : vector<2x128xf32>
    %64 = math.tanh %63 : vector<2x128xf32>
    %65 = arith.mulf %60, %64 : vector<2x128xf32>
    %c2 = arith.constant 2 : index
    %c0_19 = arith.constant 0 : index
    %66 = vector.load %arg10[%c2, %c0_19] : memref<16x128xf32, #tpu.memory_space<vmem>>, vector<2x128xf32>
    tpu.vector_store %arg10[%c2, %c0_19], %65 {strides = array<i32>} : memref<16x128xf32, #tpu.memory_space<vmem>>, vector<2x128xf32>,
    %67 = vector.extract_strided_slice %5 {offsets = [4, 0], sizes = [2, 512], strides = [1, 1]} : vector<16x512xf32> to vector<2x512xf32>
    %cst_20 = arith.constant dense<0.000000e+00> : vector<2x512xf32>
    %68 = tpu.matmul %65, %6, %cst_20 {dimension_numbers = #tpu.dot_dimension_numbers<[1], [0], [0], [1], [0, 0, 1, 1], [], []>} : vector<2x128xf32>, vector<128x512xf32>, vector<2x512xf32> -> vector<2x512xf32>
    %69 = arith.addf %67, %68 : vector<2x512xf32>
    %70 = vector.extract_strided_slice %69 {offsets = [0, 0], sizes = [2, 128], strides = [1, 1]} : vector<2x512xf32> to vector<2x128xf32>
    %71 = arith.negf %70 : vector<2x128xf32>
    %72 = math.exp %71 : vector<2x128xf32>
    %cst_21 = arith.constant 1.000000e+00 : f32
    %73 = vector.broadcast %cst_21 : f32 to vector<2x128xf32>
    %74 = arith.addf %73, %72 : vector<2x128xf32>
    %75 = arith.divf %73, %74 : vector<2x128xf32>
    %76 = vector.extract_strided_slice %69 {offsets = [0, 128], sizes = [2, 128], strides = [1, 1]} : vector<2x512xf32> to vector<2x128xf32>
    %77 = arith.negf %76 : vector<2x128xf32>
    %78 = math.exp %77 : vector<2x128xf32>
    %cst_22 = arith.constant 1.000000e+00 : f32
    %79 = vector.broadcast %cst_22 : f32 to vector<2x128xf32>
    %80 = arith.addf %79, %78 : vector<2x128xf32>
    %81 = arith.divf %79, %80 : vector<2x128xf32>
    %82 = vector.extract_strided_slice %69 {offsets = [0, 256], sizes = [2, 128], strides = [1, 1]} : vector<2x512xf32> to vector<2x128xf32>
    %83 = math.tanh %82 : vector<2x128xf32>
    %84 = vector.extract_strided_slice %69 {offsets = [0, 384], sizes = [2, 128], strides = [1, 1]} : vector<2x512xf32> to vector<2x128xf32>
    %85 = arith.negf %84 : vector<2x128xf32>
    %86 = math.exp %85 : vector<2x128xf32>
    %cst_23 = arith.constant 1.000000e+00 : f32
    %87 = vector.broadcast %cst_23 : f32 to vector<2x128xf32>
    %88 = arith.addf %87, %86 : vector<2x128xf32>
    %89 = arith.divf %87, %88 : vector<2x128xf32>
    %90 = arith.mulf %81, %63 : vector<2x128xf32>
    %91 = arith.mulf %75, %83 : vector<2x128xf32>
    %92 = arith.addf %90, %91 : vector<2x128xf32>
    %93 = math.tanh %92 : vector<2x128xf32>
    %94 = arith.mulf %89, %93 : vector<2x128xf32>
    %c4 = arith.constant 4 : index
    %c0_24 = arith.constant 0 : index
    %95 = vector.load %arg10[%c4, %c0_24] : memref<16x128xf32, #tpu.memory_space<vmem>>, vector<2x128xf32>
    tpu.vector_store %arg10[%c4, %c0_24], %94 {strides = array<i32>} : memref<16x128xf32, #tpu.memory_space<vmem>>, vector<2x128xf32>,
    %96 = vector.extract_strided_slice %5 {offsets = [6, 0], sizes = [2, 512], strides = [1, 1]} : vector<16x512xf32> to vector<2x512xf32>
    %cst_25 = arith.constant dense<0.000000e+00> : vector<2x512xf32>
    %97 = tpu.matmul %94, %6, %cst_25 {dimension_numbers = #tpu.dot_dimension_numbers<[1], [0], [0], [1], [0, 0, 1, 1], [], []>} : vector<2x128xf32>, vector<128x512xf32>, vector<2x512xf32> -> vector<2x512xf32>
    %98 = arith.addf %96, %97 : vector<2x512xf32>
    %99 = vector.extract_strided_slice %98 {offsets = [0, 0], sizes = [2, 128], strides = [1, 1]} : vector<2x512xf32> to vector<2x128xf32>
    %100 = arith.negf %99 : vector<2x128xf32>
    %101 = math.exp %100 : vector<2x128xf32>
    %cst_26 = arith.constant 1.000000e+00 : f32
    %102 = vector.broadcast %cst_26 : f32 to vector<2x128xf32>
    %103 = arith.addf %102, %101 : vector<2x128xf32>
    %104 = arith.divf %102, %103 : vector<2x128xf32>
    %105 = vector.extract_strided_slice %98 {offsets = [0, 128], sizes = [2, 128], strides = [1, 1]} : vector<2x512xf32> to vector<2x128xf32>
    %106 = arith.negf %105 : vector<2x128xf32>
    %107 = math.exp %106 : vector<2x128xf32>
    %cst_27 = arith.constant 1.000000e+00 : f32
    %108 = vector.broadcast %cst_27 : f32 to vector<2x128xf32>
    %109 = arith.addf %108, %107 : vector<2x128xf32>
    %110 = arith.divf %108, %109 : vector<2x128xf32>
    %111 = vector.extract_strided_slice %98 {offsets = [0, 256], sizes = [2, 128], strides = [1, 1]} : vector<2x512xf32> to vector<2x128xf32>
    %112 = math.tanh %111 : vector<2x128xf32>
    %113 = vector.extract_strided_slice %98 {offsets = [0, 384], sizes = [2, 128], strides = [1, 1]} : vector<2x512xf32> to vector<2x128xf32>
    %114 = arith.negf %113 : vector<2x128xf32>
    %115 = math.exp %114 : vector<2x128xf32>
    %cst_28 = arith.constant 1.000000e+00 : f32
    %116 = vector.broadcast %cst_28 : f32 to vector<2x128xf32>
    %117 = arith.addf %116, %115 : vector<2x128xf32>
    %118 = arith.divf %116, %117 : vector<2x128xf32>
    %119 = arith.mulf %110, %92 : vector<2x128xf32>
    %120 = arith.mulf %104, %112 : vector<2x128xf32>
    %121 = arith.addf %119, %120 : vector<2x128xf32>
    %122 = math.tanh %121 : vector<2x128xf32>
    %123 = arith.mulf %118, %122 : vector<2x128xf32>
    %c6 = arith.constant 6 : index
    %c0_29 = arith.constant 0 : index
    %124 = vector.load %arg10[%c6, %c0_29] : memref<16x128xf32, #tpu.memory_space<vmem>>, vector<2x128xf32>
    tpu.vector_store %arg10[%c6, %c0_29], %123 {strides = array<i32>} : memref<16x128xf32, #tpu.memory_space<vmem>>, vector<2x128xf32>,
    %125 = vector.extract_strided_slice %5 {offsets = [8, 0], sizes = [2, 512], strides = [1, 1]} : vector<16x512xf32> to vector<2x512xf32>
    %cst_30 = arith.constant dense<0.000000e+00> : vector<2x512xf32>
    %126 = tpu.matmul %123, %6, %cst_30 {dimension_numbers = #tpu.dot_dimension_numbers<[1], [0], [0], [1], [0, 0, 1, 1], [], []>} : vector<2x128xf32>, vector<128x512xf32>, vector<2x512xf32> -> vector<2x512xf32>
    %127 = arith.addf %125, %126 : vector<2x512xf32>
    %128 = vector.extract_strided_slice %127 {offsets = [0, 0], sizes = [2, 128], strides = [1, 1]} : vector<2x512xf32> to vector<2x128xf32>
    %129 = arith.negf %128 : vector<2x128xf32>
    %130 = math.exp %129 : vector<2x128xf32>
    %cst_31 = arith.constant 1.000000e+00 : f32
    %131 = vector.broadcast %cst_31 : f32 to vector<2x128xf32>
    %132 = arith.addf %131, %130 : vector<2x128xf32>
    %133 = arith.divf %131, %132 : vector<2x128xf32>
    %134 = vector.extract_strided_slice %127 {offsets = [0, 128], sizes = [2, 128], strides = [1, 1]} : vector<2x512xf32> to vector<2x128xf32>
    %135 = arith.negf %134 : vector<2x128xf32>
    %136 = math.exp %135 : vector<2x128xf32>
    %cst_32 = arith.constant 1.000000e+00 : f32
    %137 = vector.broadcast %cst_32 : f32 to vector<2x128xf32>
    %138 = arith.addf %137, %136 : vector<2x128xf32>
    %139 = arith.divf %137, %138 : vector<2x128xf32>
    %140 = vector.extract_strided_slice %127 {offsets = [0, 256], sizes = [2, 128], strides = [1, 1]} : vector<2x512xf32> to vector<2x128xf32>
    %141 = math.tanh %140 : vector<2x128xf32>
    %142 = vector.extract_strided_slice %127 {offsets = [0, 384], sizes = [2, 128], strides = [1, 1]} : vector<2x512xf32> to vector<2x128xf32>
    %143 = arith.negf %142 : vector<2x128xf32>
    %144 = math.exp %143 : vector<2x128xf32>
    %cst_33 = arith.constant 1.000000e+00 : f32
    %145 = vector.broadcast %cst_33 : f32 to vector<2x128xf32>
    %146 = arith.addf %145, %144 : vector<2x128xf32>
    %147 = arith.divf %145, %146 : vector<2x128xf32>
    %148 = arith.mulf %139, %121 : vector<2x128xf32>
    %149 = arith.mulf %133, %141 : vector<2x128xf32>
    %150 = arith.addf %148, %149 : vector<2x128xf32>
    %151 = math.tanh %150 : vector<2x128xf32>
    %152 = arith.mulf %147, %151 : vector<2x128xf32>
    %c8 = arith.constant 8 : index
    %c0_34 = arith.constant 0 : index
    %153 = vector.load %arg10[%c8, %c0_34] : memref<16x128xf32, #tpu.memory_space<vmem>>, vector<2x128xf32>
    tpu.vector_store %arg10[%c8, %c0_34], %152 {strides = array<i32>} : memref<16x128xf32, #tpu.memory_space<vmem>>, vector<2x128xf32>,
    %154 = vector.extract_strided_slice %5 {offsets = [10, 0], sizes = [2, 512], strides = [1, 1]} : vector<16x512xf32> to vector<2x512xf32>
    %cst_35 = arith.constant dense<0.000000e+00> : vector<2x512xf32>
    %155 = tpu.matmul %152, %6, %cst_35 {dimension_numbers = #tpu.dot_dimension_numbers<[1], [0], [0], [1], [0, 0, 1, 1], [], []>} : vector<2x128xf32>, vector<128x512xf32>, vector<2x512xf32> -> vector<2x512xf32>
    %156 = arith.addf %154, %155 : vector<2x512xf32>
    %157 = vector.extract_strided_slice %156 {offsets = [0, 0], sizes = [2, 128], strides = [1, 1]} : vector<2x512xf32> to vector<2x128xf32>
    %158 = arith.negf %157 : vector<2x128xf32>
    %159 = math.exp %158 : vector<2x128xf32>
    %cst_36 = arith.constant 1.000000e+00 : f32
    %160 = vector.broadcast %cst_36 : f32 to vector<2x128xf32>
    %161 = arith.addf %160, %159 : vector<2x128xf32>
    %162 = arith.divf %160, %161 : vector<2x128xf32>
    %163 = vector.extract_strided_slice %156 {offsets = [0, 128], sizes = [2, 128], strides = [1, 1]} : vector<2x512xf32> to vector<2x128xf32>
    %164 = arith.negf %163 : vector<2x128xf32>
    %165 = math.exp %164 : vector<2x128xf32>
    %cst_37 = arith.constant 1.000000e+00 : f32
    %166 = vector.broadcast %cst_37 : f32 to vector<2x128xf32>
    %167 = arith.addf %166, %165 : vector<2x128xf32>
    %168 = arith.divf %166, %167 : vector<2x128xf32>
    %169 = vector.extract_strided_slice %156 {offsets = [0, 256], sizes = [2, 128], strides = [1, 1]} : vector<2x512xf32> to vector<2x128xf32>
    %170 = math.tanh %169 : vector<2x128xf32>
    %171 = vector.extract_strided_slice %156 {offsets = [0, 384], sizes = [2, 128], strides = [1, 1]} : vector<2x512xf32> to vector<2x128xf32>
    %172 = arith.negf %171 : vector<2x128xf32>
    %173 = math.exp %172 : vector<2x128xf32>
    %cst_38 = arith.constant 1.000000e+00 : f32
    %174 = vector.broadcast %cst_38 : f32 to vector<2x128xf32>
    %175 = arith.addf %174, %173 : vector<2x128xf32>
    %176 = arith.divf %174, %175 : vector<2x128xf32>
    %177 = arith.mulf %168, %150 : vector<2x128xf32>
    %178 = arith.mulf %162, %170 : vector<2x128xf32>
    %179 = arith.addf %177, %178 : vector<2x128xf32>
    %180 = math.tanh %179 : vector<2x128xf32>
    %181 = arith.mulf %176, %180 : vector<2x128xf32>
    %c10 = arith.constant 10 : index
    %c0_39 = arith.constant 0 : index
    %182 = vector.load %arg10[%c10, %c0_39] : memref<16x128xf32, #tpu.memory_space<vmem>>, vector<2x128xf32>
    tpu.vector_store %arg10[%c10, %c0_39], %181 {strides = array<i32>} : memref<16x128xf32, #tpu.memory_space<vmem>>, vector<2x128xf32>,
    %183 = vector.extract_strided_slice %5 {offsets = [12, 0], sizes = [2, 512], strides = [1, 1]} : vector<16x512xf32> to vector<2x512xf32>
    %cst_40 = arith.constant dense<0.000000e+00> : vector<2x512xf32>
    %184 = tpu.matmul %181, %6, %cst_40 {dimension_numbers = #tpu.dot_dimension_numbers<[1], [0], [0], [1], [0, 0, 1, 1], [], []>} : vector<2x128xf32>, vector<128x512xf32>, vector<2x512xf32> -> vector<2x512xf32>
    %185 = arith.addf %183, %184 : vector<2x512xf32>
    %186 = vector.extract_strided_slice %185 {offsets = [0, 0], sizes = [2, 128], strides = [1, 1]} : vector<2x512xf32> to vector<2x128xf32>
    %187 = arith.negf %186 : vector<2x128xf32>
    %188 = math.exp %187 : vector<2x128xf32>
    %cst_41 = arith.constant 1.000000e+00 : f32
    %189 = vector.broadcast %cst_41 : f32 to vector<2x128xf32>
    %190 = arith.addf %189, %188 : vector<2x128xf32>
    %191 = arith.divf %189, %190 : vector<2x128xf32>
    %192 = vector.extract_strided_slice %185 {offsets = [0, 128], sizes = [2, 128], strides = [1, 1]} : vector<2x512xf32> to vector<2x128xf32>
    %193 = arith.negf %192 : vector<2x128xf32>
    %194 = math.exp %193 : vector<2x128xf32>
    %cst_42 = arith.constant 1.000000e+00 : f32
    %195 = vector.broadcast %cst_42 : f32 to vector<2x128xf32>
    %196 = arith.addf %195, %194 : vector<2x128xf32>
    %197 = arith.divf %195, %196 : vector<2x128xf32>
    %198 = vector.extract_strided_slice %185 {offsets = [0, 256], sizes = [2, 128], strides = [1, 1]} : vector<2x512xf32> to vector<2x128xf32>
    %199 = math.tanh %198 : vector<2x128xf32>
    %200 = vector.extract_strided_slice %185 {offsets = [0, 384], sizes = [2, 128], strides = [1, 1]} : vector<2x512xf32> to vector<2x128xf32>
    %201 = arith.negf %200 : vector<2x128xf32>
    %202 = math.exp %201 : vector<2x128xf32>
    %cst_43 = arith.constant 1.000000e+00 : f32
    %203 = vector.broadcast %cst_43 : f32 to vector<2x128xf32>
    %204 = arith.addf %203, %202 : vector<2x128xf32>
    %205 = arith.divf %203, %204 : vector<2x128xf32>
    %206 = arith.mulf %197, %179 : vector<2x128xf32>
    %207 = arith.mulf %191, %199 : vector<2x128xf32>
    %208 = arith.addf %206, %207 : vector<2x128xf32>
    %209 = math.tanh %208 : vector<2x128xf32>
    %210 = arith.mulf %205, %209 : vector<2x128xf32>
    %c12 = arith.constant 12 : index
    %c0_44 = arith.constant 0 : index
    %211 = vector.load %arg10[%c12, %c0_44] : memref<16x128xf32, #tpu.memory_space<vmem>>, vector<2x128xf32>
    tpu.vector_store %arg10[%c12, %c0_44], %210 {strides = array<i32>} : memref<16x128xf32, #tpu.memory_space<vmem>>, vector<2x128xf32>,
    %212 = vector.extract_strided_slice %5 {offsets = [14, 0], sizes = [2, 512], strides = [1, 1]} : vector<16x512xf32> to vector<2x512xf32>
    %cst_45 = arith.constant dense<0.000000e+00> : vector<2x512xf32>
    %213 = tpu.matmul %210, %6, %cst_45 {dimension_numbers = #tpu.dot_dimension_numbers<[1], [0], [0], [1], [0, 0, 1, 1], [], []>} : vector<2x128xf32>, vector<128x512xf32>, vector<2x512xf32> -> vector<2x512xf32>
    %214 = arith.addf %212, %213 : vector<2x512xf32>
    %215 = vector.extract_strided_slice %214 {offsets = [0, 0], sizes = [2, 128], strides = [1, 1]} : vector<2x512xf32> to vector<2x128xf32>
    %216 = arith.negf %215 : vector<2x128xf32>
    %217 = math.exp %216 : vector<2x128xf32>
    %cst_46 = arith.constant 1.000000e+00 : f32
    %218 = vector.broadcast %cst_46 : f32 to vector<2x128xf32>
    %219 = arith.addf %218, %217 : vector<2x128xf32>
    %220 = arith.divf %218, %219 : vector<2x128xf32>
    %221 = vector.extract_strided_slice %214 {offsets = [0, 128], sizes = [2, 128], strides = [1, 1]} : vector<2x512xf32> to vector<2x128xf32>
    %222 = arith.negf %221 : vector<2x128xf32>
    %223 = math.exp %222 : vector<2x128xf32>
    %cst_47 = arith.constant 1.000000e+00 : f32
    %224 = vector.broadcast %cst_47 : f32 to vector<2x128xf32>
    %225 = arith.addf %224, %223 : vector<2x128xf32>
    %226 = arith.divf %224, %225 : vector<2x128xf32>
    %227 = vector.extract_strided_slice %214 {offsets = [0, 256], sizes = [2, 128], strides = [1, 1]} : vector<2x512xf32> to vector<2x128xf32>
    %228 = math.tanh %227 : vector<2x128xf32>
    %229 = vector.extract_strided_slice %214 {offsets = [0, 384], sizes = [2, 128], strides = [1, 1]} : vector<2x512xf32> to vector<2x128xf32>
    %230 = arith.negf %229 : vector<2x128xf32>
    %231 = math.exp %230 : vector<2x128xf32>
    %cst_48 = arith.constant 1.000000e+00 : f32
    %232 = vector.broadcast %cst_48 : f32 to vector<2x128xf32>
    %233 = arith.addf %232, %231 : vector<2x128xf32>
    %234 = arith.divf %232, %233 : vector<2x128xf32>
    %235 = arith.mulf %226, %208 : vector<2x128xf32>
    %236 = arith.mulf %220, %228 : vector<2x128xf32>
    %237 = arith.addf %235, %236 : vector<2x128xf32>
    %238 = math.tanh %237 : vector<2x128xf32>
    %239 = arith.mulf %234, %238 : vector<2x128xf32>
    %c14 = arith.constant 14 : index
    %c0_49 = arith.constant 0 : index
    %240 = vector.load %arg10[%c14, %c0_49] : memref<16x128xf32, #tpu.memory_space<vmem>>, vector<2x128xf32>
    tpu.vector_store %arg10[%c14, %c0_49], %239 {strides = array<i32>} : memref<16x128xf32, #tpu.memory_space<vmem>>, vector<2x128xf32>,
    %c0_50 = arith.constant 0 : index
    %c0_51 = arith.constant 0 : index
    %241 = vector.load %arg10[%c0_50, %c0_51] : memref<16x128xf32, #tpu.memory_space<vmem>>, vector<16x128xf32>
    %c0_52 = arith.constant 0 : index
    %c0_53 = arith.constant 0 : index
    %242 = vector.load %arg4[%c0_52, %c0_53] : memref<128x512xf32, #tpu.memory_space<vmem>>, vector<128x512xf32>
    %cst_54 = arith.constant dense<0.000000e+00> : vector<16x512xf32>
    %243 = tpu.matmul %241, %242, %cst_54 {dimension_numbers = #tpu.dot_dimension_numbers<[1], [0], [0], [1], [0, 0, 1, 1], [], []>} : vector<16x128xf32>, vector<128x512xf32>, vector<16x512xf32> -> vector<16x512xf32>
    %c0_55 = arith.constant 0 : index
    %c0_56 = arith.constant 0 : index
    %244 = vector.load %arg6[%c0_55, %c0_56] : memref<1x512xf32, #tpu.memory_space<vmem>>, vector<1x512xf32>
    %245 = vector.broadcast %244 : vector<1x512xf32> to vector<16x512xf32>
    %246 = arith.addf %243, %245 : vector<16x512xf32>
    %c0_57 = arith.constant 0 : index
    %c0_58 = arith.constant 0 : index
    %247 = vector.load %arg5[%c0_57, %c0_58] : memref<128x512xf32, #tpu.memory_space<vmem>>, vector<128x512xf32>
    %cst_59 = arith.constant 0.000000e+00 : f32
    %248 = vector.broadcast %cst_59 : f32 to vector<2x128xf32>
    %cst_60 = arith.constant 0.000000e+00 : f32
    %249 = vector.broadcast %cst_60 : f32 to vector<2x128xf32>
    %250 = vector.extract_strided_slice %246 {offsets = [0, 0], sizes = [2, 512], strides = [1, 1]} : vector<16x512xf32> to vector<2x512xf32>
    %cst_61 = arith.constant dense<0.000000e+00> : vector<2x512xf32>
    %251 = tpu.matmul %248, %247, %cst_61 {dimension_numbers = #tpu.dot_dimension_numbers<[1], [0], [0], [1], [0, 0, 1, 1], [], []>} : vector<2x128xf32>, vector<128x512xf32>, vector<2x512xf32> -> vector<2x512xf32>
    %252 = arith.addf %250, %251 : vector<2x512xf32>
    %253 = vector.extract_strided_slice %252 {offsets = [0, 0], sizes = [2, 128], strides = [1, 1]} : vector<2x512xf32> to vector<2x128xf32>
    %254 = arith.negf %253 : vector<2x128xf32>
    %255 = math.exp %254 : vector<2x128xf32>
    %cst_62 = arith.constant 1.000000e+00 : f32
    %256 = vector.broadcast %cst_62 : f32 to vector<2x128xf32>
    %257 = arith.addf %256, %255 : vector<2x128xf32>
    %258 = arith.divf %256, %257 : vector<2x128xf32>
    %259 = vector.extract_strided_slice %252 {offsets = [0, 128], sizes = [2, 128], strides = [1, 1]} : vector<2x512xf32> to vector<2x128xf32>
    %260 = arith.negf %259 : vector<2x128xf32>
    %261 = math.exp %260 : vector<2x128xf32>
    %cst_63 = arith.constant 1.000000e+00 : f32
    %262 = vector.broadcast %cst_63 : f32 to vector<2x128xf32>
    %263 = arith.addf %262, %261 : vector<2x128xf32>
    %264 = arith.divf %262, %263 : vector<2x128xf32>
    %265 = vector.extract_strided_slice %252 {offsets = [0, 256], sizes = [2, 128], strides = [1, 1]} : vector<2x512xf32> to vector<2x128xf32>
    %266 = math.tanh %265 : vector<2x128xf32>
    %267 = vector.extract_strided_slice %252 {offsets = [0, 384], sizes = [2, 128], strides = [1, 1]} : vector<2x512xf32> to vector<2x128xf32>
    %268 = arith.negf %267 : vector<2x128xf32>
    %269 = math.exp %268 : vector<2x128xf32>
    %cst_64 = arith.constant 1.000000e+00 : f32
    %270 = vector.broadcast %cst_64 : f32 to vector<2x128xf32>
    %271 = arith.addf %270, %269 : vector<2x128xf32>
    %272 = arith.divf %270, %271 : vector<2x128xf32>
    %273 = arith.mulf %264, %249 : vector<2x128xf32>
    %274 = arith.mulf %258, %266 : vector<2x128xf32>
    %275 = arith.addf %273, %274 : vector<2x128xf32>
    %276 = math.tanh %275 : vector<2x128xf32>
    %277 = arith.mulf %272, %276 : vector<2x128xf32>
    %278 = vector.extract_strided_slice %246 {offsets = [2, 0], sizes = [2, 512], strides = [1, 1]} : vector<16x512xf32> to vector<2x512xf32>
    %cst_65 = arith.constant dense<0.000000e+00> : vector<2x512xf32>
    %279 = tpu.matmul %277, %247, %cst_65 {dimension_numbers = #tpu.dot_dimension_numbers<[1], [0], [0], [1], [0, 0, 1, 1], [], []>} : vector<2x128xf32>, vector<128x512xf32>, vector<2x512xf32> -> vector<2x512xf32>
    %280 = arith.addf %278, %279 : vector<2x512xf32>
    %281 = vector.extract_strided_slice %280 {offsets = [0, 0], sizes = [2, 128], strides = [1, 1]} : vector<2x512xf32> to vector<2x128xf32>
    %282 = arith.negf %281 : vector<2x128xf32>
    %283 = math.exp %282 : vector<2x128xf32>
    %cst_66 = arith.constant 1.000000e+00 : f32
    %284 = vector.broadcast %cst_66 : f32 to vector<2x128xf32>
    %285 = arith.addf %284, %283 : vector<2x128xf32>
    %286 = arith.divf %284, %285 : vector<2x128xf32>
    %287 = vector.extract_strided_slice %280 {offsets = [0, 128], sizes = [2, 128], strides = [1, 1]} : vector<2x512xf32> to vector<2x128xf32>
    %288 = arith.negf %287 : vector<2x128xf32>
    %289 = math.exp %288 : vector<2x128xf32>
    %cst_67 = arith.constant 1.000000e+00 : f32
    %290 = vector.broadcast %cst_67 : f32 to vector<2x128xf32>
    %291 = arith.addf %290, %289 : vector<2x128xf32>
    %292 = arith.divf %290, %291 : vector<2x128xf32>
    %293 = vector.extract_strided_slice %280 {offsets = [0, 256], sizes = [2, 128], strides = [1, 1]} : vector<2x512xf32> to vector<2x128xf32>
    %294 = math.tanh %293 : vector<2x128xf32>
    %295 = vector.extract_strided_slice %280 {offsets = [0, 384], sizes = [2, 128], strides = [1, 1]} : vector<2x512xf32> to vector<2x128xf32>
    %296 = arith.negf %295 : vector<2x128xf32>
    %297 = math.exp %296 : vector<2x128xf32>
    %cst_68 = arith.constant 1.000000e+00 : f32
    %298 = vector.broadcast %cst_68 : f32 to vector<2x128xf32>
    %299 = arith.addf %298, %297 : vector<2x128xf32>
    %300 = arith.divf %298, %299 : vector<2x128xf32>
    %301 = arith.mulf %292, %275 : vector<2x128xf32>
    %302 = arith.mulf %286, %294 : vector<2x128xf32>
    %303 = arith.addf %301, %302 : vector<2x128xf32>
    %304 = math.tanh %303 : vector<2x128xf32>
    %305 = arith.mulf %300, %304 : vector<2x128xf32>
    %306 = vector.extract_strided_slice %246 {offsets = [4, 0], sizes = [2, 512], strides = [1, 1]} : vector<16x512xf32> to vector<2x512xf32>
    %cst_69 = arith.constant dense<0.000000e+00> : vector<2x512xf32>
    %307 = tpu.matmul %305, %247, %cst_69 {dimension_numbers = #tpu.dot_dimension_numbers<[1], [0], [0], [1], [0, 0, 1, 1], [], []>} : vector<2x128xf32>, vector<128x512xf32>, vector<2x512xf32> -> vector<2x512xf32>
    %308 = arith.addf %306, %307 : vector<2x512xf32>
    %309 = vector.extract_strided_slice %308 {offsets = [0, 0], sizes = [2, 128], strides = [1, 1]} : vector<2x512xf32> to vector<2x128xf32>
    %310 = arith.negf %309 : vector<2x128xf32>
    %311 = math.exp %310 : vector<2x128xf32>
    %cst_70 = arith.constant 1.000000e+00 : f32
    %312 = vector.broadcast %cst_70 : f32 to vector<2x128xf32>
    %313 = arith.addf %312, %311 : vector<2x128xf32>
    %314 = arith.divf %312, %313 : vector<2x128xf32>
    %315 = vector.extract_strided_slice %308 {offsets = [0, 128], sizes = [2, 128], strides = [1, 1]} : vector<2x512xf32> to vector<2x128xf32>
    %316 = arith.negf %315 : vector<2x128xf32>
    %317 = math.exp %316 : vector<2x128xf32>
    %cst_71 = arith.constant 1.000000e+00 : f32
    %318 = vector.broadcast %cst_71 : f32 to vector<2x128xf32>
    %319 = arith.addf %318, %317 : vector<2x128xf32>
    %320 = arith.divf %318, %319 : vector<2x128xf32>
    %321 = vector.extract_strided_slice %308 {offsets = [0, 256], sizes = [2, 128], strides = [1, 1]} : vector<2x512xf32> to vector<2x128xf32>
    %322 = math.tanh %321 : vector<2x128xf32>
    %323 = vector.extract_strided_slice %308 {offsets = [0, 384], sizes = [2, 128], strides = [1, 1]} : vector<2x512xf32> to vector<2x128xf32>
    %324 = arith.negf %323 : vector<2x128xf32>
    %325 = math.exp %324 : vector<2x128xf32>
    %cst_72 = arith.constant 1.000000e+00 : f32
    %326 = vector.broadcast %cst_72 : f32 to vector<2x128xf32>
    %327 = arith.addf %326, %325 : vector<2x128xf32>
    %328 = arith.divf %326, %327 : vector<2x128xf32>
    %329 = arith.mulf %320, %303 : vector<2x128xf32>
    %330 = arith.mulf %314, %322 : vector<2x128xf32>
    %331 = arith.addf %329, %330 : vector<2x128xf32>
    %332 = math.tanh %331 : vector<2x128xf32>
    %333 = arith.mulf %328, %332 : vector<2x128xf32>
    %334 = vector.extract_strided_slice %246 {offsets = [6, 0], sizes = [2, 512], strides = [1, 1]} : vector<16x512xf32> to vector<2x512xf32>
    %cst_73 = arith.constant dense<0.000000e+00> : vector<2x512xf32>
    %335 = tpu.matmul %333, %247, %cst_73 {dimension_numbers = #tpu.dot_dimension_numbers<[1], [0], [0], [1], [0, 0, 1, 1], [], []>} : vector<2x128xf32>, vector<128x512xf32>, vector<2x512xf32> -> vector<2x512xf32>
    %336 = arith.addf %334, %335 : vector<2x512xf32>
    %337 = vector.extract_strided_slice %336 {offsets = [0, 0], sizes = [2, 128], strides = [1, 1]} : vector<2x512xf32> to vector<2x128xf32>
    %338 = arith.negf %337 : vector<2x128xf32>
    %339 = math.exp %338 : vector<2x128xf32>
    %cst_74 = arith.constant 1.000000e+00 : f32
    %340 = vector.broadcast %cst_74 : f32 to vector<2x128xf32>
    %341 = arith.addf %340, %339 : vector<2x128xf32>
    %342 = arith.divf %340, %341 : vector<2x128xf32>
    %343 = vector.extract_strided_slice %336 {offsets = [0, 128], sizes = [2, 128], strides = [1, 1]} : vector<2x512xf32> to vector<2x128xf32>
    %344 = arith.negf %343 : vector<2x128xf32>
    %345 = math.exp %344 : vector<2x128xf32>
    %cst_75 = arith.constant 1.000000e+00 : f32
    %346 = vector.broadcast %cst_75 : f32 to vector<2x128xf32>
    %347 = arith.addf %346, %345 : vector<2x128xf32>
    %348 = arith.divf %346, %347 : vector<2x128xf32>
    %349 = vector.extract_strided_slice %336 {offsets = [0, 256], sizes = [2, 128], strides = [1, 1]} : vector<2x512xf32> to vector<2x128xf32>
    %350 = math.tanh %349 : vector<2x128xf32>
    %351 = vector.extract_strided_slice %336 {offsets = [0, 384], sizes = [2, 128], strides = [1, 1]} : vector<2x512xf32> to vector<2x128xf32>
    %352 = arith.negf %351 : vector<2x128xf32>
    %353 = math.exp %352 : vector<2x128xf32>
    %cst_76 = arith.constant 1.000000e+00 : f32
    %354 = vector.broadcast %cst_76 : f32 to vector<2x128xf32>
    %355 = arith.addf %354, %353 : vector<2x128xf32>
    %356 = arith.divf %354, %355 : vector<2x128xf32>
    %357 = arith.mulf %348, %331 : vector<2x128xf32>
    %358 = arith.mulf %342, %350 : vector<2x128xf32>
    %359 = arith.addf %357, %358 : vector<2x128xf32>
    %360 = math.tanh %359 : vector<2x128xf32>
    %361 = arith.mulf %356, %360 : vector<2x128xf32>
    %362 = vector.extract_strided_slice %246 {offsets = [8, 0], sizes = [2, 512], strides = [1, 1]} : vector<16x512xf32> to vector<2x512xf32>
    %cst_77 = arith.constant dense<0.000000e+00> : vector<2x512xf32>
    %363 = tpu.matmul %361, %247, %cst_77 {dimension_numbers = #tpu.dot_dimension_numbers<[1], [0], [0], [1], [0, 0, 1, 1], [], []>} : vector<2x128xf32>, vector<128x512xf32>, vector<2x512xf32> -> vector<2x512xf32>
    %364 = arith.addf %362, %363 : vector<2x512xf32>
    %365 = vector.extract_strided_slice %364 {offsets = [0, 0], sizes = [2, 128], strides = [1, 1]} : vector<2x512xf32> to vector<2x128xf32>
    %366 = arith.negf %365 : vector<2x128xf32>
    %367 = math.exp %366 : vector<2x128xf32>
    %cst_78 = arith.constant 1.000000e+00 : f32
    %368 = vector.broadcast %cst_78 : f32 to vector<2x128xf32>
    %369 = arith.addf %368, %367 : vector<2x128xf32>
    %370 = arith.divf %368, %369 : vector<2x128xf32>
    %371 = vector.extract_strided_slice %364 {offsets = [0, 128], sizes = [2, 128], strides = [1, 1]} : vector<2x512xf32> to vector<2x128xf32>
    %372 = arith.negf %371 : vector<2x128xf32>
    %373 = math.exp %372 : vector<2x128xf32>
    %cst_79 = arith.constant 1.000000e+00 : f32
    %374 = vector.broadcast %cst_79 : f32 to vector<2x128xf32>
    %375 = arith.addf %374, %373 : vector<2x128xf32>
    %376 = arith.divf %374, %375 : vector<2x128xf32>
    %377 = vector.extract_strided_slice %364 {offsets = [0, 256], sizes = [2, 128], strides = [1, 1]} : vector<2x512xf32> to vector<2x128xf32>
    %378 = math.tanh %377 : vector<2x128xf32>
    %379 = vector.extract_strided_slice %364 {offsets = [0, 384], sizes = [2, 128], strides = [1, 1]} : vector<2x512xf32> to vector<2x128xf32>
    %380 = arith.negf %379 : vector<2x128xf32>
    %381 = math.exp %380 : vector<2x128xf32>
    %cst_80 = arith.constant 1.000000e+00 : f32
    %382 = vector.broadcast %cst_80 : f32 to vector<2x128xf32>
    %383 = arith.addf %382, %381 : vector<2x128xf32>
    %384 = arith.divf %382, %383 : vector<2x128xf32>
    %385 = arith.mulf %376, %359 : vector<2x128xf32>
    %386 = arith.mulf %370, %378 : vector<2x128xf32>
    %387 = arith.addf %385, %386 : vector<2x128xf32>
    %388 = math.tanh %387 : vector<2x128xf32>
    %389 = arith.mulf %384, %388 : vector<2x128xf32>
    %390 = vector.extract_strided_slice %246 {offsets = [10, 0], sizes = [2, 512], strides = [1, 1]} : vector<16x512xf32> to vector<2x512xf32>
    %cst_81 = arith.constant dense<0.000000e+00> : vector<2x512xf32>
    %391 = tpu.matmul %389, %247, %cst_81 {dimension_numbers = #tpu.dot_dimension_numbers<[1], [0], [0], [1], [0, 0, 1, 1], [], []>} : vector<2x128xf32>, vector<128x512xf32>, vector<2x512xf32> -> vector<2x512xf32>
    %392 = arith.addf %390, %391 : vector<2x512xf32>
    %393 = vector.extract_strided_slice %392 {offsets = [0, 0], sizes = [2, 128], strides = [1, 1]} : vector<2x512xf32> to vector<2x128xf32>
    %394 = arith.negf %393 : vector<2x128xf32>
    %395 = math.exp %394 : vector<2x128xf32>
    %cst_82 = arith.constant 1.000000e+00 : f32
    %396 = vector.broadcast %cst_82 : f32 to vector<2x128xf32>
    %397 = arith.addf %396, %395 : vector<2x128xf32>
    %398 = arith.divf %396, %397 : vector<2x128xf32>
    %399 = vector.extract_strided_slice %392 {offsets = [0, 128], sizes = [2, 128], strides = [1, 1]} : vector<2x512xf32> to vector<2x128xf32>
    %400 = arith.negf %399 : vector<2x128xf32>
    %401 = math.exp %400 : vector<2x128xf32>
    %cst_83 = arith.constant 1.000000e+00 : f32
    %402 = vector.broadcast %cst_83 : f32 to vector<2x128xf32>
    %403 = arith.addf %402, %401 : vector<2x128xf32>
    %404 = arith.divf %402, %403 : vector<2x128xf32>
    %405 = vector.extract_strided_slice %392 {offsets = [0, 256], sizes = [2, 128], strides = [1, 1]} : vector<2x512xf32> to vector<2x128xf32>
    %406 = math.tanh %405 : vector<2x128xf32>
    %407 = vector.extract_strided_slice %392 {offsets = [0, 384], sizes = [2, 128], strides = [1, 1]} : vector<2x512xf32> to vector<2x128xf32>
    %408 = arith.negf %407 : vector<2x128xf32>
    %409 = math.exp %408 : vector<2x128xf32>
    %cst_84 = arith.constant 1.000000e+00 : f32
    %410 = vector.broadcast %cst_84 : f32 to vector<2x128xf32>
    %411 = arith.addf %410, %409 : vector<2x128xf32>
    %412 = arith.divf %410, %411 : vector<2x128xf32>
    %413 = arith.mulf %404, %387 : vector<2x128xf32>
    %414 = arith.mulf %398, %406 : vector<2x128xf32>
    %415 = arith.addf %413, %414 : vector<2x128xf32>
    %416 = math.tanh %415 : vector<2x128xf32>
    %417 = arith.mulf %412, %416 : vector<2x128xf32>
    %418 = vector.extract_strided_slice %246 {offsets = [12, 0], sizes = [2, 512], strides = [1, 1]} : vector<16x512xf32> to vector<2x512xf32>
    %cst_85 = arith.constant dense<0.000000e+00> : vector<2x512xf32>
    %419 = tpu.matmul %417, %247, %cst_85 {dimension_numbers = #tpu.dot_dimension_numbers<[1], [0], [0], [1], [0, 0, 1, 1], [], []>} : vector<2x128xf32>, vector<128x512xf32>, vector<2x512xf32> -> vector<2x512xf32>
    %420 = arith.addf %418, %419 : vector<2x512xf32>
    %421 = vector.extract_strided_slice %420 {offsets = [0, 0], sizes = [2, 128], strides = [1, 1]} : vector<2x512xf32> to vector<2x128xf32>
    %422 = arith.negf %421 : vector<2x128xf32>
    %423 = math.exp %422 : vector<2x128xf32>
    %cst_86 = arith.constant 1.000000e+00 : f32
    %424 = vector.broadcast %cst_86 : f32 to vector<2x128xf32>
    %425 = arith.addf %424, %423 : vector<2x128xf32>
    %426 = arith.divf %424, %425 : vector<2x128xf32>
    %427 = vector.extract_strided_slice %420 {offsets = [0, 128], sizes = [2, 128], strides = [1, 1]} : vector<2x512xf32> to vector<2x128xf32>
    %428 = arith.negf %427 : vector<2x128xf32>
    %429 = math.exp %428 : vector<2x128xf32>
    %cst_87 = arith.constant 1.000000e+00 : f32
    %430 = vector.broadcast %cst_87 : f32 to vector<2x128xf32>
    %431 = arith.addf %430, %429 : vector<2x128xf32>
    %432 = arith.divf %430, %431 : vector<2x128xf32>
    %433 = vector.extract_strided_slice %420 {offsets = [0, 256], sizes = [2, 128], strides = [1, 1]} : vector<2x512xf32> to vector<2x128xf32>
    %434 = math.tanh %433 : vector<2x128xf32>
    %435 = vector.extract_strided_slice %420 {offsets = [0, 384], sizes = [2, 128], strides = [1, 1]} : vector<2x512xf32> to vector<2x128xf32>
    %436 = arith.negf %435 : vector<2x128xf32>
    %437 = math.exp %436 : vector<2x128xf32>
    %cst_88 = arith.constant 1.000000e+00 : f32
    %438 = vector.broadcast %cst_88 : f32 to vector<2x128xf32>
    %439 = arith.addf %438, %437 : vector<2x128xf32>
    %440 = arith.divf %438, %439 : vector<2x128xf32>
    %441 = arith.mulf %432, %415 : vector<2x128xf32>
    %442 = arith.mulf %426, %434 : vector<2x128xf32>
    %443 = arith.addf %441, %442 : vector<2x128xf32>
    %444 = math.tanh %443 : vector<2x128xf32>
    %445 = arith.mulf %440, %444 : vector<2x128xf32>
    %446 = vector.extract_strided_slice %246 {offsets = [14, 0], sizes = [2, 512], strides = [1, 1]} : vector<16x512xf32> to vector<2x512xf32>
    %cst_89 = arith.constant dense<0.000000e+00> : vector<2x512xf32>
    %447 = tpu.matmul %445, %247, %cst_89 {dimension_numbers = #tpu.dot_dimension_numbers<[1], [0], [0], [1], [0, 0, 1, 1], [], []>} : vector<2x128xf32>, vector<128x512xf32>, vector<2x512xf32> -> vector<2x512xf32>
    %448 = arith.addf %446, %447 : vector<2x512xf32>
    %449 = vector.extract_strided_slice %448 {offsets = [0, 0], sizes = [2, 128], strides = [1, 1]} : vector<2x512xf32> to vector<2x128xf32>
    %450 = arith.negf %449 : vector<2x128xf32>
    %451 = math.exp %450 : vector<2x128xf32>
    %cst_90 = arith.constant 1.000000e+00 : f32
    %452 = vector.broadcast %cst_90 : f32 to vector<2x128xf32>
    %453 = arith.addf %452, %451 : vector<2x128xf32>
    %454 = arith.divf %452, %453 : vector<2x128xf32>
    %455 = vector.extract_strided_slice %448 {offsets = [0, 128], sizes = [2, 128], strides = [1, 1]} : vector<2x512xf32> to vector<2x128xf32>
    %456 = arith.negf %455 : vector<2x128xf32>
    %457 = math.exp %456 : vector<2x128xf32>
    %cst_91 = arith.constant 1.000000e+00 : f32
    %458 = vector.broadcast %cst_91 : f32 to vector<2x128xf32>
    %459 = arith.addf %458, %457 : vector<2x128xf32>
    %460 = arith.divf %458, %459 : vector<2x128xf32>
    %461 = vector.extract_strided_slice %448 {offsets = [0, 256], sizes = [2, 128], strides = [1, 1]} : vector<2x512xf32> to vector<2x128xf32>
    %462 = math.tanh %461 : vector<2x128xf32>
    %463 = vector.extract_strided_slice %448 {offsets = [0, 384], sizes = [2, 128], strides = [1, 1]} : vector<2x512xf32> to vector<2x128xf32>
    %464 = arith.negf %463 : vector<2x128xf32>
    %465 = math.exp %464 : vector<2x128xf32>
    %cst_92 = arith.constant 1.000000e+00 : f32
    %466 = vector.broadcast %cst_92 : f32 to vector<2x128xf32>
    %467 = arith.addf %466, %465 : vector<2x128xf32>
    %468 = arith.divf %466, %467 : vector<2x128xf32>
    %469 = arith.mulf %460, %443 : vector<2x128xf32>
    %470 = arith.mulf %454, %462 : vector<2x128xf32>
    %471 = arith.addf %469, %470 : vector<2x128xf32>
    %472 = math.tanh %471 : vector<2x128xf32>
    %473 = arith.mulf %468, %472 : vector<2x128xf32>
    %c0_93 = arith.constant 0 : index
    %c0_94 = arith.constant 0 : index
    %474 = vector.load %arg7[%c0_93, %c0_94] : memref<128x128xf32, #tpu.memory_space<vmem>>, vector<128x128xf32>
    %cst_95 = arith.constant dense<0.000000e+00> : vector<2x128xf32>
    %475 = tpu.matmul %473, %474, %cst_95 {dimension_numbers = #tpu.dot_dimension_numbers<[1], [0], [0], [1], [0, 0, 1, 1], [], []>} : vector<2x128xf32>, vector<128x128xf32>, vector<2x128xf32> -> vector<2x128xf32>
    %c0_96 = arith.constant 0 : index
    %c0_97 = arith.constant 0 : index
    %476 = vector.load %arg8[%c0_96, %c0_97] : memref<1x128xf32, #tpu.memory_space<vmem>>, vector<1x128xf32>
    %477 = vector.broadcast %476 : vector<1x128xf32> to vector<2x128xf32>
    %478 = arith.addf %475, %477 : vector<2x128xf32>
    %c0_98 = arith.constant 0 : index
    %c0_99 = arith.constant 0 : index
    %479 = vector.load %arg9[%c0_98, %c0_99] : memref<2x128xf32, #tpu.memory_space<vmem>>, vector<2x128xf32>
    tpu.vector_store %arg9[%c0_98, %c0_99], %478 {strides = array<i32>} : memref<2x128xf32, #tpu.memory_space<vmem>>, vector<2x128xf32>,
    return
  }
}

</mosaic_0001>

<bundles_post_ra>
// kernel: rnn_forward.1
= control target key start
LH: loop header
LB: loop body
LE: loop exit
PB: predicated region body
PF: predicated region fallthrough
CT: control target
= control target key end

     0   :  { %14 = vsyncpa [#allocation4], 0  ;;  %s6429_s0 = inlined_call_operand.vmem [shape: f32[16,16], index: 0, kind: input, shape index: {}]   ;;  %s6430_s1 = inlined_call_operand.hbm [shape: f32[16,512], index: 1, kind: input, shape index: {}]   ;;  %s6431_s2 = inlined_call_operand.hbm [shape: f32[128,512], index: 2, kind: input, shape index: {}]   ;;  %s6432_s3 = inlined_call_operand.vmem [shape: f32[1,512], index: 3, kind: input, shape index: {}]   ;;  %s6433_s4 = inlined_call_operand.hbm [shape: f32[128,512], index: 4, kind: input, shape index: {}]   ;;  %s6434_s5 = inlined_call_operand.hbm [shape: f32[128,512], index: 5, kind: input, shape index: {}]   ;;  %s6435_s6 = inlined_call_operand.vmem [shape: f32[1,512], index: 6, kind: input, shape index: {}]   ;;  %s6436_s7 = inlined_call_operand.hbm [shape: f32[128,128], index: 7, kind: input, shape index: {}]   ;;  %s6437_s8 = inlined_call_operand.vmem [shape: f32[1,128], index: 8, kind: input, shape index: {}]   ;;  %s6438_s9 = inlined_call_operand.hbm [shape: f32[2,128], index: 9, kind: output, shape index: {}]  }
   0x1   :  { %15 = vsyncpa [#allocation7], 0 }
   0x2   :  { %16 = vsyncpa [#allocation10], 0 }
   0x3   :  { %17 = vsyncpa [#allocation5], 0  ;;  %s5356_s30 = smov [#allocation6]   ;;  %s5357_s11 = smov [#allocation9]  }
   0x4   :  { %s37_s10 = sshll.u32 %s5356_s30, 4  ;;  %s63_s12 = sshll.u32 %s5357_s11, 4  ;;  %s38_s10 = int_to_ptr.vmem [resolvable:$true] %s37_s10  ;;  %s5419_s12 = int_to_ptr.vmem [resolvable:$true] %s63_s12 }
   0x5   :  { %s5216_s15 = scalar_lea.hbm %s6431_s2, 8192 }
   0x6   :  { %p5217_p0 = scmp.ne.s32.totalorder %s6431_s2, %s5216_s15  ;;  %p5220_p1 = scmp.lt.u32.totalorder %s5216_s15, %s6431_s2 }
   0x8   :  { %p5222_p2 = pnand %p5220_p1, %p5217_p0 }
   0xa   :  { %5225 = shalt.err (!%p5222_p2)
}
   0xb   :  { %s5226_s20 = scalar_lea.vmem %s38_s10, 8192  ;;  %p5231_p4 = scmp.lt.s32.totalorder %s38_s10, %s38_s10 }
   0xc   :  { %p5227_p3 = scmp.ne.s32.totalorder %s38_s10, %s5226_s20  ;;  %p5232_p5 = scmp.lt.s32.totalorder %s5226_s20, %s5226_s20 }
   0xe   :  { %p5233_p6 = por %p5232_p5, %p5231_p4 }
  0x10   :  { %p5234_p7 = pnand %p5233_p6, %p5227_p3 }
  0x12   :  { %5237 = shalt.err (!%p5234_p7)
}
  0x13   :  { %s5358_s21 = smov 512   ;;  %s5359_s22 = smov 32  }
  0x14   :  { %43 = dma.hbm_to_vmem [thread:$0]  %s6431_s2, 8192, %s38_s10, [#allocation7], %s5358_s21, %s5358_s21, %s5359_s22  }
  0x15   :  { %s5238_s27 = scalar_lea.hbm %s6434_s5, 8192 }
  0x16   :  { %p5239_p8 = scmp.ne.s32.totalorder %s6434_s5, %s5238_s27  ;;  %p5242_p9 = scmp.lt.u32.totalorder %s5238_s27, %s6434_s5 }
  0x18   :  { %p5244_p10 = pnand %p5242_p9, %p5239_p8 }
  0x1a   :  { %5247 = shalt.err (!%p5244_p10)
}
  0x1b   :  { %s5248_s13 = scalar_lea.vmem %s5419_s12, 8192  ;;  %p5253_p12 = scmp.lt.s32.totalorder %s5419_s12, %s5419_s12 }
  0x1c   :  { %p5249_p11 = scmp.ne.s32.totalorder %s5419_s12, %s5248_s13  ;;  %p5254_p13 = scmp.lt.s32.totalorder %s5248_s13, %s5248_s13 }
  0x1e   :  { %p5255_p0 = por %p5254_p13, %p5253_p12 }
  0x20   :  { %p5256_p1 = pnand %p5255_p0, %p5249_p11 }
  0x22   :  { %5259 = shalt.err (!%p5256_p1)
}
  0x23   :  { %69 = dma.hbm_to_vmem [thread:$0]  %s6434_s5, 8192, %s5419_s12, [#allocation10], %s5358_s21, %s5358_s21, %s5359_s22  }
  0x24   :  { %s5360_s14 = smov [#allocation3]   ;;  %s5361_s16 = smov [#allocation8]  }
  0x25   :  { %s25_s15 = sshll.u32 %s5360_s14, 4  ;;  %s51_s17 = sshll.u32 %s5361_s16, 4  ;;  %s26_s15 = int_to_ptr.vmem [resolvable:$true] %s25_s15  ;;  %s5456_s17 = int_to_ptr.vmem [resolvable:$true] %s51_s17 }
  0x26   :  { %s5260_s20 = scalar_lea.hbm %s6430_s1, 1024 }
  0x27   :  { %p5261_p2 = scmp.ne.s32.totalorder %s6430_s1, %s5260_s20  ;;  %p5264_p3 = scmp.lt.u32.totalorder %s5260_s20, %s6430_s1 }
  0x29   :  { %p5266_p4 = pnand %p5264_p3, %p5261_p2 }
  0x2b   :  { %5269 = shalt.err (!%p5266_p4)
}
  0x2c   :  { %s5270_s5 = scalar_lea.vmem %s26_s15, 1024  ;;  %p5275_p6 = scmp.lt.s32.totalorder %s26_s15, %s26_s15 }
  0x2d   :  { %p5271_p5 = scmp.ne.s32.totalorder %s26_s15, %s5270_s5  ;;  %p5276_p7 = scmp.lt.s32.totalorder %s5270_s5, %s5270_s5 }
  0x2f   :  { %p5277_p8 = por %p5276_p7, %p5275_p6 }
  0x31   :  { %p5278_p9 = pnand %p5277_p8, %p5271_p5 }
  0x33   :  { %5281 = shalt.err (!%p5278_p9)
}
  0x34   :  { %31 = dma.hbm_to_vmem [thread:$0]  %s6430_s1, 1024, %s26_s15, [#allocation4], %s5358_s21, %s5358_s21, %s5359_s22  }
  0x35   :  { %s5282_s30 = scalar_lea.hbm %s6433_s4, 8192 }
  0x36   :  { %p5283_p10 = scmp.ne.s32.totalorder %s6433_s4, %s5282_s30  ;;  %p5286_p11 = scmp.lt.u32.totalorder %s5282_s30, %s6433_s4 }
  0x38   :  { %p5288_p12 = pnand %p5286_p11, %p5283_p10 }
  0x3a   :  { %5291 = shalt.err (!%p5288_p12)
}
  0x3b   :  { %s5292_s14 = scalar_lea.vmem %s5456_s17, 8192  ;;  %p5297_p0 = scmp.lt.s32.totalorder %s5456_s17, %s5456_s17 }
  0x3c   :  { %p5293_p13 = scmp.ne.s32.totalorder %s5456_s17, %s5292_s14  ;;  %p5298_p1 = scmp.lt.s32.totalorder %s5292_s14, %s5292_s14 }
  0x3e   :  { %p5299_p2 = por %p5298_p1, %p5297_p0 }
  0x40   :  { %p5300_p3 = pnand %p5299_p2, %p5293_p13 }
  0x42   :  { %5303 = shalt.err (!%p5300_p3)
}
  0x43   :  { %57 = dma.hbm_to_vmem [thread:$0]  %s6433_s4, 8192, %s5456_s17, [#allocation7], %s5358_s21, %s5358_s21, %s5359_s22  }
  0x44   :  { %s5362_s16 = smov [#allocation11]   ;;  %s5304_s23 = scalar_lea.hbm %s6436_s7, 2048 }
  0x45   :  { %s77_s18 = sshll.u32 %s5362_s16, 4  ;;  %p5305_p4 = scmp.ne.s32.totalorder %s6436_s7, %s5304_s23  ;;  %s78_s18 = int_to_ptr.vmem [resolvable:$true] %s77_s18 }
  0x46   :  { %p5308_p5 = scmp.lt.u32.totalorder %s5304_s23, %s6436_s7 }
  0x48   :  { %p5310_p6 = pnand %p5308_p5, %p5305_p4 }
  0x4a   :  { %5313 = shalt.err (!%p5310_p6)
}
  0x4b   :  { %s5314_s12 = scalar_lea.vmem %s78_s18, 2048  ;;  %p5319_p8 = scmp.lt.s32.totalorder %s78_s18, %s78_s18 }
  0x4c   :  { %p5315_p7 = scmp.ne.s32.totalorder %s78_s18, %s5314_s12  ;;  %p5320_p9 = scmp.lt.s32.totalorder %s5314_s12, %s5314_s12 }
  0x4e   :  { %p5321_p10 = por %p5320_p9, %p5319_p8 }
  0x50   :  { %p5322_p11 = pnand %p5321_p10, %p5315_p7 }
  0x52   :  { %5325 = shalt.err (!%p5322_p11)
}
  0x53   :  { %s5363_s4 = smov 128   ;;  %s5364_s21 = smov 8  }
  0x54   :  { %83 = dma.hbm_to_vmem [thread:$0]  %s6436_s7, 2048, %s78_s18, [#allocation10], %s5363_s4, %s5363_s4, %s5364_s21  }
  0x55   :  { %5348 = dma.done.wait [#allocation4], 1024  }
  0x56   :  { %5349 = vsyncadd [#allocation4], 4294966272 }
  0x57   :  { %5350 = dma.done.wait [#allocation7], 16384  }
  0x58   :  { %5351 = vsyncadd [#allocation7], 4294950912 }
  0x59   :  { %5352 = dma.done.wait [#allocation10], 10240  }
  0x5a   :  { %5353 = vsyncadd [#allocation10], 4294957056  ;;  %v5365_v0 = vmov 0.0   ;;  %v104_v1 = vld [vmem:[#allocation3 + $0x8] sm:$0xff]  ;;  %v103_v6 = vld [vmem:[#allocation3] sm:$0xff]  ;;  %vm133_vm0 = vcmask 130048  }
  0x5b   :  { %204 = vmatprep.mubr.f32.mxu1 %v5365_v0  ;;  %422 = vmatprep.mubr.f32.mxu0 %v5365_v0  ;;  %v108_v2 = vld [vmem:[#allocation3 + $0x28] sm:$0xff]  ;;  %v107_v7 = vld [vmem:[#allocation3 + $0x20] sm:$0xff]  ;;  %v101_v12 = vld [vmem:[%s6429_s0] sm:$0xff]  ;;  %vm5367_vm1 = vmmov 0   ;;  %s5368_s2 = smov [#allocation12]  }
  0x5c   :  { %v295_v3 = vld [vmem:[#allocation6 + $0x8] sm:$0xff]  ;;  %v3827_v4 = vpack.c.bf16 %v108_v2, %v104_v1  ;;  %v3829_v9 = vpack.c.bf16 %v107_v7, %v103_v6  ;;  %v294_v10 = vld [vmem:[#allocation6] sm:$0xff]  ;;  %v106_v19 = vld [vmem:[#allocation3 + $0x18] sm:$0xff]  ;;  %s3711_s10 = sshll.u32 %s5368_s2, 4  ;;  %s3712_s10 = int_to_ptr.vmem [resolvable:$true] %s3711_s10 }
  0x5d   :  { %v299_v5 = vld [vmem:[#allocation6 + $0x28] sm:$0xff]  ;;  %v298_v11 = vld [vmem:[#allocation6 + $0x20] sm:$0xff]  ;;  %v110_v20 = vld [vmem:[#allocation3 + $0x38] sm:$0xff]  ;;  %s5326_s14 = scalar_lea.vmem %s3712_s10, 32  ;;  %p5331_p13 = scmp.lt.s32.totalorder %s3712_s10, %s3712_s10 }
  0x5e   :  { %v5507_v8 = vpack.c.bf16 %v299_v5, %v295_v3  ;;  %3828 = vmatprep.subr.bf16.mxu1 %v3827_v4  ;;  %v5512_v13 = vpack.c.bf16 %v298_v11, %v294_v10  ;;  %v303_v14 = vld [vmem:[#allocation6 + $0x48] sm:$0xff]  ;;  %v302_v16 = vld [vmem:[#allocation6 + $0x40] sm:$0xff]  ;;  %v3831_v22 = vpack.c.bf16 %v110_v20, %v106_v19  ;;  %v105_v23 = vld [vmem:[#allocation3 + $0x10] sm:$0xff]  ;;  %p5327_p12 = scmp.ne.s32.totalorder %s3712_s10, %s5326_s14  ;;  %p5332_p0 = scmp.lt.s32.totalorder %s5326_s14, %s5326_s14 }
  0x5f   :  { %v307_v15 = vld [vmem:[#allocation6 + $0x68] sm:$0xff]  ;;  %3830 = vmatpush1.bf16.msra.mxu1 %v3829_v9  ;;  %v306_v18 = vld [vmem:[#allocation6 + $0x60] sm:$0xff]  ;;  %v109_v24 = vld [vmem:[#allocation3 + $0x30] sm:$0xff] }
  0x60   :  { %3836 = vmatprep.subr.bf16.mxu0 %v5507_v8  ;;  %v5515_v17 = vpack.c.bf16 %v307_v15, %v303_v14  ;;  %v5518_v21 = vpack.c.bf16 %v306_v18, %v302_v16  ;;  %v3833_v25 = vpack.c.bf16 %v109_v24, %v105_v23  ;;  %v311_v26 = vld [vmem:[#allocation6 + $0x88] sm:$0xff]  ;;  %v310_v28 = vld [vmem:[#allocation6 + $0x80] sm:$0xff]  ;;  %3832 = vmatprep.subr.bf16.mxu1 %v3831_v22  ;;  %v297_v31 = vld [vmem:[#allocation6 + $0x18] sm:$0xff]  ;;  %p5333_p1 = por %p5332_p0, %p5331_p13 }
  0x61   :  { %3838 = vmatpush1.bf16.msra.mxu0 %v5512_v13  ;;  %v315_v27 = vld [vmem:[#allocation6 + $0xa8] sm:$0xff]  ;;  %v314_v30 = vld [vmem:[#allocation6 + $0xa0] sm:$0xff]  ;;  %v301_v32 = vld [vmem:[#allocation6 + $0x38] sm:$0xff] }
  0x62   :  { %3840 = vmatprep.subr.bf16.mxu0 %v5515_v17  ;;  %3722 = vmatmul.mubr.msk.f32.vlgmr.msra.gmra.mrb[0].mxu1 %vm133_vm0, %v101_v12  ;;  %v5522_v29 = vpack.c.bf16 %v315_v27, %v311_v26  ;;  %v102_v33 = vld [vmem:[%s6429_s0 + $0x8] sm:$0xff]  ;;  %v5528_v34 = vpack.c.bf16 %v301_v32, %v297_v31  ;;  %v319_v35 = vld [vmem:[#allocation6 + $0xc8] sm:$0xff]  ;;  %v5531_v37 = vpack.c.bf16 %v314_v30, %v310_v28  ;;  %v296_v38 = vld [vmem:[#allocation6 + $0x10] sm:$0xff]  ;;  %p5334_p2 = pnand %p5333_p1, %p5327_p12 }
  0x63   :  { %210 = vmatprep.mubr.f32.mxu1 %v5365_v0  ;;  %3834 = vmatpush1.bf16.msra.mxu1 %v3833_v25  ;;  %v323_v36 = vld [vmem:[#allocation6 + $0xe8] sm:$0xff]  ;;  %v300_v39 = vld [vmem:[#allocation6 + $0x30] sm:$0xff]  ;;  %v318_v40 = vld [vmem:[#allocation6 + $0xc0] sm:$0xff] }
  0x64   :  { %3868 = vmatprep.subr.bf16.mxu1 %v5528_v34  ;;  %v5535_v41 = vpack.c.bf16 %v323_v36, %v319_v35  ;;  %v322_v42 = vld [vmem:[#allocation6 + $0xe0] sm:$0xff]  ;;  %v305_v43 = vld [vmem:[#allocation6 + $0x58] sm:$0xff]  ;;  %v327_v45 = vld [vmem:[#allocation6 + $0x108] sm:$0xff]  ;;  %v5539_v47 = vpack.c.bf16 %v300_v39, %v296_v38 }
  0x65   :  { %3842 = vmatpush1.bf16.msra.mxu0 %v5518_v21  ;;  %v309_v44 = vld [vmem:[#allocation6 + $0x78] sm:$0xff]  ;;  %v331_v46 = vld [vmem:[#allocation6 + $0x128] sm:$0xff]  ;;  %v5542_v48 = vpack.c.bf16 %v322_v42, %v318_v40  ;;  %v304_v50 = vld [vmem:[#allocation6 + $0x50] sm:$0xff] }
  0x66   :  { %3844 = vmatprep.subr.bf16.mxu0 %v5522_v29  ;;  %3723 = vmatmul.mubr.msk.f32.gmra.mrb[2].mxu1 %vm133_vm0, %v102_v33  ;;  %v5544_v49 = vpack.c.bf16 %v309_v44, %v305_v43  ;;  %v308_v51 = vld [vmem:[#allocation6 + $0x70] sm:$0xff]  ;;  %v326_v52 = vld [vmem:[#allocation6 + $0x100] sm:$0xff]  ;;  %v5547_v53 = vpack.c.bf16 %v331_v46, %v327_v45  ;;  %v313_v55 = vld [vmem:[#allocation6 + $0x98] sm:$0xff] }
  0x67   :  { %281 = vmatprep.mubr.f32.mxu1 %v5365_v0  ;;  %v330_v54 = vld [vmem:[#allocation6 + $0x120] sm:$0xff]  ;;  %v317_v56 = vld [vmem:[#allocation6 + $0xb8] sm:$0xff]  ;;  %v335_v57 = vld [vmem:[#allocation6 + $0x148] sm:$0xff]  ;;  %v5551_v59 = vpack.c.bf16 %v308_v51, %v304_v50 }
  0x68   :  { %v339_v58 = vld [vmem:[#allocation6 + $0x168] sm:$0xff]  ;;  %v5556_v60 = vpack.c.bf16 %v330_v54, %v326_v52  ;;  %v5558_v61 = vpack.c.bf16 %v317_v56, %v313_v55  ;;  %v312_v62 = vld [vmem:[#allocation6 + $0x90] sm:$0xff]  ;;  %v334_v1 = vld [vmem:[#allocation6 + $0x140] sm:$0xff] }
  0x69   :  { %3846 = vmatpush1.bf16.msra.mxu0 %v5531_v37  ;;  %v316_v63 = vld [vmem:[#allocation6 + $0xb0] sm:$0xff]  ;;  %v5561_v2 = vpack.c.bf16 %v339_v58, %v335_v57  ;;  %v338_v3 = vld [vmem:[#allocation6 + $0x160] sm:$0xff]  ;;  %v321_v4 = vld [vmem:[#allocation6 + $0xd8] sm:$0xff] }
  0x6a   :  { %3848 = vmatprep.subr.bf16.mxu0 %v5535_v41  ;;  %3724 = vmatmul.mubr.msk.f32.vlgmr.msra.gmra.mrb[4].mxu1 %vm133_vm0, %v101_v12  ;;  %v325_v5 = vld [vmem:[#allocation6 + $0xf8] sm:$0xff]  ;;  %v343_v6 = vld [vmem:[#allocation6 + $0x188] sm:$0xff]  ;;  %v5565_v9 = vpack.c.bf16 %v316_v63, %v312_v62  ;;  %v5570_v10 = vpack.c.bf16 %v338_v3, %v334_v1  ;;  %v320_v12 = vld [vmem:[#allocation6 + $0xd0] sm:$0xff]  ;;  %v113_v63 = vlaneseq }
  0x6b   :  { %3870 = vmatpush1.bf16.msra.mxu1 %v5539_v47  ;;  %287 = vmatprep.mubr.f32.mxu1 %v5365_v0  ;;  %v347_v7 = vld [vmem:[#allocation6 + $0x1a8] sm:$0xff]  ;;  %v5572_v11 = vpack.c.bf16 %v325_v5, %v321_v4  ;;  %v324_v14 = vld [vmem:[#allocation6 + $0xf0] sm:$0xff]  ;;  %v342_v15 = vld [vmem:[#allocation6 + $0x180] sm:$0xff] }
  0x6c   :  { %3872 = vmatprep.subr.bf16.mxu1 %v5544_v49  ;;  %v5575_v16 = vpack.c.bf16 %v347_v7, %v343_v6  ;;  %v346_v18 = vld [vmem:[#allocation6 + $0x1a0] sm:$0xff]  ;;  %v329_v19 = vld [vmem:[#allocation6 + $0x118] sm:$0xff]  ;;  %v351_v22 = vld [vmem:[#allocation6 + $0x1c8] sm:$0xff]  ;;  %v5578_v24 = vpack.c.bf16 %v324_v14, %v320_v12  ;;  %v5655_v1 = vshrl.u32 %v113_v63, 7 }
  0x6d   :  { %3850 = vmatpush1.bf16.msra.mxu0 %v5542_v48  ;;  %v333_v20 = vld [vmem:[#allocation6 + $0x138] sm:$0xff]  ;;  %v355_v23 = vld [vmem:[#allocation6 + $0x1e8] sm:$0xff]  ;;  %v5582_v25 = vpack.c.bf16 %v346_v18, %v342_v15  ;;  %v328_v27 = vld [vmem:[#allocation6 + $0x110] sm:$0xff] }
  0x6e   :  { %3852 = vmatprep.subr.bf16.mxu0 %v5547_v53  ;;  %3725 = vmatmul.mubr.msk.f32.gmra.mrb[6].mxu1 %vm133_vm0, %v102_v33  ;;  %v5584_v26 = vpack.c.bf16 %v333_v20, %v329_v19  ;;  %v332_v28 = vld [vmem:[#allocation6 + $0x130] sm:$0xff]  ;;  %v350_v30 = vld [vmem:[#allocation6 + $0x1c0] sm:$0xff]  ;;  %v5587_v31 = vpack.c.bf16 %v355_v23, %v351_v22  ;;  %v337_v33 = vld [vmem:[#allocation6 + $0x158] sm:$0xff]  ;;  %v115_v3 = vsub.s32 0, %v5655_v1  ;;  %v119_v6 = vsub.s32 1, %v5655_v1 }
  0x6f   :  { %3874 = vmatpush1.bf16.msra.mxu1 %v5551_v59  ;;  %493 = vmatprep.mubr.f32.mxu1 %v5365_v0  ;;  %v354_v32 = vld [vmem:[#allocation6 + $0x1e0] sm:$0xff]  ;;  %v341_v35 = vld [vmem:[#allocation6 + $0x178] sm:$0xff]  ;;  %v5590_v36 = vpack.c.bf16 %v332_v28, %v328_v27  ;;  %v336_v40 = vld [vmem:[#allocation6 + $0x150] sm:$0xff]  ;;  %v123_v22 = vsub.s32 2, %v5655_v1  ;;  %v127_v27 = vsub.s32 3, %v5655_v1 }
  0x70   :  { %3876 = vmatprep.subr.bf16.mxu1 %v5558_v61  ;;  %v5594_v38 = vpack.c.bf16 %v354_v32, %v350_v30  ;;  %v5596_v39 = vpack.c.bf16 %v341_v35, %v337_v33  ;;  %v340_v42 = vld [vmem:[#allocation6 + $0x170] sm:$0xff]  ;;  %v345_v43 = vld [vmem:[#allocation6 + $0x198] sm:$0xff] }
  0x71   :  { %3854 = vmatpush1.bf16.msra.mxu0 %v5556_v60  ;;  %v349_v44 = vld [vmem:[#allocation6 + $0x1b8] sm:$0xff]  ;;  %v5600_v45 = vpack.c.bf16 %v340_v42, %v336_v40  ;;  %v344_v50 = vld [vmem:[#allocation6 + $0x190] sm:$0xff] }
  0x72   :  { %3856 = vmatprep.subr.bf16.mxu0 %v5561_v2  ;;  %v5604_v46 = vpack.c.bf16 %v349_v44, %v345_v43  ;;  %v348_v51 = vld [vmem:[#allocation6 + $0x1b0] sm:$0xff]  ;;  %v353_v52 = vld [vmem:[#allocation6 + $0x1d8] sm:$0xff] }
  0x73   :  { %3878 = vmatpush1.bf16.msra.mxu1 %v5565_v9  ;;  %v357_v54 = vld [vmem:[#allocation6 + $0x1f8] sm:$0xff]  ;;  %v5609_v55 = vpack.c.bf16 %v348_v51, %v344_v50  ;;  %v352_v57 = vld [vmem:[#allocation6 + $0x1d0] sm:$0xff] }
  0x74   :  { %3880 = vmatprep.subr.bf16.mxu1 %v5572_v11  ;;  %v5612_v56 = vpack.c.bf16 %v357_v54, %v353_v52  ;;  %v356_v58 = vld [vmem:[#allocation6 + $0x1f0] sm:$0xff] }
  0x75   :  { %3858 = vmatpush1.bf16.msra.mxu0 %v5570_v10  ;;  %v5618_v62 = vpack.c.bf16 %v356_v58, %v352_v57  ;;  %v111_v4 = vld [vmem:[%s6432_s3] sm:$0xf] }
  0x76   :  { %3860 = vmatprep.subr.bf16.mxu0 %v5575_v16  ;;  %v116_v12 = vrot.slane %v111_v4, %v115_v3  ;;  %v120_v14 = vrot.slane %v111_v4, %v119_v6  ;;  %v124_v30 = vrot.slane %v111_v4, %v123_v22  ;;  %v128_v32 = vrot.slane %v111_v4, %v127_v27 }
  0x77   :  { %3882 = vmatpush1.bf16.msra.mxu1 %v5578_v24 }
  0x78   :  { %3884 = vmatprep.subr.bf16.mxu1 %v5584_v26 }
  0x79   :  { %3862 = vmatpush1.bf16.msra.mxu0 %v5582_v25 }
  0x7a   :  { %3864 = vmatprep.subr.bf16.mxu0 %v5587_v31 }
  0x7b   :  { %3886 = vmatpush1.bf16.msra.mxu1 %v5590_v36 }
  0x7c   :  { %3888 = vmatprep.subr.bf16.mxu1 %v5596_v39 }
  0x7d   :  { %3866 = vmatpush1.bf16.msra.mxu0 %v5594_v38 }
  0x7e   :  { %3900 = vmatprep.subr.bf16.mxu0 %v5507_v8 }
  0x7f   :  { %3890 = vmatpush1.bf16.msra.mxu1 %v5600_v45 }
  0x80   :  { %423 = vmatmul.mubr.f32.vlgmr.msra.gmra.mrb[0].mxu0 %v5365_v0  ;;  %3892 = vmatprep.subr.bf16.mxu1 %v5604_v46 }
  0x81   :  { %3902 = vmatpush1.bf16.msra.mxu0 %v5512_v13  ;;  %593 = vmatprep.mubr.f32.mxu0 %v5365_v0 }
  0x82   :  { %3904 = vmatprep.subr.bf16.mxu0 %v5515_v17 }
  0x83   :  { %3894 = vmatpush1.bf16.msra.mxu1 %v5609_v55 }
  0x84   :  { %3896 = vmatprep.subr.bf16.mxu1 %v5612_v56 }
  0x85   :  { %3906 = vmatpush1.bf16.msra.mxu0 %v5518_v21 }
  0x86   :  { %3908 = vmatprep.subr.bf16.mxu0 %v5522_v29 }
  0x87   :  { %3898 = vmatpush1.bf16.msra.mxu1 %v5618_v62 }
  0x88   :  { %3932 = vmatprep.subr.bf16.mxu1 %v5528_v34 }
  0x89   :  { %3910 = vmatpush1.bf16.msra.mxu0 %v5531_v37 }
  0x8a   :  { %3912 = vmatprep.subr.bf16.mxu0 %v5535_v41  ;;  %494 = vmatmul.mubr.f32.vlgmr.msra.gmra.mrb[8].mxu1 %v5365_v0 }
  0x8b   :  { %3934 = vmatpush1.bf16.msra.mxu1 %v5539_v47  ;;  %664 = vmatprep.mubr.f32.mxu1 %v5365_v0 }
  0x8c   :  { %3936 = vmatprep.subr.bf16.mxu1 %v5544_v49 }
  0x8d   :  { %3914 = vmatpush1.bf16.msra.mxu0 %v5542_v48 }
  0x8e   :  { %3916 = vmatprep.subr.bf16.mxu0 %v5547_v53 }
  0x8f   :  { %3938 = vmatpush1.bf16.msra.mxu1 %v5551_v59 }
  0x90   :  { %3940 = vmatprep.subr.bf16.mxu1 %v5558_v61 }
  0x91   :  { %3918 = vmatpush1.bf16.msra.mxu0 %v5556_v60 }
  0x92   :  { %3920 = vmatprep.subr.bf16.mxu0 %v5561_v2 }
  0x93   :  { %3942 = vmatpush1.bf16.msra.mxu1 %v5565_v9 }
  0x94   :  { %3944 = vmatprep.subr.bf16.mxu1 %v5572_v11 }
  0x95   :  { %3922 = vmatpush1.bf16.msra.mxu0 %v5570_v10 }
  0x96   :  { %3924 = vmatprep.subr.bf16.mxu0 %v5575_v16 }
  0x97   :  { %3946 = vmatpush1.bf16.msra.mxu1 %v5578_v24 }
  0x98   :  { %3948 = vmatprep.subr.bf16.mxu1 %v5584_v26 }
  0x99   :  { %3926 = vmatpush1.bf16.msra.mxu0 %v5582_v25 }
  0x9a   :  { %3928 = vmatprep.subr.bf16.mxu0 %v5587_v31 }
  0x9b   :  { %3950 = vmatpush1.bf16.msra.mxu1 %v5590_v36 }
  0x9c   :  { %3952 = vmatprep.subr.bf16.mxu1 %v5596_v39 }
  0x9d   :  { %3930 = vmatpush1.bf16.msra.mxu0 %v5594_v38 }
  0x9e   :  { %3964 = vmatprep.subr.bf16.mxu0 %v5507_v8 }
  0x9f   :  { %3954 = vmatpush1.bf16.msra.mxu1 %v5600_v45 }
  0xa0   :  { %3956 = vmatprep.subr.bf16.mxu1 %v5604_v46 }
  0xa3   :  { %3958 = vmatpush1.bf16.msra.mxu1 %v5609_v55 }
  0xa4   :  { %3960 = vmatprep.subr.bf16.mxu1 %v5612_v56 }
  0xa7   :  { %3962 = vmatpush1.bf16.msra.mxu1 %v5618_v62 }
  0xa8   :  { %3996 = vmatprep.subr.bf16.mxu1 %v5528_v34 }
 0x135   :  { %v206_v5 = vpop.f32.mrb[0].mxu1 }
 0x136   :  { %v208_v7 = vpop.f32.mrb[1].mxu1  ;;  %v5680_v43 = vadd.f32 %v206_v5, %v116_v12 }
 0x137   :  { %v5682_v44 = vadd.f32 %v208_v7, %v120_v14 }
 0x139   :  { %v212_v15 = vpop.f32.mrb[2].mxu1 }
 0x13a   :  { %v5666_v18 = vadd.f32 %v212_v15, %v116_v12  ;;  %v214_v19 = vpop.f32.mrb[3].mxu1 }
 0x13b   :  { %v5668_v20 = vadd.f32 %v214_v19, %v120_v14 }
 0x13d   :  { %v283_v23 = vpop.f32.mrb[4].mxu1 }
 0x13e   :  { %v285_v28 = vpop.f32.mrb[5].mxu1  ;;  %v5686_v63 = vadd.f32 %v283_v23, %v124_v30 }
 0x13f   :  { %v5688_v4 = vadd.f32 %v285_v28, %v128_v32 }
 0x141   :  { %v289_v33 = vpop.f32.mrb[6].mxu1 }
 0x142   :  { %v5676_v35 = vadd.f32 %v289_v33, %v124_v30  ;;  %v291_v40 = vpop.f32.mrb[7].mxu1 }
 0x143   :  { %v5678_v42 = vadd.f32 %v291_v40, %v128_v32 }
 0x153   :  { %v424_v50 = vpop.f32.mrb[0].mxu0 }
 0x154   :  { %v500_v51 = vadd.f32 %v424_v50, %v5680_v43  ;;  %v426_v52 = vpop.f32.mrb[1].mxu0 }
 0x155   :  { %v501_v54 = vadd.f32 %v426_v52, %v5682_v44 }
 0x156   :  { %v3726_v57 = vmul.f32 -1.442695, %v500_v51 }
 0x157   :  { %v3727_v58 = vmul.f32 -1.442695, %v501_v54 }
 0x158   :  { %4960 = vpow2.f32 %v3726_v57 }
 0x159   :  { %4962 = vpow2.f32 %v3727_v58 }
 0x15d   :  { %v495_v15 = vpop.f32.mrb[8].mxu1 }
 0x15e   :  { %v502_v5 = vadd.f32 %v495_v15, %v5686_v63  ;;  %v497_v12 = vpop.f32.mrb[9].mxu1 }
 0x15f   :  { %v503_v7 = vadd.f32 %v497_v12, %v5688_v4 }
 0x160   :  { %4964 = vtanh.f32 %v502_v5 }
 0x161   :  { %v3728_v19 = vmul.f32 -1.442695, %v503_v7 }
 0x162   :  { %v4961_v14 = vpop.eup %4960 }
 0x163   :  { %v4963_v33 = vpop.eup %4962  ;;  %v507_v40 = vadd.f32 1.0, %v4961_v14  ;;  %4966 = vpow2.f32 %v3728_v19 }
 0x164   :  { %v513_v50 = vadd.f32 1.0, %v4963_v33 }
 0x165   :  { %4968 = vrcp.f32 %v507_v40 }
 0x166   :  { %4970 = vrcp.f32 %v513_v50 }
 0x16a   :  { %v4965_v51 = vpop.eup %4964 }
 0x16d   :  { %v4967_v23 = vpop.eup %4966 }
 0x16e   :  { %v520_v52 = vadd.f32 1.0, %v4967_v23 }
 0x16f   :  { %v4969_v30 = vpop.eup %4968 }
 0x170   :  { %v4971_v28 = vpop.eup %4970  ;;  %v524_v32 = vmul.f32 %v4969_v30, %v4965_v51  ;;  %4972 = vrcp.f32 %v520_v52 }
 0x171   :  { %v523_v54 = vmul.f32 0.0, %v4971_v28 }
 0x173   :  { %v5692_v57 = vadd.f32 %v524_v32, %v523_v54 }
 0x175   :  { %4974 = vtanh.f32 %v5692_v57 }
 0x17a   :  { %v4973_v58 = vpop.eup %4972 }
 0x17f   :  { %v4975_v15 = vpop.eup %4974 }
 0x180   :  { %v527_v12 = vmul.f32 %v4975_v15, %v4973_v58 }
 0x182   :  { %528 = vst [vmem:[#allocation2] sm:$0x3] %v527_v12  ;;  %594 = vmatmul.mubr.f32.vlgmr.msra.gmra.mrb[2].mxu0 %v527_v12  ;;  %665 = vmatmul.mubr.f32.vlgmr.msra.gmra.mrb[10].mxu1 %v527_v12 }
 0x183   :  { %3966 = vmatpush1.bf16.msra.mxu0 %v5512_v13  ;;  %3998 = vmatpush1.bf16.msra.mxu1 %v5539_v47 }
 0x184   :  { %3968 = vmatprep.subr.bf16.mxu0 %v5515_v17  ;;  %4000 = vmatprep.subr.bf16.mxu1 %v5544_v49 }
 0x185   :  { %782 = vmatprep.mubr.f32.mxu0 %v5365_v0  ;;  %853 = vmatprep.mubr.f32.mxu1 %v5365_v0 }
 0x187   :  { %3970 = vmatpush1.bf16.msra.mxu0 %v5518_v21  ;;  %4002 = vmatpush1.bf16.msra.mxu1 %v5551_v59 }
 0x188   :  { %3972 = vmatprep.subr.bf16.mxu0 %v5522_v29  ;;  %4004 = vmatprep.subr.bf16.mxu1 %v5558_v61 }
 0x18b   :  { %3974 = vmatpush1.bf16.msra.mxu0 %v5531_v37  ;;  %4006 = vmatpush1.bf16.msra.mxu1 %v5565_v9 }
 0x18c   :  { %3976 = vmatprep.subr.bf16.mxu0 %v5535_v41  ;;  %4008 = vmatprep.subr.bf16.mxu1 %v5572_v11 }
 0x18f   :  { %3978 = vmatpush1.bf16.msra.mxu0 %v5542_v48  ;;  %4010 = vmatpush1.bf16.msra.mxu1 %v5578_v24 }
 0x190   :  { %3980 = vmatprep.subr.bf16.mxu0 %v5547_v53  ;;  %4012 = vmatprep.subr.bf16.mxu1 %v5584_v26 }
 0x193   :  { %3982 = vmatpush1.bf16.msra.mxu0 %v5556_v60  ;;  %4014 = vmatpush1.bf16.msra.mxu1 %v5590_v36 }
 0x194   :  { %3984 = vmatprep.subr.bf16.mxu0 %v5561_v2  ;;  %4016 = vmatprep.subr.bf16.mxu1 %v5596_v39 }
 0x197   :  { %3986 = vmatpush1.bf16.msra.mxu0 %v5570_v10  ;;  %4018 = vmatpush1.bf16.msra.mxu1 %v5600_v45 }
 0x198   :  { %3988 = vmatprep.subr.bf16.mxu0 %v5575_v16  ;;  %4020 = vmatprep.subr.bf16.mxu1 %v5604_v46 }
 0x19b   :  { %3990 = vmatpush1.bf16.msra.mxu0 %v5582_v25  ;;  %4022 = vmatpush1.bf16.msra.mxu1 %v5609_v55 }
 0x19c   :  { %3992 = vmatprep.subr.bf16.mxu0 %v5587_v31  ;;  %4024 = vmatprep.subr.bf16.mxu1 %v5612_v56 }
 0x19f   :  { %3994 = vmatpush1.bf16.msra.mxu0 %v5594_v38  ;;  %4026 = vmatpush1.bf16.msra.mxu1 %v5618_v62 }
 0x1a0   :  { %4028 = vmatprep.subr.bf16.mxu0 %v5507_v8  ;;  %4060 = vmatprep.subr.bf16.mxu1 %v5528_v34 }
 0x255   :  { %v595_v5 = vpop.f32.mrb[2].mxu0  ;;  %v666_v7 = vpop.f32.mrb[10].mxu1 }
 0x256   :  { %v675_v14 = vrot.slane %v595_v5, 6  ;;  %v597_v19 = vpop.f32.mrb[3].mxu0  ;;  %v668_v33 = vpop.f32.mrb[11].mxu1  ;;  %v677_v52 = vrot.slane %v666_v7, 6 }
 0x257   :  { %v676_v40 = vrot.slane %v597_v19, 6  ;;  %v678_v28 = vrot.slane %v668_v33, 6  ;;  %v707_v33 = vrot.slane %v5692_v57, 6 }
 0x258   :  { %v683_v50 = vadd.f32 %v675_v14, %v5680_v43  ;;  %v685_v58 = vadd.f32 %v677_v52, %v5686_v63 }
 0x259   :  { %v684_v51 = vadd.f32 %v676_v40, %v5682_v44  ;;  %v686_v32 = vadd.f32 %v678_v28, %v5688_v4 }
 0x25a   :  { %v3729_v23 = vmul.f32 -1.442695, %v683_v50 }
 0x25b   :  { %v3730_v30 = vmul.f32 -1.442695, %v684_v51  ;;  %v3731_v54 = vmul.f32 -1.442695, %v686_v32 }
 0x25c   :  { %4976 = vpow2.f32 %v3729_v23 }
 0x25d   :  { %4978 = vpow2.f32 %v3730_v30 }
 0x25e   :  { %4980 = vpow2.f32 %v3731_v54 }
 0x25f   :  { %4982 = vtanh.f32 %v685_v58 }
 0x266   :  { %v4977_v15 = vpop.eup %4976 }
 0x267   :  { %v4979_v12 = vpop.eup %4978  ;;  %v690_v5 = vadd.f32 1.0, %v4977_v15 }
 0x268   :  { %v696_v19 = vadd.f32 1.0, %v4979_v12  ;;  %v4981_v14 = vpop.eup %4980 }
 0x269   :  { %4984 = vrcp.f32 %v690_v5  ;;  %v4983_v40 = vpop.eup %4982  ;;  %v703_v30 = vadd.f32 1.0, %v4981_v14 }
 0x26a   :  { %4986 = vrcp.f32 %v696_v19 }
 0x26b   :  { %4988 = vrcp.f32 %v703_v30 }
 0x273   :  { %v4985_v50 = vpop.eup %4984 }
 0x274   :  { %v4987_v51 = vpop.eup %4986  ;;  %v710_v23 = vmul.f32 %v4985_v50, %v4983_v40 }
 0x275   :  { %v709_v7 = vmul.f32 %v4987_v51, %v707_v33  ;;  %v4989_v32 = vpop.eup %4988 }
 0x277   :  { %v5734_v28 = vadd.f32 %v710_v23, %v709_v7 }
 0x279   :  { %4990 = vtanh.f32 %v5734_v28 }
 0x283   :  { %v4991_v52 = vpop.eup %4990 }
 0x284   :  { %v713_v54 = vmul.f32 %v4991_v52, %v4989_v32 }
 0x286   :  { %714 = vst [vmem:[#allocation2] sm:$0xc] %v713_v54  ;;  %v716_v58 = vrot.slane %v713_v54, 2 }
 0x288   :  { %783 = vmatmul.mubr.f32.vlgmr.msra.gmra.mrb[4].mxu0 %v716_v58  ;;  %854 = vmatmul.mubr.f32.vlgmr.msra.gmra.mrb[12].mxu1 %v716_v58 }
 0x289   :  { %4030 = vmatpush1.bf16.msra.mxu0 %v5512_v13  ;;  %4062 = vmatpush1.bf16.msra.mxu1 %v5539_v47 }
 0x28a   :  { %4032 = vmatprep.subr.bf16.mxu0 %v5515_v17  ;;  %4064 = vmatprep.subr.bf16.mxu1 %v5544_v49 }
 0x28b   :  { %971 = vmatprep.mubr.f32.mxu0 %v5365_v0  ;;  %1042 = vmatprep.mubr.f32.mxu1 %v5365_v0 }
 0x28d   :  { %4034 = vmatpush1.bf16.msra.mxu0 %v5518_v21  ;;  %4066 = vmatpush1.bf16.msra.mxu1 %v5551_v59 }
 0x28e   :  { %4036 = vmatprep.subr.bf16.mxu0 %v5522_v29  ;;  %4068 = vmatprep.subr.bf16.mxu1 %v5558_v61 }
 0x291   :  { %4038 = vmatpush1.bf16.msra.mxu0 %v5531_v37  ;;  %4070 = vmatpush1.bf16.msra.mxu1 %v5565_v9 }
 0x292   :  { %4040 = vmatprep.subr.bf16.mxu0 %v5535_v41  ;;  %4072 = vmatprep.subr.bf16.mxu1 %v5572_v11 }
 0x295   :  { %4042 = vmatpush1.bf16.msra.mxu0 %v5542_v48  ;;  %4074 = vmatpush1.bf16.msra.mxu1 %v5578_v24 }
 0x296   :  { %4044 = vmatprep.subr.bf16.mxu0 %v5547_v53  ;;  %4076 = vmatprep.subr.bf16.mxu1 %v5584_v26 }
 0x299   :  { %4046 = vmatpush1.bf16.msra.mxu0 %v5556_v60  ;;  %4078 = vmatpush1.bf16.msra.mxu1 %v5590_v36 }
 0x29a   :  { %4048 = vmatprep.subr.bf16.mxu0 %v5561_v2  ;;  %4080 = vmatprep.subr.bf16.mxu1 %v5596_v39 }
 0x29d   :  { %4050 = vmatpush1.bf16.msra.mxu0 %v5570_v10  ;;  %4082 = vmatpush1.bf16.msra.mxu1 %v5600_v45 }
 0x29e   :  { %4052 = vmatprep.subr.bf16.mxu0 %v5575_v16  ;;  %4084 = vmatprep.subr.bf16.mxu1 %v5604_v46 }
 0x2a1   :  { %4054 = vmatpush1.bf16.msra.mxu0 %v5582_v25  ;;  %4086 = vmatpush1.bf16.msra.mxu1 %v5609_v55 }
 0x2a2   :  { %4056 = vmatprep.subr.bf16.mxu0 %v5587_v31  ;;  %4088 = vmatprep.subr.bf16.mxu1 %v5612_v56 }
 0x2a5   :  { %4058 = vmatpush1.bf16.msra.mxu0 %v5594_v38  ;;  %4090 = vmatpush1.bf16.msra.mxu1 %v5618_v62 }
 0x2a6   :  { %4092 = vmatprep.subr.bf16.mxu0 %v5507_v8  ;;  %4124 = vmatprep.subr.bf16.mxu1 %v5528_v34 }
 0x35b   :  { %v784_v57 = vpop.f32.mrb[4].mxu0  ;;  %v855_v15 = vpop.f32.mrb[12].mxu1 }
 0x35c   :  { %v864_v12 = vrot.slane %v784_v57, 4  ;;  %v786_v5 = vpop.f32.mrb[5].mxu0  ;;  %v857_v19 = vpop.f32.mrb[13].mxu1  ;;  %v866_v7 = vrot.slane %v855_v15, 4 }
 0x35d   :  { %v865_v14 = vrot.slane %v786_v5, 4  ;;  %v867_v23 = vrot.slane %v857_v19, 4  ;;  %v896_v19 = vrot.slane %v5734_v28, 6 }
 0x35e   :  { %v872_v40 = vadd.f32 %v864_v12, %v5680_v43  ;;  %v874_v52 = vadd.f32 %v866_v7, %v5686_v63 }
 0x35f   :  { %v873_v50 = vadd.f32 %v865_v14, %v5682_v44  ;;  %v875_v30 = vadd.f32 %v867_v23, %v5688_v4 }
 0x360   :  { %v3732_v33 = vmul.f32 -1.442695, %v872_v40 }
 0x361   :  { %v3733_v51 = vmul.f32 -1.442695, %v873_v50  ;;  %v3734_v32 = vmul.f32 -1.442695, %v875_v30 }
 0x362   :  { %4992 = vpow2.f32 %v3732_v33 }
 0x363   :  { %4994 = vpow2.f32 %v3733_v51 }
 0x364   :  { %4996 = vpow2.f32 %v3734_v32 }
 0x365   :  { %4998 = vtanh.f32 %v874_v52 }
 0x36c   :  { %v4993_v54 = vpop.eup %4992 }
 0x36d   :  { %v4995_v58 = vpop.eup %4994  ;;  %v879_v57 = vadd.f32 1.0, %v4993_v54 }
 0x36e   :  { %v885_v5 = vadd.f32 1.0, %v4995_v58  ;;  %v4997_v12 = vpop.eup %4996 }
 0x36f   :  { %5000 = vrcp.f32 %v879_v57  ;;  %v4999_v14 = vpop.eup %4998  ;;  %v892_v51 = vadd.f32 1.0, %v4997_v12 }
 0x370   :  { %5002 = vrcp.f32 %v885_v5 }
 0x371   :  { %5004 = vrcp.f32 %v892_v51 }
 0x379   :  { %v5001_v40 = vpop.eup %5000 }
 0x37a   :  { %v5003_v50 = vpop.eup %5002  ;;  %v899_v33 = vmul.f32 %v5001_v40, %v4999_v14 }
 0x37b   :  { %v898_v15 = vmul.f32 %v5003_v50, %v896_v19  ;;  %v5005_v30 = vpop.eup %5004 }
 0x37d   :  { %v5776_v23 = vadd.f32 %v899_v33, %v898_v15 }
 0x37f   :  { %5006 = vtanh.f32 %v5776_v23 }
 0x389   :  { %v5007_v7 = vpop.eup %5006 }
 0x38a   :  { %v902_v32 = vmul.f32 %v5007_v7, %v5005_v30 }
 0x38c   :  { %903 = vst [vmem:[#allocation2] sm:$0x30] %v902_v32  ;;  %v905_v52 = vrot.slane %v902_v32, 4 }
 0x38e   :  { %972 = vmatmul.mubr.f32.vlgmr.msra.gmra.mrb[6].mxu0 %v905_v52  ;;  %1043 = vmatmul.mubr.f32.vlgmr.msra.gmra.mrb[14].mxu1 %v905_v52 }
 0x38f   :  { %4094 = vmatpush1.bf16.msra.mxu0 %v5512_v13  ;;  %4126 = vmatpush1.bf16.msra.mxu1 %v5539_v47 }
 0x390   :  { %4096 = vmatprep.subr.bf16.mxu0 %v5515_v17  ;;  %4128 = vmatprep.subr.bf16.mxu1 %v5544_v49 }
 0x391   :  { %1160 = vmatprep.mubr.f32.mxu0 %v5365_v0  ;;  %1231 = vmatprep.mubr.f32.mxu1 %v5365_v0 }
 0x393   :  { %4098 = vmatpush1.bf16.msra.mxu0 %v5518_v21  ;;  %4130 = vmatpush1.bf16.msra.mxu1 %v5551_v59 }
 0x394   :  { %4100 = vmatprep.subr.bf16.mxu0 %v5522_v29  ;;  %4132 = vmatprep.subr.bf16.mxu1 %v5558_v61 }
 0x397   :  { %4102 = vmatpush1.bf16.msra.mxu0 %v5531_v37  ;;  %4134 = vmatpush1.bf16.msra.mxu1 %v5565_v9 }
 0x398   :  { %4104 = vmatprep.subr.bf16.mxu0 %v5535_v41  ;;  %4136 = vmatprep.subr.bf16.mxu1 %v5572_v11 }
 0x39b   :  { %4106 = vmatpush1.bf16.msra.mxu0 %v5542_v48  ;;  %4138 = vmatpush1.bf16.msra.mxu1 %v5578_v24 }
 0x39c   :  { %4108 = vmatprep.subr.bf16.mxu0 %v5547_v53  ;;  %4140 = vmatprep.subr.bf16.mxu1 %v5584_v26 }
 0x39f   :  { %4110 = vmatpush1.bf16.msra.mxu0 %v5556_v60  ;;  %4142 = vmatpush1.bf16.msra.mxu1 %v5590_v36 }
 0x3a0   :  { %4112 = vmatprep.subr.bf16.mxu0 %v5561_v2  ;;  %4144 = vmatprep.subr.bf16.mxu1 %v5596_v39 }
 0x3a3   :  { %4114 = vmatpush1.bf16.msra.mxu0 %v5570_v10  ;;  %4146 = vmatpush1.bf16.msra.mxu1 %v5600_v45 }
 0x3a4   :  { %4116 = vmatprep.subr.bf16.mxu0 %v5575_v16  ;;  %4148 = vmatprep.subr.bf16.mxu1 %v5604_v46 }
 0x3a7   :  { %4118 = vmatpush1.bf16.msra.mxu0 %v5582_v25  ;;  %4150 = vmatpush1.bf16.msra.mxu1 %v5609_v55 }
 0x3a8   :  { %4120 = vmatprep.subr.bf16.mxu0 %v5587_v31  ;;  %4152 = vmatprep.subr.bf16.mxu1 %v5612_v56 }
 0x3ab   :  { %4122 = vmatpush1.bf16.msra.mxu0 %v5594_v38  ;;  %4154 = vmatpush1.bf16.msra.mxu1 %v5618_v62 }
 0x3ac   :  { %4156 = vmatprep.subr.bf16.mxu0 %v5507_v8  ;;  %4188 = vmatprep.subr.bf16.mxu1 %v5528_v34 }
 0x461   :  { %v973_v28 = vpop.f32.mrb[6].mxu0  ;;  %v1044_v54 = vpop.f32.mrb[14].mxu1 }
 0x462   :  { %v1053_v58 = vrot.slane %v973_v28, 2  ;;  %v975_v57 = vpop.f32.mrb[7].mxu0  ;;  %v1046_v5 = vpop.f32.mrb[15].mxu1  ;;  %v1055_v15 = vrot.slane %v1044_v54, 2 }
 0x463   :  { %v1054_v12 = vrot.slane %v975_v57, 2  ;;  %v1056_v33 = vrot.slane %v1046_v5, 2  ;;  %v1085_v5 = vrot.slane %v5776_v23, 6 }
 0x464   :  { %v1061_v14 = vadd.f32 %v1053_v58, %v5680_v43  ;;  %v1063_v7 = vadd.f32 %v1055_v15, %v5686_v63 }
 0x465   :  { %v1062_v40 = vadd.f32 %v1054_v12, %v5682_v44  ;;  %v1064_v51 = vadd.f32 %v1056_v33, %v5688_v4 }
 0x466   :  { %v3735_v19 = vmul.f32 -1.442695, %v1061_v14 }
 0x467   :  { %v3736_v50 = vmul.f32 -1.442695, %v1062_v40  ;;  %v3737_v30 = vmul.f32 -1.442695, %v1064_v51 }
 0x468   :  { %5008 = vpow2.f32 %v3735_v19 }
 0x469   :  { %5010 = vpow2.f32 %v3736_v50 }
 0x46a   :  { %5012 = vpow2.f32 %v3737_v30 }
 0x46b   :  { %5014 = vtanh.f32 %v1063_v7 }
 0x472   :  { %v5009_v32 = vpop.eup %5008 }
 0x473   :  { %v5011_v52 = vpop.eup %5010  ;;  %v1068_v28 = vadd.f32 1.0, %v5009_v32 }
 0x474   :  { %v1074_v57 = vadd.f32 1.0, %v5011_v52  ;;  %v5013_v43 = vpop.eup %5012 }
 0x475   :  { %5016 = vrcp.f32 %v1068_v28  ;;  %v5015_v44 = vpop.eup %5014  ;;  %v1081_v4 = vadd.f32 1.0, %v5013_v43 }
 0x476   :  { %5018 = vrcp.f32 %v1074_v57 }
 0x477   :  { %5020 = vrcp.f32 %v1081_v4 }
 0x47f   :  { %v5017_v58 = vpop.eup %5016 }
 0x480   :  { %v5019_v12 = vpop.eup %5018  ;;  %v1088_v14 = vmul.f32 %v5017_v58, %v5015_v44 }
 0x481   :  { %v1087_v54 = vmul.f32 %v5019_v12, %v1085_v5  ;;  %v5021_v63 = vpop.eup %5020 }
 0x483   :  { %v5818_v40 = vadd.f32 %v1088_v14, %v1087_v54 }
 0x485   :  { %5022 = vtanh.f32 %v5818_v40 }
 0x48f   :  { %v5023_v19 = vpop.eup %5022 }
 0x490   :  { %v1091_v50 = vmul.f32 %v5023_v19, %v5021_v63  ;;  %v1262_v19 = vrot.slane %v5818_v40, 6 }
 0x492   :  { %1092 = vst [vmem:[#allocation2] sm:$0xc0] %v1091_v50  ;;  %v1094_v33 = vrot.slane %v1091_v50, 6 }
 0x494   :  { %1161 = vmatmul.mubr.f32.vlgmr.msra.gmra.mrb[8].mxu0 %v1094_v33  ;;  %1232 = vmatmul.mubr.f32.vlgmr.msra.gmra.mrb[16].mxu1 %v1094_v33 }
 0x495   :  { %4158 = vmatpush1.bf16.msra.mxu0 %v5512_v13  ;;  %4190 = vmatpush1.bf16.msra.mxu1 %v5539_v47 }
 0x496   :  { %4160 = vmatprep.subr.bf16.mxu0 %v5515_v17  ;;  %4192 = vmatprep.subr.bf16.mxu1 %v5544_v49 }
 0x497   :  { %1334 = vmatprep.mubr.f32.mxu0 %v5365_v0  ;;  %1405 = vmatprep.mubr.f32.mxu1 %v5365_v0 }
 0x499   :  { %4162 = vmatpush1.bf16.msra.mxu0 %v5518_v21  ;;  %4194 = vmatpush1.bf16.msra.mxu1 %v5551_v59 }
 0x49a   :  { %4164 = vmatprep.subr.bf16.mxu0 %v5522_v29  ;;  %4196 = vmatprep.subr.bf16.mxu1 %v5558_v61 }
 0x49d   :  { %4166 = vmatpush1.bf16.msra.mxu0 %v5531_v37  ;;  %4198 = vmatpush1.bf16.msra.mxu1 %v5565_v9 }
 0x49e   :  { %4168 = vmatprep.subr.bf16.mxu0 %v5535_v41  ;;  %4200 = vmatprep.subr.bf16.mxu1 %v5572_v11 }
 0x4a1   :  { %4170 = vmatpush1.bf16.msra.mxu0 %v5542_v48  ;;  %4202 = vmatpush1.bf16.msra.mxu1 %v5578_v24 }
 0x4a2   :  { %4172 = vmatprep.subr.bf16.mxu0 %v5547_v53  ;;  %4204 = vmatprep.subr.bf16.mxu1 %v5584_v26 }
 0x4a5   :  { %4174 = vmatpush1.bf16.msra.mxu0 %v5556_v60  ;;  %4206 = vmatpush1.bf16.msra.mxu1 %v5590_v36 }
 0x4a6   :  { %4176 = vmatprep.subr.bf16.mxu0 %v5561_v2  ;;  %4208 = vmatprep.subr.bf16.mxu1 %v5596_v39 }
 0x4a9   :  { %4178 = vmatpush1.bf16.msra.mxu0 %v5570_v10  ;;  %4210 = vmatpush1.bf16.msra.mxu1 %v5600_v45 }
 0x4aa   :  { %4180 = vmatprep.subr.bf16.mxu0 %v5575_v16  ;;  %4212 = vmatprep.subr.bf16.mxu1 %v5604_v46 }
 0x4ad   :  { %4182 = vmatpush1.bf16.msra.mxu0 %v5582_v25  ;;  %4214 = vmatpush1.bf16.msra.mxu1 %v5609_v55 }
 0x4ae   :  { %4184 = vmatprep.subr.bf16.mxu0 %v5587_v31  ;;  %4216 = vmatprep.subr.bf16.mxu1 %v5612_v56 }
 0x4b1   :  { %4186 = vmatpush1.bf16.msra.mxu0 %v5594_v38  ;;  %4218 = vmatpush1.bf16.msra.mxu1 %v5618_v62 }
 0x4b2   :  { %4220 = vmatprep.subr.bf16.mxu0 %v5507_v8  ;;  %4252 = vmatprep.subr.bf16.mxu1 %v5528_v34 }
 0x567   :  { %v1162_v23 = vpop.f32.mrb[8].mxu0  ;;  %v1233_v51 = vpop.f32.mrb[16].mxu1 }
 0x568   :  { %v1238_v15 = vadd.f32 %v1162_v23, %v5666_v18  ;;  %v1164_v30 = vpop.f32.mrb[9].mxu0  ;;  %v1235_v7 = vpop.f32.mrb[17].mxu1  ;;  %v1240_v44 = vadd.f32 %v1233_v51, %v5676_v35 }
 0x569   :  { %v1239_v32 = vadd.f32 %v1164_v30, %v5668_v20  ;;  %v1241_v57 = vadd.f32 %v1235_v7, %v5678_v42 }
 0x56a   :  { %v3738_v52 = vmul.f32 -1.442695, %v1238_v15 }
 0x56b   :  { %v3739_v28 = vmul.f32 -1.442695, %v1239_v32  ;;  %v3740_v43 = vmul.f32 -1.442695, %v1241_v57 }
 0x56c   :  { %5024 = vpow2.f32 %v3738_v52 }
 0x56d   :  { %5026 = vpow2.f32 %v3739_v28 }
 0x56e   :  { %5028 = vpow2.f32 %v3740_v43 }
 0x56f   :  { %5030 = vtanh.f32 %v1240_v44 }
 0x576   :  { %v5025_v58 = vpop.eup %5024 }
 0x577   :  { %v5027_v5 = vpop.eup %5026  ;;  %v1245_v12 = vadd.f32 1.0, %v5025_v58 }
 0x578   :  { %v1251_v14 = vadd.f32 1.0, %v5027_v5  ;;  %v5029_v4 = vpop.eup %5028 }
 0x579   :  { %5032 = vrcp.f32 %v1245_v12  ;;  %v5031_v54 = vpop.eup %5030  ;;  %v1258_v23 = vadd.f32 1.0, %v5029_v4 }
 0x57a   :  { %5034 = vrcp.f32 %v1251_v14 }
 0x57b   :  { %5036 = vrcp.f32 %v1258_v23 }
 0x583   :  { %v5033_v63 = vpop.eup %5032 }
 0x584   :  { %v5035_v50 = vpop.eup %5034  ;;  %v1265_v33 = vmul.f32 %v5033_v63, %v5031_v54 }
 0x585   :  { %v1264_v15 = vmul.f32 %v5035_v50, %v1262_v19  ;;  %v5037_v51 = vpop.eup %5036 }
 0x587   :  { %v5860_v30 = vadd.f32 %v1265_v33, %v1264_v15 }
 0x589   :  { %5038 = vtanh.f32 %v5860_v30 }
 0x593   :  { %v5039_v7 = vpop.eup %5038 }
 0x594   :  { %v1268_v32 = vmul.f32 %v5039_v7, %v5037_v51 }
 0x596   :  { %1269 = vst [vmem:[#allocation2 + $0x8] sm:$0x3] %v1268_v32  ;;  %1335 = vmatmul.mubr.f32.vlgmr.msra.gmra.mrb[10].mxu0 %v1268_v32  ;;  %1406 = vmatmul.mubr.f32.vlgmr.msra.gmra.mrb[18].mxu1 %v1268_v32  ;;  %v1448_v32 = vrot.slane %v5860_v30, 6 }
 0x597   :  { %4222 = vmatpush1.bf16.msra.mxu0 %v5512_v13  ;;  %4254 = vmatpush1.bf16.msra.mxu1 %v5539_v47 }
 0x598   :  { %4224 = vmatprep.subr.bf16.mxu0 %v5515_v17  ;;  %4256 = vmatprep.subr.bf16.mxu1 %v5544_v49 }
 0x599   :  { %1523 = vmatprep.mubr.f32.mxu0 %v5365_v0  ;;  %1594 = vmatprep.mubr.f32.mxu1 %v5365_v0 }
 0x59b   :  { %4226 = vmatpush1.bf16.msra.mxu0 %v5518_v21  ;;  %4258 = vmatpush1.bf16.msra.mxu1 %v5551_v59 }
 0x59c   :  { %4228 = vmatprep.subr.bf16.mxu0 %v5522_v29  ;;  %4260 = vmatprep.subr.bf16.mxu1 %v5558_v61 }
 0x59f   :  { %4230 = vmatpush1.bf16.msra.mxu0 %v5531_v37  ;;  %4262 = vmatpush1.bf16.msra.mxu1 %v5565_v9 }
 0x5a0   :  { %4232 = vmatprep.subr.bf16.mxu0 %v5535_v41  ;;  %4264 = vmatprep.subr.bf16.mxu1 %v5572_v11 }
 0x5a3   :  { %4234 = vmatpush1.bf16.msra.mxu0 %v5542_v48  ;;  %4266 = vmatpush1.bf16.msra.mxu1 %v5578_v24 }
 0x5a4   :  { %4236 = vmatprep.subr.bf16.mxu0 %v5547_v53  ;;  %4268 = vmatprep.subr.bf16.mxu1 %v5584_v26 }
 0x5a7   :  { %4238 = vmatpush1.bf16.msra.mxu0 %v5556_v60  ;;  %4270 = vmatpush1.bf16.msra.mxu1 %v5590_v36 }
 0x5a8   :  { %4240 = vmatprep.subr.bf16.mxu0 %v5561_v2  ;;  %4272 = vmatprep.subr.bf16.mxu1 %v5596_v39 }
 0x5ab   :  { %4242 = vmatpush1.bf16.msra.mxu0 %v5570_v10  ;;  %4274 = vmatpush1.bf16.msra.mxu1 %v5600_v45 }
 0x5ac   :  { %4244 = vmatprep.subr.bf16.mxu0 %v5575_v16  ;;  %4276 = vmatprep.subr.bf16.mxu1 %v5604_v46 }
 0x5af   :  { %4246 = vmatpush1.bf16.msra.mxu0 %v5582_v25  ;;  %4278 = vmatpush1.bf16.msra.mxu1 %v5609_v55 }
 0x5b0   :  { %4248 = vmatprep.subr.bf16.mxu0 %v5587_v31  ;;  %4280 = vmatprep.subr.bf16.mxu1 %v5612_v56 }
 0x5b3   :  { %4250 = vmatpush1.bf16.msra.mxu0 %v5594_v38  ;;  %4282 = vmatpush1.bf16.msra.mxu1 %v5618_v62 }
 0x5b4   :  { %4284 = vmatprep.subr.bf16.mxu0 %v5507_v8  ;;  %4316 = vmatprep.subr.bf16.mxu1 %v5528_v34 }
 0x669   :  { %v1336_v40 = vpop.f32.mrb[10].mxu0  ;;  %v1407_v52 = vpop.f32.mrb[18].mxu1 }
 0x66a   :  { %v1416_v28 = vrot.slane %v1336_v40, 6  ;;  %v1338_v57 = vpop.f32.mrb[11].mxu0  ;;  %v1409_v43 = vpop.f32.mrb[19].mxu1  ;;  %v1418_v8 = vrot.slane %v1407_v52, 6 }
 0x66b   :  { %v1417_v44 = vrot.slane %v1338_v57, 6  ;;  %v1419_v4 = vrot.slane %v1409_v43, 6 }
 0x66c   :  { %v1424_v58 = vadd.f32 %v1416_v28, %v5666_v18  ;;  %v1426_v34 = vadd.f32 %v1418_v8, %v5676_v35  ;;  %v1836_v8 = vld [vmem:[#allocation8] sm:$0xff] }
 0x66d   :  { %v1425_v5 = vadd.f32 %v1417_v44, %v5668_v20  ;;  %v1427_v54 = vadd.f32 %v1419_v4, %v5678_v42 }
 0x66e   :  { %v3741_v12 = vmul.f32 -1.442695, %v1424_v58 }
 0x66f   :  { %v3742_v14 = vmul.f32 -1.442695, %v1425_v5  ;;  %v3743_v63 = vmul.f32 -1.442695, %v1427_v54 }
 0x670   :  { %5040 = vpow2.f32 %v3741_v12 }
 0x671   :  { %5042 = vpow2.f32 %v3742_v14 }
 0x672   :  { %5044 = vpow2.f32 %v3743_v63  ;;  %v1840_v63 = vld [vmem:[#allocation8 + $0x20] sm:$0xff] }
 0x673   :  { %5046 = vtanh.f32 %v1426_v34 }
 0x67a   :  { %v5041_v19 = vpop.eup %5040 }
 0x67b   :  { %v5043_v50 = vpop.eup %5042  ;;  %v1431_v33 = vadd.f32 1.0, %v5041_v19  ;;  %v1838_v19 = vld [vmem:[#allocation8 + $0x10] sm:$0xff] }
 0x67c   :  { %v1437_v23 = vadd.f32 1.0, %v5043_v50  ;;  %v5045_v15 = vpop.eup %5044  ;;  %v1842_v50 = vld [vmem:[#allocation8 + $0x30] sm:$0xff] }
 0x67d   :  { %5048 = vrcp.f32 %v1431_v33  ;;  %v5047_v51 = vpop.eup %5046  ;;  %v1444_v57 = vadd.f32 1.0, %v5045_v15  ;;  %v1845_v33 = vld [vmem:[#allocation8 + $0x48] sm:$0xff] }
 0x67e   :  { %5050 = vrcp.f32 %v1437_v23  ;;  %v1849_v15 = vld [vmem:[#allocation8 + $0x68] sm:$0xff] }
 0x67f   :  { %5052 = vrcp.f32 %v1444_v57  ;;  %v1844_v57 = vld [vmem:[#allocation8 + $0x40] sm:$0xff] }
 0x687   :  { %v5049_v7 = vpop.eup %5048 }
 0x688   :  { %v5051_v40 = vpop.eup %5050  ;;  %v1451_v28 = vmul.f32 %v5049_v7, %v5047_v51  ;;  %v1847_v51 = vld [vmem:[#allocation8 + $0x58] sm:$0xff] }
 0x689   :  { %v1450_v52 = vmul.f32 %v5051_v40, %v1448_v32  ;;  %v5053_v44 = vpop.eup %5052  ;;  %v1851_v7 = vld [vmem:[#allocation8 + $0x78] sm:$0xff]  ;;  %v4349_v40 = vpack.c.bf16 %v1840_v63, %v1836_v8  ;;  %v1870_v63 = vld [vmem:[#allocation8 + $0x110] sm:$0xff] }
 0x68b   :  { %v5902_v43 = vadd.f32 %v1451_v28, %v1450_v52  ;;  %v4381_v28 = vpack.c.bf16 %v1842_v50, %v1838_v19  ;;  %v1848_v52 = vld [vmem:[#allocation8 + $0x60] sm:$0xff]  ;;  %v1877_v19 = vld [vmem:[#allocation8 + $0x148] sm:$0xff] }
 0x68c   :  { %v1881_v50 = vld [vmem:[#allocation8 + $0x168] sm:$0xff] }
 0x68d   :  { %5054 = vtanh.f32 %v5902_v43 }
 0x697   :  { %v5055_v58 = vpop.eup %5054 }
 0x698   :  { %v1454_v5 = vmul.f32 %v5055_v58, %v5053_v44  ;;  %v4351_v44 = vpack.c.bf16 %v1849_v15, %v1845_v33  ;;  %v4383_v58 = vpack.c.bf16 %v1851_v7, %v1847_v51  ;;  %v1879_v33 = vld [vmem:[#allocation8 + $0x158] sm:$0xff]  ;;  %v1876_v7 = vld [vmem:[#allocation8 + $0x140] sm:$0xff] }
 0x69a   :  { %1455 = vst [vmem:[#allocation2 + $0x8] sm:$0xc] %v1454_v5  ;;  %v1457_v12 = vrot.slane %v1454_v5, 2  ;;  %v1846_v5 = vld [vmem:[#allocation8 + $0x50] sm:$0xff] }
 0x69c   :  { %1524 = vmatmul.mubr.f32.vlgmr.msra.gmra.mrb[12].mxu0 %v1457_v12  ;;  %1595 = vmatmul.mubr.f32.vlgmr.msra.gmra.mrb[20].mxu1 %v1457_v12  ;;  %v1850_v12 = vld [vmem:[#allocation8 + $0x70] sm:$0xff] }
 0x69d   :  { %4286 = vmatpush1.bf16.msra.mxu0 %v5512_v13  ;;  %4318 = vmatpush1.bf16.msra.mxu1 %v5539_v47  ;;  %v1837_v13 = vld [vmem:[#allocation8 + $0x8] sm:$0xff] }
 0x69e   :  { %4288 = vmatprep.subr.bf16.mxu0 %v5515_v17  ;;  %4320 = vmatprep.subr.bf16.mxu1 %v5544_v49  ;;  %v1841_v17 = vld [vmem:[#allocation8 + $0x28] sm:$0xff] }
 0x69f   :  { %1712 = vmatprep.mubr.f32.mxu0 %v5365_v0  ;;  %1783 = vmatprep.mubr.f32.mxu1 %v5365_v0 }
 0x6a1   :  { %4290 = vmatpush1.bf16.msra.mxu0 %v5518_v21  ;;  %4322 = vmatpush1.bf16.msra.mxu1 %v5551_v59  ;;  %v1839_v21 = vld [vmem:[#allocation8 + $0x18] sm:$0xff] }
 0x6a2   :  { %4292 = vmatprep.subr.bf16.mxu0 %v5522_v29  ;;  %4324 = vmatprep.subr.bf16.mxu1 %v5558_v61  ;;  %v4347_v29 = vpack.c.bf16 %v1841_v17, %v1837_v13  ;;  %v1853_v13 = vld [vmem:[#allocation8 + $0x88] sm:$0xff] }
 0x6a3   :  { %v1857_v17 = vld [vmem:[#allocation8 + $0xa8] sm:$0xff] }
 0x6a5   :  { %4294 = vmatpush1.bf16.msra.mxu0 %v5531_v37  ;;  %4326 = vmatpush1.bf16.msra.mxu1 %v5565_v9  ;;  %v1843_v37 = vld [vmem:[#allocation8 + $0x38] sm:$0xff] }
 0x6a6   :  { %4296 = vmatprep.subr.bf16.mxu0 %v5535_v41  ;;  %4328 = vmatprep.subr.bf16.mxu1 %v5572_v11  ;;  %v4379_v41 = vpack.c.bf16 %v1843_v37, %v1839_v21  ;;  %v1855_v21 = vld [vmem:[#allocation8 + $0x98] sm:$0xff]  ;;  %v4353_v37 = vpack.c.bf16 %v1848_v52, %v1844_v57  ;;  %v1878_v57 = vld [vmem:[#allocation8 + $0x150] sm:$0xff] }
 0x6a7   :  { %v1882_v52 = vld [vmem:[#allocation8 + $0x170] sm:$0xff] }
 0x6a9   :  { %4298 = vmatpush1.bf16.msra.mxu0 %v5542_v48  ;;  %4330 = vmatpush1.bf16.msra.mxu1 %v5578_v24 }
 0x6aa   :  { %4300 = vmatprep.subr.bf16.mxu0 %v5547_v53  ;;  %4332 = vmatprep.subr.bf16.mxu1 %v5584_v26 }
 0x6ad   :  { %4302 = vmatpush1.bf16.msra.mxu0 %v5556_v60  ;;  %4334 = vmatpush1.bf16.msra.mxu1 %v5590_v36 }
 0x6ae   :  { %4304 = vmatprep.subr.bf16.mxu0 %v5561_v2  ;;  %4336 = vmatprep.subr.bf16.mxu1 %v5596_v39 }
 0x6b1   :  { %4306 = vmatpush1.bf16.msra.mxu0 %v5570_v10  ;;  %4338 = vmatpush1.bf16.msra.mxu1 %v5600_v45 }
 0x6b2   :  { %4308 = vmatprep.subr.bf16.mxu0 %v5575_v16  ;;  %4340 = vmatprep.subr.bf16.mxu1 %v5604_v46 }
 0x6b5   :  { %4310 = vmatpush1.bf16.msra.mxu0 %v5582_v25  ;;  %4342 = vmatpush1.bf16.msra.mxu1 %v5609_v55 }
 0x6b6   :  { %4312 = vmatprep.subr.bf16.mxu0 %v5587_v31  ;;  %4344 = vmatprep.subr.bf16.mxu1 %v5612_v56  ;;  %v1637_v56 = vrot.slane %v5902_v43, 6 }
 0x6b9   :  { %4314 = vmatpush1.bf16.msra.mxu0 %v5594_v38  ;;  %4346 = vmatpush1.bf16.msra.mxu1 %v5618_v62 }
 0x6ba   :  { %4348 = vmatprep.subr.bf16.mxu0 %v4347_v29  ;;  %4380 = vmatprep.subr.bf16.mxu1 %v4379_v41  ;;  %v1859_v29 = vld [vmem:[#allocation8 + $0xb8] sm:$0xff]  ;;  %v4385_v41 = vpack.c.bf16 %v1850_v12, %v1846_v5 }
 0x6bb   :  { %v1891_v5 = vld [vmem:[#allocation8 + $0x1b8] sm:$0xff] }
 0x76f   :  { %v1525_v47 = vpop.f32.mrb[12].mxu0  ;;  %v1596_v48 = vpop.f32.mrb[20].mxu1 }
 0x770   :  { %v1605_v49 = vrot.slane %v1525_v47, 4  ;;  %v1527_v53 = vpop.f32.mrb[13].mxu0  ;;  %v1598_v59 = vpop.f32.mrb[21].mxu1  ;;  %v1607_v24 = vrot.slane %v1596_v48, 4  ;;  %v1852_v47 = vld [vmem:[#allocation8 + $0x80] sm:$0xff] }
 0x771   :  { %v1606_v60 = vrot.slane %v1527_v53, 4  ;;  %v1608_v11 = vrot.slane %v1598_v59, 4  ;;  %v1856_v48 = vld [vmem:[#allocation8 + $0xa0] sm:$0xff]  ;;  %v4387_v53 = vpack.c.bf16 %v1859_v29, %v1855_v21  ;;  %v1854_v59 = vld [vmem:[#allocation8 + $0x90] sm:$0xff] }
 0x772   :  { %v1613_v61 = vadd.f32 %v1605_v49, %v5666_v18  ;;  %v1615_v26 = vadd.f32 %v1607_v24, %v5676_v35  ;;  %v4355_v49 = vpack.c.bf16 %v1857_v17, %v1853_v13  ;;  %v1860_v24 = vld [vmem:[#allocation8 + $0xc0] sm:$0xff]  ;;  %v4401_v13 = vpack.c.bf16 %v1882_v52, %v1878_v57  ;;  %v2093_v57 = vld [vmem:[#allocation9 + $0x88] sm:$0xff] }
 0x773   :  { %v1614_v2 = vadd.f32 %v1606_v60, %v5668_v20  ;;  %v1616_v16 = vadd.f32 %v1608_v11, %v5678_v42  ;;  %v1858_v60 = vld [vmem:[#allocation8 + $0xb0] sm:$0xff]  ;;  %v4357_v11 = vpack.c.bf16 %v1856_v48, %v1852_v47  ;;  %v1884_v17 = vld [vmem:[#allocation8 + $0x180] sm:$0xff]  ;;  %v1893_v48 = vld [vmem:[#allocation8 + $0x1c8] sm:$0xff] }
 0x774   :  { %v3744_v9 = vmul.f32 -1.442695, %v1613_v61  ;;  %v1861_v61 = vld [vmem:[#allocation8 + $0xc8] sm:$0xff]  ;;  %v1888_v21 = vld [vmem:[#allocation8 + $0x1a0] sm:$0xff]  ;;  %v1890_v47 = vld [vmem:[#allocation8 + $0x1b0] sm:$0xff] }
 0x775   :  { %v3745_v10 = vmul.f32 -1.442695, %v1614_v2  ;;  %v3746_v25 = vmul.f32 -1.442695, %v1616_v16  ;;  %v1865_v2 = vld [vmem:[#allocation8 + $0xe8] sm:$0xff]  ;;  %v4389_v16 = vpack.c.bf16 %v1858_v60, %v1854_v59  ;;  %v1899_v59 = vld [vmem:[#allocation8 + $0x1f8] sm:$0xff]  ;;  %v4373_v60 = vpack.c.bf16 %v1888_v21, %v1884_v17 }
 0x776   :  { %5056 = vpow2.f32 %v3744_v9  ;;  %v1863_v9 = vld [vmem:[#allocation8 + $0xd8] sm:$0xff]  ;;  %v2097_v52 = vld [vmem:[#allocation9 + $0xa8] sm:$0xff]  ;;  %v2094_v21 = vld [vmem:[#allocation9 + $0x90] sm:$0xff] }
 0x777   :  { %5058 = vpow2.f32 %v3745_v10  ;;  %v1867_v10 = vld [vmem:[#allocation8 + $0xf8] sm:$0xff] }
 0x778   :  { %5060 = vpow2.f32 %v3746_v25  ;;  %v1864_v25 = vld [vmem:[#allocation8 + $0xe0] sm:$0xff] }
 0x779   :  { %5062 = vtanh.f32 %v1615_v26  ;;  %v4359_v26 = vpack.c.bf16 %v1865_v2, %v1861_v61  ;;  %v1892_v2 = vld [vmem:[#allocation8 + $0x1c0] sm:$0xff] }
 0x780   :  { %v5057_v31 = vpop.eup %5056 }
 0x781   :  { %v5059_v36 = vpop.eup %5058  ;;  %v1620_v38 = vadd.f32 1.0, %v5057_v31  ;;  %v4391_v31 = vpack.c.bf16 %v1867_v10, %v1863_v9 }
 0x782   :  { %v1626_v39 = vadd.f32 1.0, %v5059_v36  ;;  %v5061_v45 = vpop.eup %5060  ;;  %v1862_v36 = vld [vmem:[#allocation8 + $0xd0] sm:$0xff] }
 0x783   :  { %5064 = vrcp.f32 %v1620_v38  ;;  %v5063_v46 = vpop.eup %5062  ;;  %v1633_v14 = vadd.f32 1.0, %v5061_v45  ;;  %v1866_v38 = vld [vmem:[#allocation8 + $0xf0] sm:$0xff]  ;;  %v1873_v45 = vld [vmem:[#allocation8 + $0x128] sm:$0xff] }
 0x784   :  { %5066 = vrcp.f32 %v1626_v39  ;;  %v1869_v39 = vld [vmem:[#allocation8 + $0x108] sm:$0xff] }
 0x785   :  { %5068 = vrcp.f32 %v1633_v14  ;;  %v1872_v14 = vld [vmem:[#allocation8 + $0x120] sm:$0xff] }
 0x78d   :  { %v5065_v55 = vpop.eup %5064 }
 0x78e   :  { %v5067_v62 = vpop.eup %5066  ;;  %v1640_v30 = vmul.f32 %v5065_v55, %v5063_v46  ;;  %v1871_v46 = vld [vmem:[#allocation8 + $0x118] sm:$0xff] }
 0x78f   :  { %v1639_v4 = vmul.f32 %v5067_v62, %v1637_v56  ;;  %v5069_v34 = vpop.eup %5068  ;;  %v1875_v55 = vld [vmem:[#allocation8 + $0x138] sm:$0xff]  ;;  %v4361_v56 = vpack.c.bf16 %v1864_v25, %v1860_v24  ;;  %v4393_v62 = vpack.c.bf16 %v1866_v38, %v1862_v36  ;;  %v1898_v24 = vld [vmem:[#allocation8 + $0x1f0] sm:$0xff]  ;;  %v2077_v36 = vld [vmem:[#allocation9 + $0x8] sm:$0xff] }
 0x790   :  { %v4395_v8 = vpack.c.bf16 %v1875_v55, %v1871_v46  ;;  %v2081_v38 = vld [vmem:[#allocation9 + $0x28] sm:$0xff]  ;;  %v2083_v46 = vld [vmem:[#allocation9 + $0x38] sm:$0xff]  ;;  %v2076_v55 = vld [vmem:[#allocation9] sm:$0xff] }
 0x791   :  { %v5942_v54 = vadd.f32 %v1640_v30, %v1639_v4  ;;  %v1868_v30 = vld [vmem:[#allocation8 + $0x100] sm:$0xff]  ;;  %v4363_v4 = vpack.c.bf16 %v1873_v45, %v1869_v39  ;;  %v2079_v39 = vld [vmem:[#allocation9 + $0x18] sm:$0xff]  ;;  %v5949_v45 = vpack.c.bf16 %v2081_v38, %v2077_v36 }
 0x792   :  { %v4365_v15 = vpack.c.bf16 %v1872_v14, %v1868_v30  ;;  %v2078_v14 = vld [vmem:[#allocation9 + $0x10] sm:$0xff]  ;;  %v2108_v36 = vld [vmem:[#allocation9 + $0x100] sm:$0xff] }
 0x793   :  { %5070 = vtanh.f32 %v5942_v54  ;;  %v2112_v38 = vld [vmem:[#allocation9 + $0x120] sm:$0xff] }
 0x79d   :  { %v5071_v23 = vpop.eup %5070 }
 0x79e   :  { %v1643_v32 = vmul.f32 %v5071_v23, %v5069_v34  ;;  %v1874_v34 = vld [vmem:[#allocation8 + $0x130] sm:$0xff]  ;;  %v1883_v23 = vld [vmem:[#allocation8 + $0x178] sm:$0xff] }
 0x79f   :  { %v4397_v51 = vpack.c.bf16 %v1874_v34, %v1870_v63  ;;  %v2085_v63 = vld [vmem:[#allocation9 + $0x48] sm:$0xff] }
 0x7a0   :  { %1644 = vst [vmem:[#allocation2 + $0x8] sm:$0x30] %v1643_v32  ;;  %v1646_v43 = vrot.slane %v1643_v32, 4  ;;  %v1880_v32 = vld [vmem:[#allocation8 + $0x160] sm:$0xff]  ;;  %v2089_v34 = vld [vmem:[#allocation9 + $0x68] sm:$0xff] }
 0x7a1   :  { %v4369_v12 = vpack.c.bf16 %v1880_v32, %v1876_v7  ;;  %v2086_v32 = vld [vmem:[#allocation9 + $0x50] sm:$0xff] }
 0x7a2   :  { %1713 = vmatmul.mubr.f32.vlgmr.msra.gmra.mrb[14].mxu0 %v1646_v43  ;;  %1784 = vmatmul.mubr.f32.vlgmr.msra.gmra.mrb[22].mxu1 %v1646_v43  ;;  %v1885_v43 = vld [vmem:[#allocation8 + $0x188] sm:$0xff] }
 0x7a3   :  { %4350 = vmatpush1.bf16.msra.mxu0 %v4349_v40  ;;  %4382 = vmatpush1.bf16.msra.mxu1 %v4381_v28  ;;  %v4367_v40 = vpack.c.bf16 %v1881_v50, %v1877_v19  ;;  %v4399_v28 = vpack.c.bf16 %v1883_v23, %v1879_v33  ;;  %v2087_v19 = vld [vmem:[#allocation9 + $0x58] sm:$0xff]  ;;  %v5961_v50 = vpack.c.bf16 %v2089_v34, %v2085_v63  ;;  %v2084_v23 = vld [vmem:[#allocation9 + $0x40] sm:$0xff]  ;;  %v2121_v63 = vld [vmem:[#allocation9 + $0x168] sm:$0xff] }
 0x7a4   :  { %4352 = vmatprep.subr.bf16.mxu0 %v4351_v44  ;;  %4384 = vmatprep.subr.bf16.mxu1 %v4383_v58  ;;  %v1889_v44 = vld [vmem:[#allocation8 + $0x1a8] sm:$0xff]  ;;  %v1887_v58 = vld [vmem:[#allocation8 + $0x198] sm:$0xff] }
 0x7a5   :  { %1986 = vmatprep.mubr.f32.mxu0 %v5365_v0  ;;  %2063 = vmatprep.mubr.f32.mxu1 %v5365_v0  ;;  %v4371_v29 = vpack.c.bf16 %v1889_v44, %v1885_v43  ;;  %v2091_v33 = vld [vmem:[#allocation9 + $0x78] sm:$0xff]  ;;  %v5973_v44 = vpack.c.bf16 %v2097_v52, %v2093_v57  ;;  %v2118_v57 = vld [vmem:[#allocation9 + $0x150] sm:$0xff] }
 0x7a6   :  { %v2095_v43 = vld [vmem:[#allocation9 + $0x98] sm:$0xff]  ;;  %v2122_v52 = vld [vmem:[#allocation9 + $0x170] sm:$0xff] }
 0x7a7   :  { %4354 = vmatpush1.bf16.msra.mxu0 %v4353_v37  ;;  %4386 = vmatpush1.bf16.msra.mxu1 %v4385_v41  ;;  %v4403_v37 = vpack.c.bf16 %v1891_v5, %v1887_v58  ;;  %v1886_v41 = vld [vmem:[#allocation8 + $0x190] sm:$0xff]  ;;  %v2099_v58 = vld [vmem:[#allocation9 + $0xb8] sm:$0xff]  ;;  %v2092_v5 = vld [vmem:[#allocation9 + $0x80] sm:$0xff] }
 0x7a8   :  { %4356 = vmatprep.subr.bf16.mxu0 %v4355_v49  ;;  %4388 = vmatprep.subr.bf16.mxu1 %v4387_v53  ;;  %v1897_v49 = vld [vmem:[#allocation8 + $0x1e8] sm:$0xff]  ;;  %v1895_v53 = vld [vmem:[#allocation8 + $0x1d8] sm:$0xff]  ;;  %v4405_v61 = vpack.c.bf16 %v1890_v47, %v1886_v41 }
 0x7a9   :  { %v4375_v9 = vpack.c.bf16 %v1897_v49, %v1893_v48  ;;  %v4407_v10 = vpack.c.bf16 %v1899_v59, %v1895_v53  ;;  %v2101_v41 = vld [vmem:[#allocation9 + $0xc8] sm:$0xff]  ;;  %v2103_v48 = vld [vmem:[#allocation9 + $0xd8] sm:$0xff]  ;;  %v2100_v59 = vld [vmem:[#allocation9 + $0xc0] sm:$0xff] }
 0x7aa   :  { %v2105_v47 = vld [vmem:[#allocation9 + $0xe8] sm:$0xff]  ;;  %v2107_v53 = vld [vmem:[#allocation9 + $0xf8] sm:$0xff] }
 0x7ab   :  { %4358 = vmatpush1.bf16.msra.mxu0 %v4357_v11  ;;  %4390 = vmatpush1.bf16.msra.mxu1 %v4389_v16  ;;  %v1896_v11 = vld [vmem:[#allocation8 + $0x1e0] sm:$0xff]  ;;  %v1894_v16 = vld [vmem:[#allocation8 + $0x1d0] sm:$0xff]  ;;  %v5985_v49 = vpack.c.bf16 %v2105_v47, %v2101_v41  ;;  %v2119_v34 = vld [vmem:[#allocation9 + $0x158] sm:$0xff] }
 0x7ac   :  { %4360 = vmatprep.subr.bf16.mxu0 %v4359_v26  ;;  %4392 = vmatprep.subr.bf16.mxu1 %v4391_v31  ;;  %v4377_v25 = vpack.c.bf16 %v1896_v11, %v1892_v2  ;;  %v4409_v26 = vpack.c.bf16 %v1898_v24, %v1894_v16  ;;  %v1834_v31 = vld [vmem:[#allocation2] sm:$0xff]  ;;  %v2109_v16 = vld [vmem:[#allocation9 + $0x108] sm:$0xff]  ;;  %v2124_v47 = vld [vmem:[#allocation9 + $0x180] sm:$0xff] }
 0x7ad   :  { %v2113_v24 = vld [vmem:[#allocation9 + $0x128] sm:$0xff] }
 0x7af   :  { %4362 = vmatpush1.bf16.msra.mxu0 %v4361_v56  ;;  %4394 = vmatpush1.bf16.msra.mxu1 %v4393_v62  ;;  %v2080_v56 = vld [vmem:[#allocation9 + $0x20] sm:$0xff]  ;;  %v5951_v62 = vpack.c.bf16 %v2083_v46, %v2079_v39  ;;  %v6001_v46 = vpack.c.bf16 %v2112_v38, %v2108_v36 }
 0x7b0   :  { %4364 = vmatprep.subr.bf16.mxu0 %v4363_v4  ;;  %4396 = vmatprep.subr.bf16.mxu1 %v4395_v8  ;;  %v5953_v30 = vpack.c.bf16 %v2080_v56, %v2076_v55  ;;  %v2082_v4 = vld [vmem:[#allocation9 + $0x30] sm:$0xff]  ;;  %v2132_v36 = vld [vmem:[#allocation9 + $0x1c0] sm:$0xff] }
 0x7b1   :  { %v5956_v8 = vpack.c.bf16 %v2082_v4, %v2078_v14  ;;  %v2110_v55 = vld [vmem:[#allocation9 + $0x110] sm:$0xff]  ;;  %v2117_v4 = vld [vmem:[#allocation9 + $0x148] sm:$0xff]  ;;  %v2136_v38 = vld [vmem:[#allocation9 + $0x1e0] sm:$0xff] }
 0x7b2   :  { %v2114_v56 = vld [vmem:[#allocation9 + $0x130] sm:$0xff] }
 0x7b3   :  { %4366 = vmatpush1.bf16.msra.mxu0 %v4365_v15  ;;  %4398 = vmatpush1.bf16.msra.mxu1 %v4397_v51  ;;  %v2088_v15 = vld [vmem:[#allocation9 + $0x60] sm:$0xff]  ;;  %v5963_v51 = vpack.c.bf16 %v2091_v33, %v2087_v19  ;;  %v6004_v14 = vpack.c.bf16 %v2114_v56, %v2110_v55  ;;  %v6009_v19 = vpack.c.bf16 %v2121_v63, %v2117_v4  ;;  %v2123_v33 = vld [vmem:[#allocation9 + $0x178] sm:$0xff]  ;;  %v2134_v4 = vld [vmem:[#allocation9 + $0x1d0] sm:$0xff] }
 0x7b4   :  { %4368 = vmatprep.subr.bf16.mxu0 %v4367_v40  ;;  %4400 = vmatprep.subr.bf16.mxu1 %v4399_v28  ;;  %v5965_v7 = vpack.c.bf16 %v2088_v15, %v2084_v23  ;;  %v2090_v40 = vld [vmem:[#allocation9 + $0x70] sm:$0xff]  ;;  %v2116_v23 = vld [vmem:[#allocation9 + $0x140] sm:$0xff]  ;;  %v6037_v56 = vpack.c.bf16 %v2136_v38, %v2132_v36 }
 0x7b5   :  { %v5968_v28 = vpack.c.bf16 %v2090_v40, %v2086_v32  ;;  %v2120_v15 = vld [vmem:[#allocation9 + $0x160] sm:$0xff]  ;;  %v6011_v32 = vpack.c.bf16 %v2123_v33, %v2119_v34  ;;  %v2138_v63 = vld [vmem:[#allocation9 + $0x1f0] sm:$0xff] }
 0x7b6   :  { %v6013_v40 = vpack.c.bf16 %v2120_v15, %v2116_v23  ;;  %v6040_v34 = vpack.c.bf16 %v2138_v63, %v2134_v4  ;;  %v1826_v63 = vrot.slane %v5942_v54, 6  ;;  %v1900_v54 = vld [vmem:[%s6435_s6] sm:$0xf] }
 0x7b7   :  { %4370 = vmatpush1.bf16.msra.mxu0 %v4369_v12  ;;  %4402 = vmatpush1.bf16.msra.mxu1 %v4401_v13  ;;  %v2096_v12 = vld [vmem:[#allocation9 + $0xa0] sm:$0xff]  ;;  %v5975_v13 = vpack.c.bf16 %v2099_v58, %v2095_v43  ;;  %v2125_v43 = vld [vmem:[#allocation9 + $0x188] sm:$0xff]  ;;  %v6016_v58 = vpack.c.bf16 %v2122_v52, %v2118_v57 }
 0x7b8   :  { %4372 = vmatprep.subr.bf16.mxu0 %v4371_v29  ;;  %4404 = vmatprep.subr.bf16.mxu1 %v4403_v37  ;;  %v5977_v17 = vpack.c.bf16 %v2096_v12, %v2092_v5  ;;  %v2098_v29 = vld [vmem:[#allocation9 + $0xb0] sm:$0xff]  ;;  %v2129_v5 = vld [vmem:[#allocation9 + $0x1a8] sm:$0xff]  ;;  %v2127_v12 = vld [vmem:[#allocation9 + $0x198] sm:$0xff] }
 0x7b9   :  { %v5980_v37 = vpack.c.bf16 %v2098_v29, %v2094_v21  ;;  %v2131_v21 = vld [vmem:[#allocation9 + $0x1b8] sm:$0xff]  ;;  %v6020_v29 = vpack.c.bf16 %v2129_v5, %v2125_v43 }
 0x7ba   :  { %v6022_v41 = vpack.c.bf16 %v2131_v21, %v2127_v12 }
 0x7bb   :  { %4374 = vmatpush1.bf16.msra.mxu0 %v4373_v60  ;;  %4406 = vmatpush1.bf16.msra.mxu1 %v4405_v61  ;;  %v2104_v60 = vld [vmem:[#allocation9 + $0xe0] sm:$0xff]  ;;  %v5987_v61 = vpack.c.bf16 %v2107_v53, %v2103_v48  ;;  %v2126_v53 = vld [vmem:[#allocation9 + $0x190] sm:$0xff] }
 0x7bc   :  { %4376 = vmatprep.subr.bf16.mxu0 %v4375_v9  ;;  %4408 = vmatprep.subr.bf16.mxu1 %v4407_v10  ;;  %v5989_v2 = vpack.c.bf16 %v2104_v60, %v2100_v59  ;;  %v2102_v9 = vld [vmem:[#allocation9 + $0xd0] sm:$0xff]  ;;  %v2128_v48 = vld [vmem:[#allocation9 + $0x1a0] sm:$0xff] }
 0x7bd   :  { %v2106_v10 = vld [vmem:[#allocation9 + $0xf0] sm:$0xff]  ;;  %v6025_v59 = vpack.c.bf16 %v2128_v48, %v2124_v47 }
 0x7be   :  { %v5992_v11 = vpack.c.bf16 %v2106_v10, %v2102_v9  ;;  %v2130_v60 = vld [vmem:[#allocation9 + $0x1b0] sm:$0xff]  ;;  %v2133_v10 = vld [vmem:[#allocation9 + $0x1c8] sm:$0xff] }
 0x7bf   :  { %4378 = vmatpush1.bf16.msra.mxu0 %v4377_v25  ;;  %4410 = vmatpush1.bf16.msra.mxu1 %v4409_v26  ;;  %v2111_v25 = vld [vmem:[#allocation9 + $0x118] sm:$0xff]  ;;  %v5997_v26 = vpack.c.bf16 %v2113_v24, %v2109_v16  ;;  %v6029_v9 = vpack.c.bf16 %v2130_v60, %v2126_v53  ;;  %v2137_v16 = vld [vmem:[#allocation9 + $0x1e8] sm:$0xff] }
 0x7c0   :  { %4412 = vmatprep.subr.bf16.mxu0 %v5949_v45  ;;  %4444 = vmatprep.subr.bf16.mxu1 %v5951_v62  ;;  %v2135_v24 = vld [vmem:[#allocation9 + $0x1d8] sm:$0xff] }
 0x7c2   :  { %1987 = vmatmul.mubr.f32.vlgmr.msra.gmra.mrb[16].mxu0 %v1834_v31  ;;  %2064 = vmatmul.mubr.f32.vlgmr.msra.gmra.mrb[24].mxu1 %v1834_v31  ;;  %v2115_v31 = vld [vmem:[#allocation9 + $0x138] sm:$0xff] }
 0x7c3   :  { %1992 = vmatprep.mubr.f32.mxu0 %v5365_v0  ;;  %2069 = vmatprep.mubr.f32.mxu1 %v5365_v0  ;;  %v5999_v39 = vpack.c.bf16 %v2115_v31, %v2111_v25  ;;  %v6033_v25 = vpack.c.bf16 %v2137_v16, %v2133_v10  ;;  %v2139_v31 = vld [vmem:[#allocation9 + $0x1f8] sm:$0xff] }
 0x7c4   :  { %4414 = vmatpush1.bf16.msra.mxu0 %v5953_v30  ;;  %4446 = vmatpush1.bf16.msra.mxu1 %v5956_v8  ;;  %v6035_v55 = vpack.c.bf16 %v2139_v31, %v2135_v24 }
 0x7c5   :  { %4416 = vmatprep.subr.bf16.mxu0 %v5961_v50  ;;  %4448 = vmatprep.subr.bf16.mxu1 %v5963_v51 }
 0x7c8   :  { %4418 = vmatpush1.bf16.msra.mxu0 %v5965_v7  ;;  %4450 = vmatpush1.bf16.msra.mxu1 %v5968_v28 }
 0x7c9   :  { %4420 = vmatprep.subr.bf16.mxu0 %v5973_v44  ;;  %4452 = vmatprep.subr.bf16.mxu1 %v5975_v13 }
 0x7cc   :  { %4422 = vmatpush1.bf16.msra.mxu0 %v5977_v17  ;;  %4454 = vmatpush1.bf16.msra.mxu1 %v5980_v37 }
 0x7cd   :  { %4424 = vmatprep.subr.bf16.mxu0 %v5985_v49  ;;  %4456 = vmatprep.subr.bf16.mxu1 %v5987_v61 }
 0x7d0   :  { %4426 = vmatpush1.bf16.msra.mxu0 %v5989_v2  ;;  %4458 = vmatpush1.bf16.msra.mxu1 %v5992_v11 }
 0x7d1   :  { %4428 = vmatprep.subr.bf16.mxu0 %v5997_v26  ;;  %4460 = vmatprep.subr.bf16.mxu1 %v5999_v39 }
 0x7d4   :  { %4430 = vmatpush1.bf16.msra.mxu0 %v6001_v46  ;;  %4462 = vmatpush1.bf16.msra.mxu1 %v6004_v14 }
 0x7d5   :  { %4432 = vmatprep.subr.bf16.mxu0 %v6009_v19  ;;  %4464 = vmatprep.subr.bf16.mxu1 %v6011_v32 }
 0x7d8   :  { %4434 = vmatpush1.bf16.msra.mxu0 %v6013_v40  ;;  %4466 = vmatpush1.bf16.msra.mxu1 %v6016_v58 }
 0x7d9   :  { %4436 = vmatprep.subr.bf16.mxu0 %v6020_v29  ;;  %4468 = vmatprep.subr.bf16.mxu1 %v6022_v41 }
 0x7dc   :  { %4438 = vmatpush1.bf16.msra.mxu0 %v6025_v59  ;;  %4470 = vmatpush1.bf16.msra.mxu1 %v6029_v9 }
 0x7dd   :  { %4440 = vmatprep.subr.bf16.mxu0 %v6033_v25  ;;  %4472 = vmatprep.subr.bf16.mxu1 %v6035_v55 }
 0x7e0   :  { %4442 = vmatpush1.bf16.msra.mxu0 %v6037_v56  ;;  %4474 = vmatpush1.bf16.msra.mxu1 %v6040_v34 }
 0x7e1   :  { %4476 = vmatprep.subr.bf16.mxu0 %v5949_v45  ;;  %4508 = vmatprep.subr.bf16.mxu1 %v5951_v62 }
 0x875   :  { %v1714_v33 = vpop.f32.mrb[14].mxu0  ;;  %v1785_v23 = vpop.f32.mrb[22].mxu1 }
 0x876   :  { %v1794_v15 = vrot.slane %v1714_v33, 2  ;;  %v1716_v57 = vpop.f32.mrb[15].mxu0  ;;  %v1787_v52 = vpop.f32.mrb[23].mxu1  ;;  %v1796_v60 = vrot.slane %v1785_v23, 2 }
 0x877   :  { %v1795_v43 = vrot.slane %v1716_v57, 2  ;;  %v1797_v48 = vrot.slane %v1787_v52, 2 }
 0x878   :  { %v1802_v5 = vadd.f32 %v1794_v15, %v5666_v18  ;;  %v1804_v16 = vadd.f32 %v1796_v60, %v5676_v35  ;;  %v6103_v60 = vrot.slane %v1900_v54, %v119_v6 }
 0x879   :  { %v1803_v12 = vadd.f32 %v1795_v43, %v5668_v20  ;;  %v1805_v53 = vadd.f32 %v1797_v48, %v5678_v42 }
 0x87a   :  { %v3747_v21 = vmul.f32 -1.442695, %v1802_v5 }
 0x87b   :  { %v3748_v47 = vmul.f32 -1.442695, %v1803_v12  ;;  %v3749_v10 = vmul.f32 -1.442695, %v1805_v53  ;;  %v6099_v53 = vrot.slane %v1900_v54, %v115_v3 }
 0x87c   :  { %5072 = vpow2.f32 %v3747_v21 }
 0x87d   :  { %5074 = vpow2.f32 %v3748_v47 }
 0x87e   :  { %5076 = vpow2.f32 %v3749_v10 }
 0x87f   :  { %5078 = vtanh.f32 %v1804_v16 }
 0x886   :  { %v5073_v24 = vpop.eup %5072 }
 0x887   :  { %v5075_v31 = vpop.eup %5074  ;;  %v1809_v36 = vadd.f32 1.0, %v5073_v24 }
 0x888   :  { %v1815_v38 = vadd.f32 1.0, %v5075_v31  ;;  %v5077_v18 = vpop.eup %5076 }
 0x889   :  { %5080 = vrcp.f32 %v1809_v36  ;;  %v5079_v20 = vpop.eup %5078  ;;  %v1822_v42 = vadd.f32 1.0, %v5077_v18 }
 0x88a   :  { %5082 = vrcp.f32 %v1815_v38 }
 0x88b   :  { %5084 = vrcp.f32 %v1822_v42 }
 0x893   :  { %v5081_v4 = vpop.eup %5080 }
 0x894   :  { %v5083_v33 = vpop.eup %5082  ;;  %v1829_v15 = vmul.f32 %v5081_v4, %v5079_v20 }
 0x895   :  { %v1828_v23 = vmul.f32 %v5083_v33, %v1826_v63  ;;  %v1988_v57 = vpop.f32.mrb[16].mxu0  ;;  %v6052_v52 = vpop.f32.mrb[24].mxu1  ;;  %v6122_v63 = vrot.slane %v1900_v54, %v127_v27 }
 0x896   :  { %v1990_v35 = vpop.f32.mrb[17].mxu0  ;;  %v6054_v43 = vpop.f32.mrb[25].mxu1  ;;  %v6114_v36 = vadd.f32 %v1988_v57, %v6099_v53  ;;  %v6131_v57 = vrot.slane %v1900_v54, %v123_v22 }
 0x897   :  { %v1830_v5 = vadd.f32 %v1829_v15, %v1828_v23  ;;  %v5085_v12 = vpop.eup %5084  ;;  %v6117_v38 = vadd.f32 %v1990_v35, %v6103_v60  ;;  %v6127_v23 = vadd.f32 %v6054_v43, %v6122_v63 }
 0x898   :  { %v6136_v27 = vadd.f32 %v6052_v52, %v6131_v57 }
 0x899   :  { %5086 = vtanh.f32 %v1830_v5 }
 0x8a3   :  { %v5087_v21 = vpop.eup %5086 }
 0x8a4   :  { %v1832_v47 = vmul.f32 %v5087_v21, %v5085_v12 }
 0x8a6   :  { %1833 = vst [vmem:[#allocation2 + $0x8] sm:$0xc0] %v1832_v47 }
 0x8ad   :  { %v1835_v48 = vld [vmem:[#allocation2 + $0x8] sm:$0xff] }
 0x8ae   :  { %1993 = vmatmul.mubr.f32.gmra.mrb[18].mxu0 %v1835_v48  ;;  %2070 = vmatmul.mubr.f32.gmra.mrb[26].mxu1 %v1835_v48 }
 0x8af   :  { %2204 = vmatprep.mubr.f32.mxu0 %v5365_v0  ;;  %2275 = vmatprep.mubr.f32.mxu1 %v5365_v0 }
 0x8b2   :  { %2205 = vmatmul.mubr.f32.vlgmr.msra.gmra.mrb[20].mxu0 %v5365_v0  ;;  %2276 = vmatmul.mubr.f32.vlgmr.msra.gmra.mrb[28].mxu1 %v5365_v0 }
 0x8b3   :  { %4478 = vmatpush1.bf16.msra.mxu0 %v5953_v30  ;;  %4510 = vmatpush1.bf16.msra.mxu1 %v5956_v8 }
 0x8b4   :  { %4480 = vmatprep.subr.bf16.mxu0 %v5961_v50  ;;  %4512 = vmatprep.subr.bf16.mxu1 %v5963_v51 }
 0x8b5   :  { %2374 = vmatprep.mubr.f32.mxu0 %v5365_v0  ;;  %2445 = vmatprep.mubr.f32.mxu1 %v5365_v0 }
 0x8b7   :  { %4482 = vmatpush1.bf16.msra.mxu0 %v5965_v7  ;;  %4514 = vmatpush1.bf16.msra.mxu1 %v5968_v28 }
 0x8b8   :  { %4484 = vmatprep.subr.bf16.mxu0 %v5973_v44  ;;  %4516 = vmatprep.subr.bf16.mxu1 %v5975_v13 }
 0x8bb   :  { %4486 = vmatpush1.bf16.msra.mxu0 %v5977_v17  ;;  %4518 = vmatpush1.bf16.msra.mxu1 %v5980_v37 }
 0x8bc   :  { %4488 = vmatprep.subr.bf16.mxu0 %v5985_v49  ;;  %4520 = vmatprep.subr.bf16.mxu1 %v5987_v61 }
 0x8bf   :  { %4490 = vmatpush1.bf16.msra.mxu0 %v5989_v2  ;;  %4522 = vmatpush1.bf16.msra.mxu1 %v5992_v11 }
 0x8c0   :  { %4492 = vmatprep.subr.bf16.mxu0 %v5997_v26  ;;  %4524 = vmatprep.subr.bf16.mxu1 %v5999_v39 }
 0x8c3   :  { %4494 = vmatpush1.bf16.msra.mxu0 %v6001_v46  ;;  %4526 = vmatpush1.bf16.msra.mxu1 %v6004_v14 }
 0x8c4   :  { %4496 = vmatprep.subr.bf16.mxu0 %v6009_v19  ;;  %4528 = vmatprep.subr.bf16.mxu1 %v6011_v32 }
 0x8c7   :  { %4498 = vmatpush1.bf16.msra.mxu0 %v6013_v40  ;;  %4530 = vmatpush1.bf16.msra.mxu1 %v6016_v58 }
 0x8c8   :  { %4500 = vmatprep.subr.bf16.mxu0 %v6020_v29  ;;  %4532 = vmatprep.subr.bf16.mxu1 %v6022_v41 }
 0x8cb   :  { %4502 = vmatpush1.bf16.msra.mxu0 %v6025_v59  ;;  %4534 = vmatpush1.bf16.msra.mxu1 %v6029_v9 }
 0x8cc   :  { %4504 = vmatprep.subr.bf16.mxu0 %v6033_v25  ;;  %4536 = vmatprep.subr.bf16.mxu1 %v6035_v55 }
 0x8cf   :  { %4506 = vmatpush1.bf16.msra.mxu0 %v6037_v56  ;;  %4538 = vmatpush1.bf16.msra.mxu1 %v6040_v34 }
 0x8d0   :  { %4540 = vmatprep.subr.bf16.mxu0 %v5949_v45  ;;  %4572 = vmatprep.subr.bf16.mxu1 %v5951_v62 }
 0x981   :  { %v6105_v10 = vpop.f32.mrb[18].mxu0  ;;  %v6107_v16 = vpop.f32.mrb[26].mxu1 }
 0x982   :  { %v6109_v24 = vpop.f32.mrb[19].mxu0  ;;  %v6111_v31 = vpop.f32.mrb[27].mxu1 }
 0x985   :  { %v2206_v3 = vpop.f32.mrb[20].mxu0  ;;  %v2277_v18 = vpop.f32.mrb[28].mxu1 }
 0x986   :  { %v2282_v20 = vadd.f32 %v2206_v3, %v6114_v36  ;;  %v2208_v6 = vpop.f32.mrb[21].mxu0  ;;  %v2279_v4 = vpop.f32.mrb[29].mxu1  ;;  %v2284_v12 = vadd.f32 %v2277_v18, %v6136_v27 }
 0x987   :  { %v2283_v33 = vadd.f32 %v2208_v6, %v6117_v38  ;;  %v2285_v35 = vadd.f32 %v2279_v4, %v6127_v23 }
 0x988   :  { %v3750_v15 = vmul.f32 -1.442695, %v2282_v20 }
 0x989   :  { %v3751_v42 = vmul.f32 -1.442695, %v2283_v33  ;;  %v3752_v5 = vmul.f32 -1.442695, %v2285_v35 }
 0x98a   :  { %5088 = vpow2.f32 %v3750_v15 }
 0x98b   :  { %5090 = vpow2.f32 %v3751_v42 }
 0x98c   :  { %5092 = vpow2.f32 %v3752_v5 }
 0x98d   :  { %5094 = vtanh.f32 %v2284_v12 }
 0x994   :  { %v5089_v21 = vpop.eup %5088 }
 0x995   :  { %v5091_v47 = vpop.eup %5090  ;;  %v2289_v48 = vadd.f32 1.0, %v5089_v21 }
 0x996   :  { %v2295_v43 = vadd.f32 1.0, %v5091_v47  ;;  %v5093_v1 = vpop.eup %5092 }
 0x997   :  { %5096 = vrcp.f32 %v2289_v48  ;;  %v5095_v22 = vpop.eup %5094  ;;  %v2302_v6 = vadd.f32 1.0, %v5093_v1 }
 0x998   :  { %5098 = vrcp.f32 %v2295_v43 }
 0x999   :  { %5100 = vrcp.f32 %v2302_v6 }
 0x9a1   :  { %v5097_v54 = vpop.eup %5096 }
 0x9a2   :  { %v5099_v3 = vpop.eup %5098  ;;  %v2306_v20 = vmul.f32 %v5097_v54, %v5095_v22 }
 0x9a3   :  { %v2305_v4 = vmul.f32 0.0, %v5099_v3  ;;  %v5101_v18 = vpop.eup %5100 }
 0x9a5   :  { %v6139_v52 = vadd.f32 %v2306_v20, %v2305_v4 }
 0x9a7   :  { %5102 = vtanh.f32 %v6139_v52 }
 0x9b1   :  { %v5103_v33 = vpop.eup %5102 }
 0x9b2   :  { %v2309_v15 = vmul.f32 %v5103_v33, %v5101_v18 }
 0x9b4   :  { %2375 = vmatmul.mubr.f32.vlgmr.msra.gmra.mrb[22].mxu0 %v2309_v15  ;;  %2446 = vmatmul.mubr.f32.vlgmr.msra.gmra.mrb[30].mxu1 %v2309_v15 }
 0x9b5   :  { %4542 = vmatpush1.bf16.msra.mxu0 %v5953_v30  ;;  %4574 = vmatpush1.bf16.msra.mxu1 %v5956_v8 }
 0x9b6   :  { %4544 = vmatprep.subr.bf16.mxu0 %v5961_v50  ;;  %4576 = vmatprep.subr.bf16.mxu1 %v5963_v51 }
 0x9b7   :  { %2562 = vmatprep.mubr.f32.mxu0 %v5365_v0  ;;  %2633 = vmatprep.mubr.f32.mxu1 %v5365_v0 }
 0x9b9   :  { %4546 = vmatpush1.bf16.msra.mxu0 %v5965_v7  ;;  %4578 = vmatpush1.bf16.msra.mxu1 %v5968_v28 }
 0x9ba   :  { %4548 = vmatprep.subr.bf16.mxu0 %v5973_v44  ;;  %4580 = vmatprep.subr.bf16.mxu1 %v5975_v13 }
 0x9bd   :  { %4550 = vmatpush1.bf16.msra.mxu0 %v5977_v17  ;;  %4582 = vmatpush1.bf16.msra.mxu1 %v5980_v37 }
 0x9be   :  { %4552 = vmatprep.subr.bf16.mxu0 %v5985_v49  ;;  %4584 = vmatprep.subr.bf16.mxu1 %v5987_v61 }
 0x9c1   :  { %4554 = vmatpush1.bf16.msra.mxu0 %v5989_v2  ;;  %4586 = vmatpush1.bf16.msra.mxu1 %v5992_v11 }
 0x9c2   :  { %4556 = vmatprep.subr.bf16.mxu0 %v5997_v26  ;;  %4588 = vmatprep.subr.bf16.mxu1 %v5999_v39 }
 0x9c5   :  { %4558 = vmatpush1.bf16.msra.mxu0 %v6001_v46  ;;  %4590 = vmatpush1.bf16.msra.mxu1 %v6004_v14 }
 0x9c6   :  { %4560 = vmatprep.subr.bf16.mxu0 %v6009_v19  ;;  %4592 = vmatprep.subr.bf16.mxu1 %v6011_v32 }
 0x9c9   :  { %4562 = vmatpush1.bf16.msra.mxu0 %v6013_v40  ;;  %4594 = vmatpush1.bf16.msra.mxu1 %v6016_v58 }
 0x9ca   :  { %4564 = vmatprep.subr.bf16.mxu0 %v6020_v29  ;;  %4596 = vmatprep.subr.bf16.mxu1 %v6022_v41 }
 0x9cd   :  { %4566 = vmatpush1.bf16.msra.mxu0 %v6025_v59  ;;  %4598 = vmatpush1.bf16.msra.mxu1 %v6029_v9 }
 0x9ce   :  { %4568 = vmatprep.subr.bf16.mxu0 %v6033_v25  ;;  %4600 = vmatprep.subr.bf16.mxu1 %v6035_v55 }
 0x9d1   :  { %4570 = vmatpush1.bf16.msra.mxu0 %v6037_v56  ;;  %4602 = vmatpush1.bf16.msra.mxu1 %v6040_v34 }
 0x9d2   :  { %4604 = vmatprep.subr.bf16.mxu0 %v5949_v45  ;;  %4636 = vmatprep.subr.bf16.mxu1 %v5951_v62 }
 0xa87   :  { %v2376_v42 = vpop.f32.mrb[22].mxu0  ;;  %v2447_v35 = vpop.f32.mrb[30].mxu1 }
 0xa88   :  { %v2456_v5 = vrot.slane %v2376_v42, 6  ;;  %v2378_v12 = vpop.f32.mrb[23].mxu0  ;;  %v2449_v21 = vpop.f32.mrb[31].mxu1  ;;  %v2458_v20 = vrot.slane %v2447_v35, 6 }
 0xa89   :  { %v2457_v47 = vrot.slane %v2378_v12, 6  ;;  %v2459_v54 = vrot.slane %v2449_v21, 6  ;;  %v2488_v21 = vrot.slane %v6139_v52, 6 }
 0xa8a   :  { %v2464_v48 = vadd.f32 %v2456_v5, %v6114_v36  ;;  %v2466_v4 = vadd.f32 %v2458_v20, %v6136_v27 }
 0xa8b   :  { %v2465_v43 = vadd.f32 %v2457_v47, %v6117_v38  ;;  %v2467_v3 = vadd.f32 %v2459_v54, %v6127_v23 }
 0xa8c   :  { %v3753_v1 = vmul.f32 -1.442695, %v2464_v48 }
 0xa8d   :  { %v3754_v22 = vmul.f32 -1.442695, %v2465_v43  ;;  %v3755_v6 = vmul.f32 -1.442695, %v2467_v3 }
 0xa8e   :  { %5104 = vpow2.f32 %v3753_v1 }
 0xa8f   :  { %5106 = vpow2.f32 %v3754_v22 }
 0xa90   :  { %5108 = vpow2.f32 %v3755_v6 }
 0xa91   :  { %5110 = vtanh.f32 %v2466_v4 }
 0xa98   :  { %v5105_v18 = vpop.eup %5104 }
 0xa99   :  { %v5107_v33 = vpop.eup %5106  ;;  %v2471_v15 = vadd.f32 1.0, %v5105_v18 }
 0xa9a   :  { %v2477_v42 = vadd.f32 1.0, %v5107_v33  ;;  %v5109_v5 = vpop.eup %5108 }
 0xa9b   :  { %5112 = vrcp.f32 %v2471_v15  ;;  %v5111_v12 = vpop.eup %5110  ;;  %v2484_v1 = vadd.f32 1.0, %v5109_v5 }
 0xa9c   :  { %5114 = vrcp.f32 %v2477_v42 }
 0xa9d   :  { %5116 = vrcp.f32 %v2484_v1 }
 0xaa5   :  { %v5113_v47 = vpop.eup %5112 }
 0xaa6   :  { %v5115_v48 = vpop.eup %5114  ;;  %v2491_v43 = vmul.f32 %v5113_v47, %v5111_v12 }
 0xaa7   :  { %v2490_v35 = vmul.f32 %v5115_v48, %v2488_v21  ;;  %v5117_v54 = vpop.eup %5116 }
 0xaa9   :  { %v6181_v22 = vadd.f32 %v2491_v43, %v2490_v35 }
 0xaab   :  { %5118 = vtanh.f32 %v6181_v22 }
 0xab5   :  { %v5119_v3 = vpop.eup %5118 }
 0xab6   :  { %v2494_v20 = vmul.f32 %v5119_v3, %v5117_v54 }
 0xab8   :  { %v2496_v6 = vrot.slane %v2494_v20, 2 }
 0xaba   :  { %2563 = vmatmul.mubr.f32.vlgmr.msra.gmra.mrb[24].mxu0 %v2496_v6  ;;  %2634 = vmatmul.mubr.f32.vlgmr.msra.gmra.mrb[32].mxu1 %v2496_v6 }
 0xabb   :  { %4606 = vmatpush1.bf16.msra.mxu0 %v5953_v30  ;;  %4638 = vmatpush1.bf16.msra.mxu1 %v5956_v8 }
 0xabc   :  { %4608 = vmatprep.subr.bf16.mxu0 %v5961_v50  ;;  %4640 = vmatprep.subr.bf16.mxu1 %v5963_v51 }
 0xabd   :  { %2750 = vmatprep.mubr.f32.mxu0 %v5365_v0  ;;  %2821 = vmatprep.mubr.f32.mxu1 %v5365_v0 }
 0xabf   :  { %4610 = vmatpush1.bf16.msra.mxu0 %v5965_v7  ;;  %4642 = vmatpush1.bf16.msra.mxu1 %v5968_v28 }
 0xac0   :  { %4612 = vmatprep.subr.bf16.mxu0 %v5973_v44  ;;  %4644 = vmatprep.subr.bf16.mxu1 %v5975_v13 }
 0xac3   :  { %4614 = vmatpush1.bf16.msra.mxu0 %v5977_v17  ;;  %4646 = vmatpush1.bf16.msra.mxu1 %v5980_v37 }
 0xac4   :  { %4616 = vmatprep.subr.bf16.mxu0 %v5985_v49  ;;  %4648 = vmatprep.subr.bf16.mxu1 %v5987_v61 }
 0xac7   :  { %4618 = vmatpush1.bf16.msra.mxu0 %v5989_v2  ;;  %4650 = vmatpush1.bf16.msra.mxu1 %v5992_v11 }
 0xac8   :  { %4620 = vmatprep.subr.bf16.mxu0 %v5997_v26  ;;  %4652 = vmatprep.subr.bf16.mxu1 %v5999_v39 }
 0xacb   :  { %4622 = vmatpush1.bf16.msra.mxu0 %v6001_v46  ;;  %4654 = vmatpush1.bf16.msra.mxu1 %v6004_v14 }
 0xacc   :  { %4624 = vmatprep.subr.bf16.mxu0 %v6009_v19  ;;  %4656 = vmatprep.subr.bf16.mxu1 %v6011_v32 }
 0xacf   :  { %4626 = vmatpush1.bf16.msra.mxu0 %v6013_v40  ;;  %4658 = vmatpush1.bf16.msra.mxu1 %v6016_v58 }
 0xad0   :  { %4628 = vmatprep.subr.bf16.mxu0 %v6020_v29  ;;  %4660 = vmatprep.subr.bf16.mxu1 %v6022_v41 }
 0xad3   :  { %4630 = vmatpush1.bf16.msra.mxu0 %v6025_v59  ;;  %4662 = vmatpush1.bf16.msra.mxu1 %v6029_v9 }
 0xad4   :  { %4632 = vmatprep.subr.bf16.mxu0 %v6033_v25  ;;  %4664 = vmatprep.subr.bf16.mxu1 %v6035_v55 }
 0xad7   :  { %4634 = vmatpush1.bf16.msra.mxu0 %v6037_v56  ;;  %4666 = vmatpush1.bf16.msra.mxu1 %v6040_v34 }
 0xad8   :  { %4668 = vmatprep.subr.bf16.mxu0 %v5949_v45  ;;  %4700 = vmatprep.subr.bf16.mxu1 %v5951_v62 }
 0xb8d   :  { %v2564_v52 = vpop.f32.mrb[24].mxu0  ;;  %v2635_v4 = vpop.f32.mrb[32].mxu1 }
 0xb8e   :  { %v2644_v18 = vrot.slane %v2564_v52, 4  ;;  %v2566_v33 = vpop.f32.mrb[25].mxu0  ;;  %v2637_v15 = vpop.f32.mrb[33].mxu1  ;;  %v2646_v1 = vrot.slane %v2635_v4, 4 }
 0xb8f   :  { %v2645_v42 = vrot.slane %v2566_v33, 4  ;;  %v2647_v48 = vrot.slane %v2637_v15, 4  ;;  %v2676_v15 = vrot.slane %v6181_v22, 6 }
 0xb90   :  { %v2652_v5 = vadd.f32 %v2644_v18, %v6114_v36  ;;  %v2654_v54 = vadd.f32 %v2646_v1, %v6136_v27 }
 0xb91   :  { %v2653_v12 = vadd.f32 %v2645_v42, %v6117_v38  ;;  %v2655_v43 = vadd.f32 %v2647_v48, %v6127_v23 }
 0xb92   :  { %v3756_v47 = vmul.f32 -1.442695, %v2652_v5 }
 0xb93   :  { %v3757_v21 = vmul.f32 -1.442695, %v2653_v12  ;;  %v3758_v35 = vmul.f32 -1.442695, %v2655_v43 }
 0xb94   :  { %5120 = vpow2.f32 %v3756_v47 }
 0xb95   :  { %5122 = vpow2.f32 %v3757_v21 }
 0xb96   :  { %5124 = vpow2.f32 %v3758_v35 }
 0xb97   :  { %5126 = vtanh.f32 %v2654_v54 }
 0xb9e   :  { %v5121_v3 = vpop.eup %5120 }
 0xb9f   :  { %v5123_v20 = vpop.eup %5122  ;;  %v2659_v6 = vadd.f32 1.0, %v5121_v3 }
 0xba0   :  { %v2665_v52 = vadd.f32 1.0, %v5123_v20  ;;  %v5125_v18 = vpop.eup %5124 }
 0xba1   :  { %5128 = vrcp.f32 %v2659_v6  ;;  %v5127_v33 = vpop.eup %5126  ;;  %v2672_v47 = vadd.f32 1.0, %v5125_v18 }
 0xba2   :  { %5130 = vrcp.f32 %v2665_v52 }
 0xba3   :  { %5132 = vrcp.f32 %v2672_v47 }
 0xbab   :  { %v5129_v42 = vpop.eup %5128 }
 0xbac   :  { %v5131_v5 = vpop.eup %5130  ;;  %v2679_v12 = vmul.f32 %v5129_v42, %v5127_v33 }
 0xbad   :  { %v2678_v4 = vmul.f32 %v5131_v5, %v2676_v15  ;;  %v5133_v48 = vpop.eup %5132 }
 0xbaf   :  { %v6223_v21 = vadd.f32 %v2679_v12, %v2678_v4 }
 0xbb1   :  { %5134 = vtanh.f32 %v6223_v21 }
 0xbbb   :  { %v5135_v43 = vpop.eup %5134 }
 0xbbc   :  { %v2682_v1 = vmul.f32 %v5135_v43, %v5133_v48 }
 0xbbe   :  { %v2684_v35 = vrot.slane %v2682_v1, 4 }
 0xbc0   :  { %2751 = vmatmul.mubr.f32.vlgmr.msra.gmra.mrb[26].mxu0 %v2684_v35  ;;  %2822 = vmatmul.mubr.f32.vlgmr.msra.gmra.mrb[34].mxu1 %v2684_v35 }
 0xbc1   :  { %4670 = vmatpush1.bf16.msra.mxu0 %v5953_v30  ;;  %4702 = vmatpush1.bf16.msra.mxu1 %v5956_v8 }
 0xbc2   :  { %4672 = vmatprep.subr.bf16.mxu0 %v5961_v50  ;;  %4704 = vmatprep.subr.bf16.mxu1 %v5963_v51 }
 0xbc3   :  { %2938 = vmatprep.mubr.f32.mxu0 %v5365_v0  ;;  %3009 = vmatprep.mubr.f32.mxu1 %v5365_v0 }
 0xbc5   :  { %4674 = vmatpush1.bf16.msra.mxu0 %v5965_v7  ;;  %4706 = vmatpush1.bf16.msra.mxu1 %v5968_v28 }
 0xbc6   :  { %4676 = vmatprep.subr.bf16.mxu0 %v5973_v44  ;;  %4708 = vmatprep.subr.bf16.mxu1 %v5975_v13 }
 0xbc9   :  { %4678 = vmatpush1.bf16.msra.mxu0 %v5977_v17  ;;  %4710 = vmatpush1.bf16.msra.mxu1 %v5980_v37 }
 0xbca   :  { %4680 = vmatprep.subr.bf16.mxu0 %v5985_v49  ;;  %4712 = vmatprep.subr.bf16.mxu1 %v5987_v61 }
 0xbcd   :  { %4682 = vmatpush1.bf16.msra.mxu0 %v5989_v2  ;;  %4714 = vmatpush1.bf16.msra.mxu1 %v5992_v11 }
 0xbce   :  { %4684 = vmatprep.subr.bf16.mxu0 %v5997_v26  ;;  %4716 = vmatprep.subr.bf16.mxu1 %v5999_v39 }
 0xbd1   :  { %4686 = vmatpush1.bf16.msra.mxu0 %v6001_v46  ;;  %4718 = vmatpush1.bf16.msra.mxu1 %v6004_v14 }
 0xbd2   :  { %4688 = vmatprep.subr.bf16.mxu0 %v6009_v19  ;;  %4720 = vmatprep.subr.bf16.mxu1 %v6011_v32 }
 0xbd5   :  { %4690 = vmatpush1.bf16.msra.mxu0 %v6013_v40  ;;  %4722 = vmatpush1.bf16.msra.mxu1 %v6016_v58 }
 0xbd6   :  { %4692 = vmatprep.subr.bf16.mxu0 %v6020_v29  ;;  %4724 = vmatprep.subr.bf16.mxu1 %v6022_v41 }
 0xbd9   :  { %4694 = vmatpush1.bf16.msra.mxu0 %v6025_v59  ;;  %4726 = vmatpush1.bf16.msra.mxu1 %v6029_v9 }
 0xbda   :  { %4696 = vmatprep.subr.bf16.mxu0 %v6033_v25  ;;  %4728 = vmatprep.subr.bf16.mxu1 %v6035_v55 }
 0xbdd   :  { %4698 = vmatpush1.bf16.msra.mxu0 %v6037_v56  ;;  %4730 = vmatpush1.bf16.msra.mxu1 %v6040_v34 }
 0xbde   :  { %4732 = vmatprep.subr.bf16.mxu0 %v5949_v45  ;;  %4764 = vmatprep.subr.bf16.mxu1 %v5951_v62 }
 0xc93   :  { %v2752_v22 = vpop.f32.mrb[26].mxu0  ;;  %v2823_v54 = vpop.f32.mrb[34].mxu1 }
 0xc94   :  { %v2832_v3 = vrot.slane %v2752_v22, 2  ;;  %v2754_v20 = vpop.f32.mrb[27].mxu0  ;;  %v2825_v6 = vpop.f32.mrb[35].mxu1  ;;  %v2834_v47 = vrot.slane %v2823_v54, 2 }
 0xc95   :  { %v2833_v52 = vrot.slane %v2754_v20, 2  ;;  %v2835_v5 = vrot.slane %v2825_v6, 2  ;;  %v2864_v20 = vrot.slane %v6223_v21, 6  ;;  %v6304_v21 = vadd.f32 %v6105_v10, %v6099_v53 }
 0xc96   :  { %v2840_v18 = vadd.f32 %v2832_v3, %v6114_v36  ;;  %v2842_v48 = vadd.f32 %v2834_v47, %v6136_v27 }
 0xc97   :  { %v2841_v33 = vadd.f32 %v2833_v52, %v6117_v38  ;;  %v2843_v12 = vadd.f32 %v2835_v5, %v6127_v23  ;;  %v6308_v5 = vadd.f32 %v6109_v24, %v6103_v60  ;;  %v6319_v60 = vadd.f32 %v6107_v16, %v6131_v57 }
 0xc98   :  { %v3759_v42 = vmul.f32 -1.442695, %v2840_v18 }
 0xc99   :  { %v3760_v15 = vmul.f32 -1.442695, %v2841_v33  ;;  %v3761_v4 = vmul.f32 -1.442695, %v2843_v12 }
 0xc9a   :  { %5136 = vpow2.f32 %v3759_v42 }
 0xc9b   :  { %5138 = vpow2.f32 %v3760_v15 }
 0xc9c   :  { %5140 = vpow2.f32 %v3761_v4 }
 0xc9d   :  { %5142 = vtanh.f32 %v2842_v48 }
 0xca4   :  { %v5137_v43 = vpop.eup %5136 }
 0xca5   :  { %v5139_v1 = vpop.eup %5138  ;;  %v2847_v35 = vadd.f32 1.0, %v5137_v43 }
 0xca6   :  { %v2853_v22 = vadd.f32 1.0, %v5139_v1  ;;  %v5141_v36 = vpop.eup %5140 }
 0xca7   :  { %5144 = vrcp.f32 %v2847_v35  ;;  %v5143_v38 = vpop.eup %5142  ;;  %v2860_v23 = vadd.f32 1.0, %v5141_v36  ;;  %v6314_v36 = vadd.f32 %v6111_v31, %v6122_v63 }
 0xca8   :  { %5146 = vrcp.f32 %v2853_v22 }
 0xca9   :  { %5148 = vrcp.f32 %v2860_v23 }
 0xcb1   :  { %v5145_v3 = vpop.eup %5144 }
 0xcb2   :  { %v5147_v6 = vpop.eup %5146  ;;  %v2867_v52 = vmul.f32 %v5145_v3, %v5143_v38 }
 0xcb3   :  { %v2866_v54 = vmul.f32 %v5147_v6, %v2864_v20  ;;  %v5149_v27 = vpop.eup %5148 }
 0xcb5   :  { %v6265_v18 = vadd.f32 %v2867_v52, %v2866_v54 }
 0xcb7   :  { %5150 = vtanh.f32 %v6265_v18  ;;  %v3040_v23 = vrot.slane %v6265_v18, 6 }
 0xcc1   :  { %v5151_v33 = vpop.eup %5150 }
 0xcc2   :  { %v2870_v42 = vmul.f32 %v5151_v33, %v5149_v27 }
 0xcc4   :  { %v2872_v15 = vrot.slane %v2870_v42, 6 }
 0xcc6   :  { %2939 = vmatmul.mubr.f32.vlgmr.msra.gmra.mrb[28].mxu0 %v2872_v15  ;;  %3010 = vmatmul.mubr.f32.vlgmr.msra.gmra.mrb[36].mxu1 %v2872_v15 }
 0xcc7   :  { %4734 = vmatpush1.bf16.msra.mxu0 %v5953_v30  ;;  %4766 = vmatpush1.bf16.msra.mxu1 %v5956_v8 }
 0xcc8   :  { %4736 = vmatprep.subr.bf16.mxu0 %v5961_v50  ;;  %4768 = vmatprep.subr.bf16.mxu1 %v5963_v51 }
 0xcc9   :  { %3111 = vmatprep.mubr.f32.mxu0 %v5365_v0  ;;  %3182 = vmatprep.mubr.f32.mxu1 %v5365_v0 }
 0xccb   :  { %4738 = vmatpush1.bf16.msra.mxu0 %v5965_v7  ;;  %4770 = vmatpush1.bf16.msra.mxu1 %v5968_v28 }
 0xccc   :  { %4740 = vmatprep.subr.bf16.mxu0 %v5973_v44  ;;  %4772 = vmatprep.subr.bf16.mxu1 %v5975_v13 }
 0xccf   :  { %4742 = vmatpush1.bf16.msra.mxu0 %v5977_v17  ;;  %4774 = vmatpush1.bf16.msra.mxu1 %v5980_v37 }
 0xcd0   :  { %4744 = vmatprep.subr.bf16.mxu0 %v5985_v49  ;;  %4776 = vmatprep.subr.bf16.mxu1 %v5987_v61 }
 0xcd3   :  { %4746 = vmatpush1.bf16.msra.mxu0 %v5989_v2  ;;  %4778 = vmatpush1.bf16.msra.mxu1 %v5992_v11 }
 0xcd4   :  { %4748 = vmatprep.subr.bf16.mxu0 %v5997_v26  ;;  %4780 = vmatprep.subr.bf16.mxu1 %v5999_v39 }
 0xcd7   :  { %4750 = vmatpush1.bf16.msra.mxu0 %v6001_v46  ;;  %4782 = vmatpush1.bf16.msra.mxu1 %v6004_v14 }
 0xcd8   :  { %4752 = vmatprep.subr.bf16.mxu0 %v6009_v19  ;;  %4784 = vmatprep.subr.bf16.mxu1 %v6011_v32 }
 0xcdb   :  { %4754 = vmatpush1.bf16.msra.mxu0 %v6013_v40  ;;  %4786 = vmatpush1.bf16.msra.mxu1 %v6016_v58 }
 0xcdc   :  { %4756 = vmatprep.subr.bf16.mxu0 %v6020_v29  ;;  %4788 = vmatprep.subr.bf16.mxu1 %v6022_v41 }
 0xcdf   :  { %4758 = vmatpush1.bf16.msra.mxu0 %v6025_v59  ;;  %4790 = vmatpush1.bf16.msra.mxu1 %v6029_v9 }
 0xce0   :  { %4760 = vmatprep.subr.bf16.mxu0 %v6033_v25  ;;  %4792 = vmatprep.subr.bf16.mxu1 %v6035_v55 }
 0xce3   :  { %4762 = vmatpush1.bf16.msra.mxu0 %v6037_v56  ;;  %4794 = vmatpush1.bf16.msra.mxu1 %v6040_v34 }
 0xce4   :  { %4796 = vmatprep.subr.bf16.mxu0 %v5949_v45  ;;  %4828 = vmatprep.subr.bf16.mxu1 %v5951_v62 }
 0xd99   :  { %v2940_v12 = vpop.f32.mrb[28].mxu0  ;;  %v3011_v47 = vpop.f32.mrb[36].mxu1 }
 0xd9a   :  { %v3016_v4 = vadd.f32 %v2940_v12, %v6304_v21  ;;  %v2942_v48 = vpop.f32.mrb[29].mxu0  ;;  %v3013_v43 = vpop.f32.mrb[37].mxu1  ;;  %v3018_v24 = vadd.f32 %v3011_v47, %v6319_v60 }
 0xd9b   :  { %v3017_v1 = vadd.f32 %v2942_v48, %v6308_v5  ;;  %v3019_v53 = vadd.f32 %v3013_v43, %v6314_v36 }
 0xd9c   :  { %v3762_v35 = vmul.f32 -1.442695, %v3016_v4 }
 0xd9d   :  { %v3763_v22 = vmul.f32 -1.442695, %v3017_v1  ;;  %v3764_v10 = vmul.f32 -1.442695, %v3019_v53 }
 0xd9e   :  { %5152 = vpow2.f32 %v3762_v35 }
 0xd9f   :  { %5154 = vpow2.f32 %v3763_v22 }
 0xda0   :  { %5156 = vpow2.f32 %v3764_v10 }
 0xda1   :  { %5158 = vtanh.f32 %v3018_v24 }
 0xda8   :  { %v5153_v38 = vpop.eup %5152 }
 0xda9   :  { %v5155_v3 = vpop.eup %5154  ;;  %v3023_v20 = vadd.f32 1.0, %v5153_v38 }
 0xdaa   :  { %v3029_v6 = vadd.f32 1.0, %v5155_v3  ;;  %v5157_v31 = vpop.eup %5156 }
 0xdab   :  { %5160 = vrcp.f32 %v3023_v20  ;;  %v5159_v63 = vpop.eup %5158  ;;  %v3036_v16 = vadd.f32 1.0, %v5157_v31 }
 0xdac   :  { %5162 = vrcp.f32 %v3029_v6 }
 0xdad   :  { %5164 = vrcp.f32 %v3036_v16 }
 0xdb5   :  { %v5161_v52 = vpop.eup %5160 }
 0xdb6   :  { %v5163_v54 = vpop.eup %5162  ;;  %v3043_v27 = vmul.f32 %v5161_v52, %v5159_v63 }
 0xdb7   :  { %v3042_v57 = vmul.f32 %v5163_v54, %v3040_v23  ;;  %v5165_v42 = vpop.eup %5164 }
 0xdb9   :  { %v6323_v33 = vadd.f32 %v3043_v27, %v3042_v57 }
 0xdbb   :  { %5166 = vtanh.f32 %v6323_v33  ;;  %v3225_v27 = vrot.slane %v6323_v33, 6 }
 0xdc5   :  { %v5167_v15 = vpop.eup %5166 }
 0xdc6   :  { %v3046_v12 = vmul.f32 %v5167_v15, %v5165_v42 }
 0xdc8   :  { %3112 = vmatmul.mubr.f32.vlgmr.msra.gmra.mrb[30].mxu0 %v3046_v12  ;;  %3183 = vmatmul.mubr.f32.vlgmr.msra.gmra.mrb[38].mxu1 %v3046_v12 }
 0xdc9   :  { %4798 = vmatpush1.bf16.msra.mxu0 %v5953_v30  ;;  %4830 = vmatpush1.bf16.msra.mxu1 %v5956_v8 }
 0xdca   :  { %4800 = vmatprep.subr.bf16.mxu0 %v5961_v50  ;;  %4832 = vmatprep.subr.bf16.mxu1 %v5963_v51 }
 0xdcb   :  { %3299 = vmatprep.mubr.f32.mxu0 %v5365_v0  ;;  %3370 = vmatprep.mubr.f32.mxu1 %v5365_v0 }
 0xdcd   :  { %4802 = vmatpush1.bf16.msra.mxu0 %v5965_v7  ;;  %4834 = vmatpush1.bf16.msra.mxu1 %v5968_v28 }
 0xdce   :  { %4804 = vmatprep.subr.bf16.mxu0 %v5973_v44  ;;  %4836 = vmatprep.subr.bf16.mxu1 %v5975_v13 }
 0xdd1   :  { %4806 = vmatpush1.bf16.msra.mxu0 %v5977_v17  ;;  %4838 = vmatpush1.bf16.msra.mxu1 %v5980_v37 }
 0xdd2   :  { %4808 = vmatprep.subr.bf16.mxu0 %v5985_v49  ;;  %4840 = vmatprep.subr.bf16.mxu1 %v5987_v61 }
 0xdd5   :  { %4810 = vmatpush1.bf16.msra.mxu0 %v5989_v2  ;;  %4842 = vmatpush1.bf16.msra.mxu1 %v5992_v11 }
 0xdd6   :  { %4812 = vmatprep.subr.bf16.mxu0 %v5997_v26  ;;  %4844 = vmatprep.subr.bf16.mxu1 %v5999_v39 }
 0xdd9   :  { %4814 = vmatpush1.bf16.msra.mxu0 %v6001_v46  ;;  %4846 = vmatpush1.bf16.msra.mxu1 %v6004_v14 }
 0xdda   :  { %4816 = vmatprep.subr.bf16.mxu0 %v6009_v19  ;;  %4848 = vmatprep.subr.bf16.mxu1 %v6011_v32 }
 0xddd   :  { %4818 = vmatpush1.bf16.msra.mxu0 %v6013_v40  ;;  %4850 = vmatpush1.bf16.msra.mxu1 %v6016_v58 }
 0xdde   :  { %4820 = vmatprep.subr.bf16.mxu0 %v6020_v29  ;;  %4852 = vmatprep.subr.bf16.mxu1 %v6022_v41 }
 0xde1   :  { %4822 = vmatpush1.bf16.msra.mxu0 %v6025_v59  ;;  %4854 = vmatpush1.bf16.msra.mxu1 %v6029_v9 }
 0xde2   :  { %4824 = vmatprep.subr.bf16.mxu0 %v6033_v25  ;;  %4856 = vmatprep.subr.bf16.mxu1 %v6035_v55 }
 0xde5   :  { %4826 = vmatpush1.bf16.msra.mxu0 %v6037_v56  ;;  %4858 = vmatpush1.bf16.msra.mxu1 %v6040_v34 }
 0xde6   :  { %4860 = vmatprep.subr.bf16.mxu0 %v5949_v45  ;;  %4892 = vmatprep.subr.bf16.mxu1 %v5951_v62 }
 0xe9b   :  { %v3113_v18 = vpop.f32.mrb[30].mxu0  ;;  %v3184_v47 = vpop.f32.mrb[38].mxu1 }
 0xe9c   :  { %v3193_v4 = vrot.slane %v3113_v18, 6  ;;  %v3115_v48 = vpop.f32.mrb[31].mxu0  ;;  %v3186_v43 = vpop.f32.mrb[39].mxu1  ;;  %v3195_v45 = vrot.slane %v3184_v47, 6 }
 0xe9d   :  { %v3194_v1 = vrot.slane %v3115_v48, 6  ;;  %v3196_v24 = vrot.slane %v3186_v43, 6 }
 0xe9e   :  { %v3201_v35 = vadd.f32 %v3193_v4, %v6304_v21  ;;  %v3203_v62 = vadd.f32 %v3195_v45, %v6319_v60  ;;  %v3612_v45 = vld [vmem:[#allocation11 + $0x20] sm:$0xff] }
 0xe9f   :  { %v3202_v22 = vadd.f32 %v3194_v1, %v6308_v5  ;;  %v3204_v38 = vadd.f32 %v3196_v24, %v6314_v36  ;;  %v3608_v1 = vld [vmem:[#allocation11] sm:$0xff]  ;;  %v3611_v24 = vld [vmem:[#allocation11 + $0x18] sm:$0xff] }
 0xea0   :  { %v3765_v53 = vmul.f32 -1.442695, %v3201_v35  ;;  %v3609_v35 = vld [vmem:[#allocation11 + $0x8] sm:$0xff] }
 0xea1   :  { %v3766_v10 = vmul.f32 -1.442695, %v3202_v22  ;;  %v3767_v3 = vmul.f32 -1.442695, %v3204_v38  ;;  %v4924_v22 = vpack.c.bf16 %v3609_v35, %v3608_v1 }
 0xea2   :  { %5168 = vpow2.f32 %v3765_v53  ;;  %v5366_v53 = vmov 0.0|0.0  }
 0xea3   :  { %5170 = vpow2.f32 %v3766_v10  ;;  %v3610_v10 = vld [vmem:[#allocation11 + $0x10] sm:$0xff] }
 0xea4   :  { %5172 = vpow2.f32 %v3767_v3  ;;  %v4927_v38 = vpack.c.bf16 %v3611_v24, %v3610_v10  ;;  %v3613_v3 = vld [vmem:[#allocation11 + $0x28] sm:$0xff] }
 0xea5   :  { %5174 = vtanh.f32 %v3203_v62  ;;  %v4930_v62 = vpack.c.bf16 %v3613_v3, %v3612_v45 }
 0xeac   :  { %v5169_v20 = vpop.eup %5168 }
 0xead   :  { %v5171_v6 = vpop.eup %5170  ;;  %v3208_v31 = vadd.f32 1.0, %v5169_v20  ;;  %v3614_v20 = vld [vmem:[#allocation11 + $0x30] sm:$0xff] }
 0xeae   :  { %v3214_v63 = vadd.f32 1.0, %v5171_v6  ;;  %v5173_v52 = vpop.eup %5172  ;;  %v3615_v6 = vld [vmem:[#allocation11 + $0x38] sm:$0xff] }
 0xeaf   :  { %5176 = vrcp.f32 %v3208_v31  ;;  %v5175_v23 = vpop.eup %5174  ;;  %v3221_v42 = vadd.f32 1.0, %v5173_v52  ;;  %v4933_v31 = vpack.c.bf16 %v3615_v6, %v3614_v20  ;;  %v3617_v52 = vld [vmem:[#allocation11 + $0x48] sm:$0xff] }
 0xeb0   :  { %5178 = vrcp.f32 %v3214_v63  ;;  %v3616_v63 = vld [vmem:[#allocation11 + $0x40] sm:$0xff] }
 0xeb1   :  { %5180 = vrcp.f32 %v3221_v42  ;;  %v3621_v42 = vld [vmem:[#allocation11 + $0x68] sm:$0xff] }
 0xeb9   :  { %v5177_v54 = vpop.eup %5176 }
 0xeba   :  { %v5179_v16 = vpop.eup %5178  ;;  %v3228_v57 = vmul.f32 %v5177_v54, %v5175_v23  ;;  %v4936_v23 = vpack.c.bf16 %v3617_v52, %v3616_v63  ;;  %v3618_v54 = vld [vmem:[#allocation11 + $0x50] sm:$0xff] }
 0xebb   :  { %v3227_v15 = vmul.f32 %v5179_v16, %v3225_v27  ;;  %v5181_v18 = vpop.eup %5180  ;;  %v3619_v27 = vld [vmem:[#allocation11 + $0x58] sm:$0xff] }
 0xebc   :  { %v4939_v16 = vpack.c.bf16 %v3619_v27, %v3618_v54 }
 0xebd   :  { %v6365_v12 = vadd.f32 %v3228_v57, %v3227_v15  ;;  %v3620_v57 = vld [vmem:[#allocation11 + $0x60] sm:$0xff] }
 0xebe   :  { %v4942_v15 = vpack.c.bf16 %v3621_v42, %v3620_v57 }
 0xebf   :  { %5182 = vtanh.f32 %v6365_v12 }
 0xec9   :  { %v5183_v47 = vpop.eup %5182 }
 0xeca   :  { %v3231_v4 = vmul.f32 %v5183_v47, %v5181_v18  ;;  %v3623_v18 = vld [vmem:[#allocation11 + $0x78] sm:$0xff] }
 0xecc   :  { %v3233_v48 = vrot.slane %v3231_v4, 2 }
 0xece   :  { %3300 = vmatmul.mubr.f32.vlgmr.msra.gmra.mrb[32].mxu0 %v3233_v48  ;;  %3371 = vmatmul.mubr.f32.vlgmr.msra.gmra.mrb[40].mxu1 %v3233_v48 }
 0xecf   :  { %4862 = vmatpush1.bf16.msra.mxu0 %v5953_v30  ;;  %4894 = vmatpush1.bf16.msra.mxu1 %v5956_v8 }
 0xed0   :  { %4864 = vmatprep.subr.bf16.mxu0 %v5961_v50  ;;  %4896 = vmatprep.subr.bf16.mxu1 %v5963_v51 }
 0xed1   :  { %3487 = vmatprep.mubr.f32.mxu0 %v5365_v0  ;;  %3558 = vmatprep.mubr.f32.mxu1 %v5365_v0 }
 0xed3   :  { %4866 = vmatpush1.bf16.msra.mxu0 %v5965_v7  ;;  %4898 = vmatpush1.bf16.msra.mxu1 %v5968_v28 }
 0xed4   :  { %4868 = vmatprep.subr.bf16.mxu0 %v5973_v44  ;;  %4900 = vmatprep.subr.bf16.mxu1 %v5975_v13 }
 0xed7   :  { %4870 = vmatpush1.bf16.msra.mxu0 %v5977_v17  ;;  %4902 = vmatpush1.bf16.msra.mxu1 %v5980_v37 }
 0xed8   :  { %4872 = vmatprep.subr.bf16.mxu0 %v5985_v49  ;;  %4904 = vmatprep.subr.bf16.mxu1 %v5987_v61 }
 0xedb   :  { %4874 = vmatpush1.bf16.msra.mxu0 %v5989_v2  ;;  %4906 = vmatpush1.bf16.msra.mxu1 %v5992_v11 }
 0xedc   :  { %4876 = vmatprep.subr.bf16.mxu0 %v5997_v26  ;;  %4908 = vmatprep.subr.bf16.mxu1 %v5999_v39 }
 0xedf   :  { %4878 = vmatpush1.bf16.msra.mxu0 %v6001_v46  ;;  %4910 = vmatpush1.bf16.msra.mxu1 %v6004_v14 }
 0xee0   :  { %4880 = vmatprep.subr.bf16.mxu0 %v6009_v19  ;;  %4912 = vmatprep.subr.bf16.mxu1 %v6011_v32 }
 0xee3   :  { %4882 = vmatpush1.bf16.msra.mxu0 %v6013_v40  ;;  %4914 = vmatpush1.bf16.msra.mxu1 %v6016_v58 }
 0xee4   :  { %4884 = vmatprep.subr.bf16.mxu0 %v6020_v29  ;;  %4916 = vmatprep.subr.bf16.mxu1 %v6022_v41  ;;  %v3413_v29 = vrot.slane %v6365_v12, 6  ;;  %v3622_v12 = vld [vmem:[#allocation11 + $0x70] sm:$0xff] }
 0xee5   :  { %v4945_v47 = vpack.c.bf16 %v3623_v18, %v3622_v12 }
 0xee7   :  { %4886 = vmatpush1.bf16.msra.mxu0 %v6025_v59  ;;  %4918 = vmatpush1.bf16.msra.mxu1 %v6029_v9 }
 0xee8   :  { %4888 = vmatprep.subr.bf16.mxu0 %v6033_v25  ;;  %4920 = vmatprep.subr.bf16.mxu1 %v6035_v55 }
 0xeeb   :  { %4890 = vmatpush1.bf16.msra.mxu0 %v6037_v56  ;;  %4922 = vmatpush1.bf16.msra.mxu1 %v6040_v34 }
 0xeec   :  { %4923 = vmatprep.subr.bf16.mxu0 %v5366_v53 }
 0xfa1   :  { %v3301_v30 = vpop.f32.mrb[32].mxu0  ;;  %v3372_v8 = vpop.f32.mrb[40].mxu1 }
 0xfa2   :  { %v3381_v50 = vrot.slane %v3301_v30, 4  ;;  %v3303_v51 = vpop.f32.mrb[33].mxu0  ;;  %v3374_v7 = vpop.f32.mrb[41].mxu1  ;;  %v3383_v2 = vrot.slane %v3372_v8, 4 }
 0xfa3   :  { %v3382_v28 = vrot.slane %v3303_v51, 4  ;;  %v3384_v49 = vrot.slane %v3374_v7, 4 }
 0xfa4   :  { %v3389_v44 = vadd.f32 %v3381_v50, %v6304_v21  ;;  %v3391_v26 = vadd.f32 %v3383_v2, %v6319_v60 }
 0xfa5   :  { %v3390_v13 = vadd.f32 %v3382_v28, %v6308_v5  ;;  %v3392_v61 = vadd.f32 %v3384_v49, %v6314_v36 }
 0xfa6   :  { %v3768_v17 = vmul.f32 -1.442695, %v3389_v44 }
 0xfa7   :  { %v3769_v37 = vmul.f32 -1.442695, %v3390_v13  ;;  %v3770_v11 = vmul.f32 -1.442695, %v3392_v61 }
 0xfa8   :  { %5184 = vpow2.f32 %v3768_v17 }
 0xfa9   :  { %5186 = vpow2.f32 %v3769_v37 }
 0xfaa   :  { %5188 = vpow2.f32 %v3770_v11 }
 0xfab   :  { %5190 = vtanh.f32 %v3391_v26 }
 0xfb2   :  { %v5185_v39 = vpop.eup %5184 }
 0xfb3   :  { %v5187_v46 = vpop.eup %5186  ;;  %v3396_v14 = vadd.f32 1.0, %v5185_v39 }
 0xfb4   :  { %v3402_v19 = vadd.f32 1.0, %v5187_v46  ;;  %v5189_v32 = vpop.eup %5188 }
 0xfb5   :  { %5192 = vrcp.f32 %v3396_v14  ;;  %v5191_v40 = vpop.eup %5190  ;;  %v3409_v9 = vadd.f32 1.0, %v5189_v32 }
 0xfb6   :  { %5194 = vrcp.f32 %v3402_v19 }
 0xfb7   :  { %5196 = vrcp.f32 %v3409_v9  ;;  %v3774_v9 = vld [vmem:[%s6437_s8] ss:$0 sm:$0xff] }
 0xfbf   :  { %v5193_v58 = vpop.eup %5192 }
 0xfc0   :  { %v5195_v41 = vpop.eup %5194  ;;  %v3416_v59 = vmul.f32 %v5193_v58, %v5191_v40 }
 0xfc1   :  { %v3415_v25 = vmul.f32 %v5195_v41, %v3413_v29  ;;  %v5197_v56 = vpop.eup %5196 }
 0xfc3   :  { %v6405_v55 = vadd.f32 %v3416_v59, %v3415_v25 }
 0xfc5   :  { %5198 = vtanh.f32 %v6405_v55  ;;  %v3601_v14 = vrot.slane %v6405_v55, 6 }
 0xfcf   :  { %v5199_v34 = vpop.eup %5198 }
 0xfd0   :  { %v3419_v33 = vmul.f32 %v5199_v34, %v5197_v56 }
 0xfd2   :  { %v3421_v43 = vrot.slane %v3419_v33, 4 }
 0xfd4   :  { %3488 = vmatmul.mubr.f32.vlgmr.msra.gmra.mrb[34].mxu0 %v3421_v43  ;;  %3559 = vmatmul.mubr.f32.vlgmr.msra.gmra.mrb[42].mxu1 %v3421_v43 }
 0xfd5   :  { %4925 = vmatpush3.bf16.msra.mxu0 %v4924_v22  ;;  %3824 = vmatprep.mubr.msk.f32.mxu0 %vm5367_vm1, %v5365_v0 }
 0xfd6   :  { %4926 = vmatprep.subr.bf16.mxu0 %v5366_v53 }
 0xfd9   :  { %4928 = vmatpush3.bf16.msra.mxu0 %v4927_v38 }
 0xfda   :  { %4929 = vmatprep.subr.bf16.mxu0 %v5366_v53 }
 0xfdd   :  { %4931 = vmatpush3.bf16.msra.mxu0 %v4930_v62 }
 0xfde   :  { %4932 = vmatprep.subr.bf16.mxu0 %v5366_v53 }
 0xfe1   :  { %4934 = vmatpush3.bf16.msra.mxu0 %v4933_v31 }
 0xfe2   :  { %4935 = vmatprep.subr.bf16.mxu0 %v5366_v53 }
 0xfe5   :  { %4937 = vmatpush3.bf16.msra.mxu0 %v4936_v23 }
 0xfe6   :  { %4938 = vmatprep.subr.bf16.mxu0 %v5366_v53 }
 0xfe9   :  { %4940 = vmatpush3.bf16.msra.mxu0 %v4939_v16 }
 0xfea   :  { %4941 = vmatprep.subr.bf16.mxu0 %v5366_v53 }
 0xfed   :  { %4943 = vmatpush3.bf16.msra.mxu0 %v4942_v15 }
 0xfee   :  { %4944 = vmatprep.subr.bf16.mxu0 %v5366_v53 }
 0xff1   :  { %4946 = vmatpush3.bf16.msra.mxu0 %v4945_v47 }
0x10a7   :  { %v3489_v4 = vpop.f32.mrb[34].mxu0  ;;  %v3560_v48 = vpop.f32.mrb[42].mxu1 }
0x10a8   :  { %v3569_v0 = vrot.slane %v3489_v4, 2  ;;  %v3491_v30 = vpop.f32.mrb[35].mxu0  ;;  %v3562_v8 = vpop.f32.mrb[43].mxu1  ;;  %v3571_v37 = vrot.slane %v3560_v48, 2 }
0x10a9   :  { %v3570_v50 = vrot.slane %v3491_v30, 2  ;;  %v3572_v13 = vrot.slane %v3562_v8, 2 }
0x10aa   :  { %v3577_v51 = vadd.f32 %v3569_v0, %v6304_v21  ;;  %v3579_v61 = vadd.f32 %v3571_v37, %v6319_v60 }
0x10ab   :  { %v3578_v7 = vadd.f32 %v3570_v50, %v6308_v5  ;;  %v3580_v17 = vadd.f32 %v3572_v13, %v6314_v36 }
0x10ac   :  { %v3771_v28 = vmul.f32 -1.442695, %v3577_v51 }
0x10ad   :  { %v3772_v44 = vmul.f32 -1.442695, %v3578_v7  ;;  %v3773_v49 = vmul.f32 -1.442695, %v3580_v17 }
0x10ae   :  { %5200 = vpow2.f32 %v3771_v28 }
0x10af   :  { %5202 = vpow2.f32 %v3772_v44 }
0x10b0   :  { %5204 = vpow2.f32 %v3773_v49 }
0x10b1   :  { %5206 = vtanh.f32 %v3579_v61 }
0x10b8   :  { %v5201_v2 = vpop.eup %5200 }
0x10b9   :  { %v5203_v11 = vpop.eup %5202  ;;  %v3584_v26 = vadd.f32 1.0, %v5201_v2 }
0x10ba   :  { %v3590_v39 = vadd.f32 1.0, %v5203_v11  ;;  %v5205_v21 = vpop.eup %5204 }
0x10bb   :  { %5208 = vrcp.f32 %v3584_v26  ;;  %v5207_v5 = vpop.eup %5206  ;;  %v3597_v36 = vadd.f32 1.0, %v5205_v21 }
0x10bc   :  { %5210 = vrcp.f32 %v3590_v39 }
0x10bd   :  { %5212 = vrcp.f32 %v3597_v36 }
0x10c5   :  { %v5209_v46 = vpop.eup %5208 }
0x10c6   :  { %v5211_v19 = vpop.eup %5210  ;;  %v3604_v32 = vmul.f32 %v5209_v46, %v5207_v5 }
0x10c7   :  { %v3603_v40 = vmul.f32 %v5211_v19, %v3601_v14  ;;  %v5213_v60 = vpop.eup %5212 }
0x10c9   :  { %v3605_v58 = vadd.f32 %v3604_v32, %v3603_v40 }
0x10cb   :  { %5214 = vtanh.f32 %v3605_v58 }
0x10d5   :  { %v5215_v29 = vpop.eup %5214 }
0x10d6   :  { %v3607_v41 = vmul.f32 %v5215_v29, %v5213_v60 }
0x10d8   :  { %v3632_v59 = vrot.slane %v3607_v41, 6 }
0x10da   :  { %3825 = vmatmul.mubr.f32.vlgmr.msra.gmra.mrb[36].mxu0 %v3632_v59 }
0x11ad   :  { %v3700_v25 = vpop.f32.mrb[36].mxu0 }
0x11ae   :  { %v3701_v55 = vadd.f32 %v3774_v9, %v3700_v25  ;;  %v3826_v56 = vpop.f32.mrb[37].mxu0 }
0x11b0   :  { %3704 = vst [vmem:[#allocation12] sm:$0x3] %v3701_v55 }
0x11b1   :  { %5337 = shalt.err (!%p5334_p2)
}
0x11b2   :  { %s5338_s16 = scalar_lea.hbm %s6438_s9, 32 }
0x11b3   :  { %p5339_p3 = scmp.ne.s32.totalorder %s6438_s9, %s5338_s16  ;;  %p5342_p4 = scmp.lt.u32.totalorder %s5338_s16, %s6438_s9 }
0x11b5   :  { %p5344_p5 = pnand %p5342_p4, %p5339_p3 }
0x11b7   :  { %5347 = shalt.err (!%p5344_p5)
}
0x11b8   :  { %3714 = dma.vmem_to_hbm [thread:$0]  %s3712_s10, 32, %s6438_s9, [#allocation5]  }
0x11b9   :  { %5354 = dma.done.wait [#allocation5], 32  }
0x11ba   :  { %5355 = vsyncadd [#allocation5], 4294967264 }
0x11bb   :  { %3718 = vsyncpa [#allocation4], 1 }
0x11bc   :  { %3719 = vsyncpa [#allocation7], 1 }
0x11bd   :  { %3720 = vsyncpa [#allocation10], 1 }
0x11be   :  { %3721 = vsyncpa [#allocation5], 1 }

</bundles_post_ra>
